<compile_context>
chip_gen: v6e
topology: v6e:2x2x1
jax: 0.10.0
libtpu: 0.0.40
codegen_flags: <defaults>
</compile_context>

<pallas_src>
import functools

import jax
import jax.numpy as jnp
from jax.experimental import pallas as pl
from jax.experimental.pallas import tpu as pltpu

BN_EPS = 1e-5
LANE = 128


def _round_up(x, m):
    return (x + m - 1) // m * m


# ---------------------------------------------------------------------------
# Pallas fused GEMM kernel:  out = maybe_relu(A @ B + bias)
# (BN scale is pre-folded into B; single K step => no scratch accumulator.)
# ---------------------------------------------------------------------------
def _gemm_bias_relu_kernel(a_ref, b_ref, t_ref, o_ref, *, relu):
    y = jnp.dot(a_ref[...], b_ref[...], preferred_element_type=jnp.float32)
    y = y + t_ref[...]
    if relu:
        y = jnp.maximum(y, 0.0)
    o_ref[...] = y


def pallas_gemm_bias(A, Bm, shift, relu=False):
    """A:(M,K)  Bm:(K,N)  shift:(N,)  ->  (M,N) float32."""
    M, K = A.shape
    K2, N = Bm.shape
    assert K == K2
    Np = _round_up(N, LANE)             # lane-dense stores (esp. v5e: 1 vst slot)
    if M > 512:
        TM = 512                        # >=2 grid steps on M -> feeds both TCs (v7x)
        Mp = _round_up(M, TM)
    else:
        TM = _round_up(M, 8)            # single full-M block, pad only to sublane
        Mp = TM
    TN = LANE

    Ap = A.astype(jnp.bfloat16)
    if Mp != M:
        Ap = jnp.pad(Ap, ((0, Mp - M), (0, 0)))
    Bp = Bm.astype(jnp.bfloat16)
    if Np != N:
        Bp = jnp.pad(Bp, ((0, 0), (0, Np - N)))
    tp = jnp.pad(shift.astype(jnp.float32).reshape(1, N), ((0, 0), (0, Np - N)))

    out = pl.pallas_call(
        functools.partial(_gemm_bias_relu_kernel, relu=relu),
        out_shape=jax.ShapeDtypeStruct((Mp, Np), jnp.float32),
        grid_spec=pltpu.PrefetchScalarGridSpec(
            num_scalar_prefetch=0,
            grid=(Mp // TM, Np // TN),
            in_specs=[
                pl.BlockSpec((TM, K), lambda i, j: (i, 0)),   # full-K block
                pl.BlockSpec((K, TN), lambda i, j: (0, j)),
                pl.BlockSpec((1, TN), lambda i, j: (0, j)),
            ],
            out_specs=pl.BlockSpec((TM, TN), lambda i, j: (i, j)),
        ),
        compiler_params=pltpu.CompilerParams(
            dimension_semantics=("parallel", "parallel")),
    )(Ap, Bp, tp)
    if Mp != M or Np != N:
        out = out[:M, :N]
    return out


# ---------------------------------------------------------------------------
# Channel-last conv wrappers (im2col built directly in GEMM layout: tap-major,
# channel-minor columns -> concat on lane axis + trivial reshape, no transpose)
# ---------------------------------------------------------------------------
def fold_bn(bn, conv_bias=None):
    gamma, beta, mean, var = bn
    s = gamma / jnp.sqrt(var + BN_EPS)
    t = beta - mean * s
    if conv_bias is not None:
        t = t + conv_bias * s
    return s, t


def conv2d_cl(x, w, scale, shift, padding, relu):
    """x:(B,H,W,Cin) channel-last, w:(Cout,Cin,kh,kw), stride=1."""
    B, H, W, Cin = x.shape
    Cout, _, kh, kw = w.shape
    ph, pw = (padding, padding) if isinstance(padding, int) else padding
    xp = jnp.pad(x, ((0, 0), (ph, ph), (pw, pw), (0, 0)))
    cols = [xp[:, dy:dy + H, dx:dx + W, :] for dy in range(kh) for dx in range(kw)]
    A = jnp.concatenate(cols, axis=-1).reshape(B * H * W, kh * kw * Cin)
    wm = (w * scale[:, None, None, None]).transpose(2, 3, 1, 0)
    wm = wm.reshape(kh * kw * Cin, Cout)
    out = pallas_gemm_bias(A, wm, shift, relu=relu)
    return out.reshape(B, H, W, Cout)


def conv3d_cl(x, w, scale, shift, padding, relu):
    """x:(B,D,H,W,Cin) channel-last, w:(Cout,Cin,kd,kh,kw), stride=1."""
    B, D, H, W, Cin = x.shape
    Cout, _, kd, kh, kw = w.shape
    pd, ph, pw = padding
    xp = jnp.pad(x, ((0, 0), (pd, pd), (ph, ph), (pw, pw), (0, 0)))
    cols = [xp[:, dz:dz + D, dy:dy + H, dx:dx + W, :]
            for dz in range(kd) for dy in range(kh) for dx in range(kw)]
    A = jnp.concatenate(cols, axis=-1).reshape(B * D * H * W, kd * kh * kw * Cin)
    wm = (w * scale[:, None, None, None, None]).transpose(2, 3, 4, 1, 0)
    wm = wm.reshape(kd * kh * kw * Cin, Cout)
    out = pallas_gemm_bias(A, wm, shift, relu=relu)
    return out.reshape(B, D, H, W, Cout)


def avgpool2d_cl(x):   # kernel 2, stride 2, channel-last
    B, H, W, C = x.shape
    return x.reshape(B, H // 2, 2, W // 2, 2, C).mean(axis=(2, 4))


def avgpool3d_cl(x):   # kernel 2, stride 2, channel-last
    B, D, H, W, C = x.shape
    return x.reshape(B, D // 2, 2, H // 2, 2, W // 2, 2, C).mean(axis=(2, 4, 6))


def pixel_unshuffle_cl(x, r=2):
    """Channel-last PixelUnshuffle matching PyTorch's NCHW channel ordering."""
    B, H, W, C = x.shape
    x = x.reshape(B, H // r, r, W // r, r, C)
    x = x.transpose(0, 1, 3, 5, 2, 4)                    # (B,H/r,W/r,C,r,r)
    return x.reshape(B, H // r, W // r, C * r * r)


def merge_multiscale_3d(params, prefix, kmax=9):
    """Fuse conv{prefix}_{1..4} (kernels (3|5|7|9,1,1)) into one weight/bias."""
    ws, bs = [], []
    for i, kk in enumerate((3, 5, 7, 9)):
        w = params[f'w_{prefix}_{i}']                    # (q, Cin, kk, 1, 1)
        p = (kmax - kk) // 2
        ws.append(jnp.pad(w, ((0, 0), (0, 0), (p, p), (0, 0), (0, 0))))
        bs.append(params[f'b_{prefix}_{i}'])
    return jnp.concatenate(ws, axis=0), jnp.concatenate(bs, axis=0)


def merge_multiscale_2d(params, prefix, kmax=9):
    """Fuse conv{prefix}_{1..4} (kernels 3|5|7|9 square) into one weight/bias."""
    ws, bs = [], []
    for i, kk in enumerate((3, 5, 7, 9)):
        w = params[f'w_{prefix}_{i}']                    # (q, Cin, kk, kk)
        p = (kmax - kk) // 2
        ws.append(jnp.pad(w, ((0, 0), (0, 0), (p, p), (p, p))))
        bs.append(params[f'b_{prefix}_{i}'])
    return jnp.concatenate(ws, axis=0), jnp.concatenate(bs, axis=0)


# ---------------------------------------------------------------------------
# Deterministic parameter init (matches nn.Module shapes; synthetic values)
# ---------------------------------------------------------------------------
def init_params(key, dim, patch, hsi, classes):
    keys = iter(jax.random.split(key, 128))

    def w(shape, scale=0.05):
        return scale * jax.random.normal(next(keys), shape, dtype=jnp.float32)

    def bn(c):
        return (1.0 + 0.1 * jax.random.normal(next(keys), (c,), jnp.float32),   # gamma
                0.1 * jax.random.normal(next(keys), (c,), jnp.float32),         # beta
                0.1 * jax.random.normal(next(keys), (c,), jnp.float32),         # running_mean
                1.0 + 0.1 * jnp.abs(jax.random.normal(next(keys), (c,), jnp.float32)))  # running_var

    q = dim // 4
    F = 8 * (patch // 4) ** 2
    p = {}
    # HSI branch
    p['w_convhs'] = w((dim, 1, 3, 3, 3)); p['b_convhs'] = w((dim,)); p['bn_convhs'] = bn(dim)
    for i, kk in enumerate((3, 5, 7, 9)):
        p[f'w_conv1_{i}'] = w((q, dim, kk, 1, 1)); p[f'b_conv1_{i}'] = w((q,))
    p['bn1'] = bn(dim)
    p['w_convhs2'] = w((dim, dim, 3, 3, 3)); p['b_convhs2'] = w((dim,)); p['bn_convhs2'] = bn(dim)
    p['w_convhs3'] = w((16, hsi * 8, 3, 3)); p['b_convhs3'] = w((16,)); p['bn_convhs3'] = bn(16)
    # LiDAR branch (nn.BatchNorm2d(16) is hard-coded in the PyTorch module)
    p['w_convlidar'] = w((dim, 1, 3, 3)); p['b_convlidar'] = w((dim,)); p['bn_convlidar'] = bn(16)
    for i, kk in enumerate((3, 5, 7, 9)):
        p[f'w_conv2_{i}'] = w((q, dim, kk, kk)); p[f'b_conv2_{i}'] = w((q,))
    p['bn2'] = bn(dim)
    p['w_convlidar2'] = w((dim, dim, 3, 3)); p['b_convlidar2'] = w((dim,)); p['bn_convlidar2'] = bn(dim)
    # Downsample (no bias, no bn)
    p['w_down1'] = w((dim // 2, dim, 3, 3))
    p['w_down2'] = w((dim // 2, dim, 3, 3))
    # fusion conv
    p['w_conv'] = w((dim * 2, dim * 2, 3, 3)); p['b_conv'] = w((dim * 2,)); p['bn_conv'] = bn(dim * 2)
    # EDMoE placeholder (1x1 projection dim*2 -> dim//2)
    p['w_edmoe'] = w((dim * 2, dim // 2)); p['b_edmoe'] = w((dim // 2,))
    # head
    p['bn_out'] = bn(F)
    p['w_out'] = w((classes, F)); p['b_out'] = w((classes,))
    # positional embeddings (PyTorch NCHW / native layouts)
    p['pos_embed1'] = w((1, dim, patch // 2, patch // 2), 0.1)
    p['pos_embed2'] = w((1, dim * 2, patch // 4, patch // 4), 0.1)
    p['pos_embed'] = w((1, hsi // 2, (patch // 2) ** 2, dim), 0.1)
    p['w1'] = jnp.float32(0.5)
    p['w2'] = jnp.float32(0.5)
    return p


# ---------------------------------------------------------------------------
# IDnet forward (activations channel-last throughout)
# ---------------------------------------------------------------------------
def idnet_forward(params, x1, x2, dim, patch, hsi):
    B = x1.shape[0]
    half = dim // 2
    ones = lambda n: jnp.ones((n,), jnp.float32)
    zeros = lambda n: jnp.zeros((n,), jnp.float32)

    # pos embeds converted once to channel-last (tiny constants)
    pos1 = params['pos_embed1'].transpose(0, 2, 3, 1)        # (1,P/2,P/2,dim)
    pos2 = params['pos_embed2'].transpose(0, 2, 3, 1)        # (1,P/4,P/4,2*dim)

    # ----------------- HSI branch (NDHWC) -----------------
    h = x1[..., None]                                        # (B,hsi,P,P,1)
    s, t = fold_bn(params['bn_convhs'], params['b_convhs'])
    h = conv3d_cl(h, params['w_convhs'], s, t, (1, 1, 1), relu=True)

    # four multi-scale spectral convs fused into ONE GEMM; bn1 + ReLU folded
    w_ms, b_ms = merge_multiscale_3d(params, 'conv1')
    s, t = fold_bn(params['bn1'], b_ms)
    h = conv3d_cl(h, w_ms, s, t, (4, 0, 0), relu=True)

    s, t = fold_bn(params['bn_convhs2'], params['b_convhs2'])
    h = conv3d_cl(h, params['w_convhs2'], s, t, (1, 1, 1), relu=True)
    h = avgpool3d_cl(h)                                      # Dropout(0.5): eval -> identity

    # PyTorch performs a *raw* NCDHW reshape here; reproduce it exactly
    # (tiny tensor: B * dim * (hsi/2) * (P/2)^2 elements).
    h_ncdhw = h.transpose(0, 4, 1, 2, 3)                     # (B,dim,hsi/2,P/2,P/2)
    D2, H2, W2 = h_ncdhw.shape[2], h_ncdhw.shape[3], h_ncdhw.shape[4]
    h = h_ncdhw.reshape(B, D2, H2 * W2, dim)
    h = h + params['pos_embed']                              # Dropout(0.01): identity
    # TODO(synk): SSICTransformerBlock definition not provided; treated as identity.
    h = h.reshape(B, dim, D2, H2, W2).reshape(B, dim * D2, H2, W2)  # 'b c h w y -> b (c h) w y'
    h = h.transpose(0, 2, 3, 1)                              # back to channel-last

    s, t = fold_bn(params['bn_convhs3'], params['b_convhs3'])
    h = conv2d_cl(h, params['w_convhs3'], s, t, 1, relu=True)
    h = h + pos1
    # TODO(synk): ICTransformerBlock (transformer1) definition not provided; identity.
    h = conv2d_cl(h, params['w_down1'], ones(half), zeros(half), 1, relu=False)
    h = pixel_unshuffle_cl(h, 2)
    h = h + pos2
    # TODO(synk): ICTransformerBlock (transformer2) definition not provided; identity.
    x1o = h

    # ----------------- LiDAR branch (NHWC) -----------------
    l = x2.transpose(0, 2, 3, 1)                             # (B,P,P,1)
    s, t = fold_bn(params['bn_convlidar'], params['b_convlidar'])
    l = conv2d_cl(l, params['w_convlidar'], s, t, 1, relu=True)

    # four multi-scale 2D convs fused into ONE GEMM; bn2 + ReLU folded
    w_ms, b_ms = merge_multiscale_2d(params, 'conv2')
    s, t = fold_bn(params['bn2'], b_ms)
    l = conv2d_cl(l, w_ms, s, t, 4, relu=True)

    s, t = fold_bn(params['bn_convlidar2'], params['b_convlidar2'])
    l = conv2d_cl(l, params['w_convlidar2'], s, t, 1, relu=True)
    l = avgpool2d_cl(l)
    l = l + pos1
    # TODO(synk): transformer1 identity (see above).
    l = conv2d_cl(l, params['w_down2'], ones(half), zeros(half), 1, relu=False)
    l = pixel_unshuffle_cl(l, 2)
    l = l + pos2
    # TODO(synk): transformer2 identity (see above).
    x2o = l

    # ----------------- fusion + head -----------------
    x = x1o * params['w1'] + x2o * params['w2']              # (B,P/4,P/4,2*dim)
    s, t = fold_bn(params['bn_conv'], params['b_conv'])
    x = conv2d_cl(x, params['w_conv'], s, t, 1, relu=True)

    # TODO(synk): EDMoE definition not provided; deterministic 1x1 projection
    # dim*2 -> dim//2 so the flatten size 8*(patch//4)^2 matches.  Tiny GEMM
    # (M=B*(P/4)^2, N=dim//2) -> plain XLA dot beats a padded 128x128 Pallas tile.
    Bx, Hh, Ww, C = x.shape
    y = jnp.dot(x.reshape(-1, C), params['w_edmoe']) + params['b_edmoe']
    x = y.reshape(Bx, Hh, Ww, half)

    # flatten in PyTorch NCHW order; fold BN1d into the Linear head
    v = x.transpose(0, 3, 1, 2).reshape(Bx, -1)              # (B, 8*(P/4)^2)
    gO, bO, mO, vO = params['bn_out']
    sO = gO / jnp.sqrt(vO + BN_EPS)
    tO = bO - mO * sO
    W = params['w_out']                                      # (classes, F)
    Wf = (W * sO[None, :]).T
    bf = params['b_out'] + W @ tO
    # classifier (M=B=2, N=classes=6): far too small for a Pallas tile.
    out = jnp.dot(v, Wf) + bf
    return out


# ---------------------------------------------------------------------------
if __name__ == "__main__":
    # dim must be 16 (BatchNorm2d(16) is hard-coded in the PyTorch module and
    # convhs3 requires dim * hsi//2 == hsi*8).  Small patch / spectral depth.
    dim, patch, hsi, classes = 16, 8, 8, 6
    key = jax.random.PRNGKey(0)
    kp, k1, k2 = jax.random.split(key, 3)

    params = init_params(kp, dim, patch, hsi, classes)
    x1 = jax.random.normal(k1, (2, hsi, patch, patch), dtype=jnp.float32)   # HSI cube
    x2 = jax.random.normal(k2, (2, 1, patch, patch), dtype=jnp.float32)     # LiDAR

    fwd = jax.jit(functools.partial(idnet_forward, dim=dim, patch=patch, hsi=hsi))
    out = fwd(params, x1, x2)
    jax.block_until_ready(out)
    assert out.shape == (2, classes), out.shape
    print("KERNEL_OK")
</pallas_src>

<mosaic_0001>
module attributes {stable_mosaic.version = 11 : i64} {
  func.func @_gemm_bias_relu_kernel(%arg0: i32, %arg1: i32, %arg2: memref<512x27xbf16, #tpu.memory_space<vmem>>, %arg3: memref<27x128xbf16, #tpu.memory_space<vmem>>, %arg4: memref<1x128xf32, #tpu.memory_space<vmem>>, %arg5: memref<512x128xf32, #tpu.memory_space<vmem>>) attributes {dimension_semantics = [#tpu.dimension_semantics<parallel>, #tpu.dimension_semantics<parallel>], iteration_bounds = array<i64: 2, 1>, scalar_prefetch = 0 : i64, scratch_operands = 0 : i64, tpu.core_type = #tpu.core_type<tc>, window_params = [{transform_indices = @transform_0, window_bounds = array<i64: 512, 27>}, {transform_indices = @transform_1, window_bounds = array<i64: 27, 128>}, {transform_indices = @transform_2, window_bounds = array<i64: 1, 128>}, {transform_indices = @transform_3, window_bounds = array<i64: 512, 128>}]} {
    %c0 = arith.constant 0 : index
    %c0_0 = arith.constant 0 : index
    %0 = vector.load %arg2[%c0, %c0_0] : memref<512x27xbf16, #tpu.memory_space<vmem>>, vector<512x27xbf16>
    %c0_1 = arith.constant 0 : index
    %c0_2 = arith.constant 0 : index
    %1 = vector.load %arg3[%c0_1, %c0_2] : memref<27x128xbf16, #tpu.memory_space<vmem>>, vector<27x128xbf16>
    %cst = arith.constant dense<0.000000e+00> : vector<512x128xf32>
    %2 = tpu.matmul %0, %1, %cst {dimension_numbers = #tpu.dot_dimension_numbers<[1], [0], [0], [1], [0, 0, 1, 1], [], []>} : vector<512x27xbf16>, vector<27x128xbf16>, vector<512x128xf32> -> vector<512x128xf32>
    %c0_3 = arith.constant 0 : index
    %c0_4 = arith.constant 0 : index
    %3 = vector.load %arg4[%c0_3, %c0_4] : memref<1x128xf32, #tpu.memory_space<vmem>>, vector<1x128xf32>
    %4 = vector.broadcast %3 : vector<1x128xf32> to vector<512x128xf32>
    %5 = arith.addf %2, %4 : vector<512x128xf32>
    %cst_5 = arith.constant 0.000000e+00 : f32
    %6 = vector.broadcast %cst_5 : f32 to vector<512x128xf32>
    %7 = arith.maximumf %5, %6 : vector<512x128xf32>
    %c0_6 = arith.constant 0 : index
    %c0_7 = arith.constant 0 : index
    %8 = vector.load %arg5[%c0_6, %c0_7] : memref<512x128xf32, #tpu.memory_space<vmem>>, vector<512x128xf32>
    tpu.vector_store %arg5[%c0_6, %c0_7], %7 {strides = array<i32>} : memref<512x128xf32, #tpu.memory_space<vmem>>, vector<512x128xf32>,
    return
  }
  func.func @transform_0(%arg0: i32, %arg1: i32) -> (i32, i32) {
    %c0_i32 = arith.constant 0 : i32
    %c0_i32_0 = arith.constant 0 : i32
    return %arg0, %c0_i32 : i32, i32
  }
  func.func @transform_1(%arg0: i32, %arg1: i32) -> (i32, i32) {
    %c0_i32 = arith.constant 0 : i32
    %c0_i32_0 = arith.constant 0 : i32
    return %c0_i32, %arg1 : i32, i32
  }
  func.func @transform_2(%arg0: i32, %arg1: i32) -> (i32, i32) {
    %c0_i32 = arith.constant 0 : i32
    %c0_i32_0 = arith.constant 0 : i32
    return %c0_i32, %arg1 : i32, i32
  }
  func.func @transform_3(%arg0: i32, %arg1: i32) -> (i32, i32) {
    %c0_i32 = arith.constant 0 : i32
    return %arg0, %arg1 : i32, i32
  }
}

module attributes {stable_mosaic.version = 11 : i64} {
  func.func @_gemm_bias_relu_kernel(%arg0: i32, %arg1: i32, %arg2: memref<512x144xbf16, #tpu.memory_space<vmem>>, %arg3: memref<144x128xbf16, #tpu.memory_space<vmem>>, %arg4: memref<1x128xf32, #tpu.memory_space<vmem>>, %arg5: memref<512x128xf32, #tpu.memory_space<vmem>>) attributes {dimension_semantics = [#tpu.dimension_semantics<parallel>, #tpu.dimension_semantics<parallel>], iteration_bounds = array<i64: 2, 1>, scalar_prefetch = 0 : i64, scratch_operands = 0 : i64, tpu.core_type = #tpu.core_type<tc>, window_params = [{transform_indices = @transform_0, window_bounds = array<i64: 512, 144>}, {transform_indices = @transform_1, window_bounds = array<i64: 144, 128>}, {transform_indices = @transform_2, window_bounds = array<i64: 1, 128>}, {transform_indices = @transform_3, window_bounds = array<i64: 512, 128>}]} {
    %c0 = arith.constant 0 : index
    %c0_0 = arith.constant 0 : index
    %0 = vector.load %arg2[%c0, %c0_0] : memref<512x144xbf16, #tpu.memory_space<vmem>>, vector<512x144xbf16>
    %c0_1 = arith.constant 0 : index
    %c0_2 = arith.constant 0 : index
    %1 = vector.load %arg3[%c0_1, %c0_2] : memref<144x128xbf16, #tpu.memory_space<vmem>>, vector<144x128xbf16>
    %cst = arith.constant dense<0.000000e+00> : vector<512x128xf32>
    %2 = tpu.matmul %0, %1, %cst {dimension_numbers = #tpu.dot_dimension_numbers<[1], [0], [0], [1], [0, 0, 1, 1], [], []>} : vector<512x144xbf16>, vector<144x128xbf16>, vector<512x128xf32> -> vector<512x128xf32>
    %c0_3 = arith.constant 0 : index
    %c0_4 = arith.constant 0 : index
    %3 = vector.load %arg4[%c0_3, %c0_4] : memref<1x128xf32, #tpu.memory_space<vmem>>, vector<1x128xf32>
    %4 = vector.broadcast %3 : vector<1x128xf32> to vector<512x128xf32>
    %5 = arith.addf %2, %4 : vector<512x128xf32>
    %cst_5 = arith.constant 0.000000e+00 : f32
    %6 = vector.broadcast %cst_5 : f32 to vector<512x128xf32>
    %7 = arith.maximumf %5, %6 : vector<512x128xf32>
    %c0_6 = arith.constant 0 : index
    %c0_7 = arith.constant 0 : index
    %8 = vector.load %arg5[%c0_6, %c0_7] : memref<512x128xf32, #tpu.memory_space<vmem>>, vector<512x128xf32>
    tpu.vector_store %arg5[%c0_6, %c0_7], %7 {strides = array<i32>} : memref<512x128xf32, #tpu.memory_space<vmem>>, vector<512x128xf32>,
    return
  }
  func.func @transform_0(%arg0: i32, %arg1: i32) -> (i32, i32) {
    %c0_i32 = arith.constant 0 : i32
    %c0_i32_0 = arith.constant 0 : i32
    return %arg0, %c0_i32 : i32, i32
  }
  func.func @transform_1(%arg0: i32, %arg1: i32) -> (i32, i32) {
    %c0_i32 = arith.constant 0 : i32
    %c0_i32_0 = arith.constant 0 : i32
    return %c0_i32, %arg1 : i32, i32
  }
  func.func @transform_2(%arg0: i32, %arg1: i32) -> (i32, i32) {
    %c0_i32 = arith.constant 0 : i32
    %c0_i32_0 = arith.constant 0 : i32
    return %c0_i32, %arg1 : i32, i32
  }
  func.func @transform_3(%arg0: i32, %arg1: i32) -> (i32, i32) {
    %c0_i32 = arith.constant 0 : i32
    return %arg0, %arg1 : i32, i32
  }
}

module attributes {stable_mosaic.version = 11 : i64} {
  func.func @_gemm_bias_relu_kernel(%arg0: i32, %arg1: i32, %arg2: memref<512x432xbf16, #tpu.memory_space<vmem>>, %arg3: memref<432x128xbf16, #tpu.memory_space<vmem>>, %arg4: memref<1x128xf32, #tpu.memory_space<vmem>>, %arg5: memref<512x128xf32, #tpu.memory_space<vmem>>) attributes {dimension_semantics = [#tpu.dimension_semantics<parallel>, #tpu.dimension_semantics<parallel>], iteration_bounds = array<i64: 2, 1>, scalar_prefetch = 0 : i64, scratch_operands = 0 : i64, tpu.core_type = #tpu.core_type<tc>, window_params = [{transform_indices = @transform_0, window_bounds = array<i64: 512, 432>}, {transform_indices = @transform_1, window_bounds = array<i64: 432, 128>}, {transform_indices = @transform_2, window_bounds = array<i64: 1, 128>}, {transform_indices = @transform_3, window_bounds = array<i64: 512, 128>}]} {
    %c0 = arith.constant 0 : index
    %c0_0 = arith.constant 0 : index
    %0 = vector.load %arg2[%c0, %c0_0] : memref<512x432xbf16, #tpu.memory_space<vmem>>, vector<512x432xbf16>
    %c0_1 = arith.constant 0 : index
    %c0_2 = arith.constant 0 : index
    %1 = vector.load %arg3[%c0_1, %c0_2] : memref<432x128xbf16, #tpu.memory_space<vmem>>, vector<432x128xbf16>
    %cst = arith.constant dense<0.000000e+00> : vector<512x128xf32>
    %2 = tpu.matmul %0, %1, %cst {dimension_numbers = #tpu.dot_dimension_numbers<[1], [0], [0], [1], [0, 0, 1, 1], [], []>} : vector<512x432xbf16>, vector<432x128xbf16>, vector<512x128xf32> -> vector<512x128xf32>
    %c0_3 = arith.constant 0 : index
    %c0_4 = arith.constant 0 : index
    %3 = vector.load %arg4[%c0_3, %c0_4] : memref<1x128xf32, #tpu.memory_space<vmem>>, vector<1x128xf32>
    %4 = vector.broadcast %3 : vector<1x128xf32> to vector<512x128xf32>
    %5 = arith.addf %2, %4 : vector<512x128xf32>
    %cst_5 = arith.constant 0.000000e+00 : f32
    %6 = vector.broadcast %cst_5 : f32 to vector<512x128xf32>
    %7 = arith.maximumf %5, %6 : vector<512x128xf32>
    %c0_6 = arith.constant 0 : index
    %c0_7 = arith.constant 0 : index
    %8 = vector.load %arg5[%c0_6, %c0_7] : memref<512x128xf32, #tpu.memory_space<vmem>>, vector<512x128xf32>
    tpu.vector_store %arg5[%c0_6, %c0_7], %7 {strides = array<i32>} : memref<512x128xf32, #tpu.memory_space<vmem>>, vector<512x128xf32>,
    return
  }
  func.func @transform_0(%arg0: i32, %arg1: i32) -> (i32, i32) {
    %c0_i32 = arith.constant 0 : i32
    %c0_i32_0 = arith.constant 0 : i32
    return %arg0, %c0_i32 : i32, i32
  }
  func.func @transform_1(%arg0: i32, %arg1: i32) -> (i32, i32) {
    %c0_i32 = arith.constant 0 : i32
    %c0_i32_0 = arith.constant 0 : i32
    return %c0_i32, %arg1 : i32, i32
  }
  func.func @transform_2(%arg0: i32, %arg1: i32) -> (i32, i32) {
    %c0_i32 = arith.constant 0 : i32
    %c0_i32_0 = arith.constant 0 : i32
    return %c0_i32, %arg1 : i32, i32
  }
  func.func @transform_3(%arg0: i32, %arg1: i32) -> (i32, i32) {
    %c0_i32 = arith.constant 0 : i32
    return %arg0, %arg1 : i32, i32
  }
}

module attributes {stable_mosaic.version = 11 : i64} {
  func.func @_gemm_bias_relu_kernel(%arg0: i32, %arg1: i32, %arg2: memref<32x576xbf16, #tpu.memory_space<vmem>>, %arg3: memref<576x128xbf16, #tpu.memory_space<vmem>>, %arg4: memref<1x128xf32, #tpu.memory_space<vmem>>, %arg5: memref<32x128xf32, #tpu.memory_space<vmem>>) attributes {dimension_semantics = [#tpu.dimension_semantics<parallel>, #tpu.dimension_semantics<parallel>], iteration_bounds = array<i64: 1, 1>, scalar_prefetch = 0 : i64, scratch_operands = 0 : i64, tpu.core_type = #tpu.core_type<tc>, window_params = [{transform_indices = @transform_0, window_bounds = array<i64: 32, 576>}, {transform_indices = @transform_1, window_bounds = array<i64: 576, 128>}, {transform_indices = @transform_2, window_bounds = array<i64: 1, 128>}, {transform_indices = @transform_3, window_bounds = array<i64: 32, 128>}]} {
    %c0 = arith.constant 0 : index
    %c0_0 = arith.constant 0 : index
    %0 = vector.load %arg2[%c0, %c0_0] : memref<32x576xbf16, #tpu.memory_space<vmem>>, vector<32x576xbf16>
    %c0_1 = arith.constant 0 : index
    %c0_2 = arith.constant 0 : index
    %1 = vector.load %arg3[%c0_1, %c0_2] : memref<576x128xbf16, #tpu.memory_space<vmem>>, vector<576x128xbf16>
    %cst = arith.constant dense<0.000000e+00> : vector<32x128xf32>
    %2 = tpu.matmul %0, %1, %cst {dimension_numbers = #tpu.dot_dimension_numbers<[1], [0], [0], [1], [0, 0, 1, 1], [], []>} : vector<32x576xbf16>, vector<576x128xbf16>, vector<32x128xf32> -> vector<32x128xf32>
    %c0_3 = arith.constant 0 : index
    %c0_4 = arith.constant 0 : index
    %3 = vector.load %arg4[%c0_3, %c0_4] : memref<1x128xf32, #tpu.memory_space<vmem>>, vector<1x128xf32>
    %4 = vector.broadcast %3 : vector<1x128xf32> to vector<32x128xf32>
    %5 = arith.addf %2, %4 : vector<32x128xf32>
    %cst_5 = arith.constant 0.000000e+00 : f32
    %6 = vector.broadcast %cst_5 : f32 to vector<32x128xf32>
    %7 = arith.maximumf %5, %6 : vector<32x128xf32>
    %c0_6 = arith.constant 0 : index
    %c0_7 = arith.constant 0 : index
    %8 = vector.load %arg5[%c0_6, %c0_7] : memref<32x128xf32, #tpu.memory_space<vmem>>, vector<32x128xf32>
    tpu.vector_store %arg5[%c0_6, %c0_7], %7 {strides = array<i32>} : memref<32x128xf32, #tpu.memory_space<vmem>>, vector<32x128xf32>,
    return
  }
  func.func @transform_0(%arg0: i32, %arg1: i32) -> (i32, i32) {
    %c0_i32 = arith.constant 0 : i32
    %c0_i32_0 = arith.constant 0 : i32
    return %arg0, %c0_i32 : i32, i32
  }
  func.func @transform_1(%arg0: i32, %arg1: i32) -> (i32, i32) {
    %c0_i32 = arith.constant 0 : i32
    %c0_i32_0 = arith.constant 0 : i32
    return %c0_i32, %arg1 : i32, i32
  }
  func.func @transform_2(%arg0: i32, %arg1: i32) -> (i32, i32) {
    %c0_i32 = arith.constant 0 : i32
    %c0_i32_0 = arith.constant 0 : i32
    return %c0_i32, %arg1 : i32, i32
  }
  func.func @transform_3(%arg0: i32, %arg1: i32) -> (i32, i32) {
    %c0_i32 = arith.constant 0 : i32
    return %arg0, %arg1 : i32, i32
  }
}

module attributes {stable_mosaic.version = 11 : i64} {
  func.func @_gemm_bias_relu_kernel(%arg0: i32, %arg1: i32, %arg2: memref<128x9xbf16, #tpu.memory_space<vmem>>, %arg3: memref<9x128xbf16, #tpu.memory_space<vmem>>, %arg4: memref<1x128xf32, #tpu.memory_space<vmem>>, %arg5: memref<128x128xf32, #tpu.memory_space<vmem>>) attributes {dimension_semantics = [#tpu.dimension_semantics<parallel>, #tpu.dimension_semantics<parallel>], iteration_bounds = array<i64: 1, 1>, scalar_prefetch = 0 : i64, scratch_operands = 0 : i64, tpu.core_type = #tpu.core_type<tc>, window_params = [{transform_indices = @transform_0, window_bounds = array<i64: 128, 9>}, {transform_indices = @transform_1, window_bounds = array<i64: 9, 128>}, {transform_indices = @transform_2, window_bounds = array<i64: 1, 128>}, {transform_indices = @transform_3, window_bounds = array<i64: 128, 128>}]} {
    %c0 = arith.constant 0 : index
    %c0_0 = arith.constant 0 : index
    %0 = vector.load %arg2[%c0, %c0_0] : memref<128x9xbf16, #tpu.memory_space<vmem>>, vector<128x9xbf16>
    %c0_1 = arith.constant 0 : index
    %c0_2 = arith.constant 0 : index
    %1 = vector.load %arg3[%c0_1, %c0_2] : memref<9x128xbf16, #tpu.memory_space<vmem>>, vector<9x128xbf16>
    %cst = arith.constant dense<0.000000e+00> : vector<128x128xf32>
    %2 = tpu.matmul %0, %1, %cst {dimension_numbers = #tpu.dot_dimension_numbers<[1], [0], [0], [1], [0, 0, 1, 1], [], []>} : vector<128x9xbf16>, vector<9x128xbf16>, vector<128x128xf32> -> vector<128x128xf32>
    %c0_3 = arith.constant 0 : index
    %c0_4 = arith.constant 0 : index
    %3 = vector.load %arg4[%c0_3, %c0_4] : memref<1x128xf32, #tpu.memory_space<vmem>>, vector<1x128xf32>
    %4 = vector.broadcast %3 : vector<1x128xf32> to vector<128x128xf32>
    %5 = arith.addf %2, %4 : vector<128x128xf32>
    %cst_5 = arith.constant 0.000000e+00 : f32
    %6 = vector.broadcast %cst_5 : f32 to vector<128x128xf32>
    %7 = arith.maximumf %5, %6 : vector<128x128xf32>
    %c0_6 = arith.constant 0 : index
    %c0_7 = arith.constant 0 : index
    %8 = vector.load %arg5[%c0_6, %c0_7] : memref<128x128xf32, #tpu.memory_space<vmem>>, vector<128x128xf32>
    tpu.vector_store %arg5[%c0_6, %c0_7], %7 {strides = array<i32>} : memref<128x128xf32, #tpu.memory_space<vmem>>, vector<128x128xf32>,
    return
  }
  func.func @transform_0(%arg0: i32, %arg1: i32) -> (i32, i32) {
    %c0_i32 = arith.constant 0 : i32
    %c0_i32_0 = arith.constant 0 : i32
    return %arg0, %c0_i32 : i32, i32
  }
  func.func @transform_1(%arg0: i32, %arg1: i32) -> (i32, i32) {
    %c0_i32 = arith.constant 0 : i32
    %c0_i32_0 = arith.constant 0 : i32
    return %c0_i32, %arg1 : i32, i32
  }
  func.func @transform_2(%arg0: i32, %arg1: i32) -> (i32, i32) {
    %c0_i32 = arith.constant 0 : i32
    %c0_i32_0 = arith.constant 0 : i32
    return %c0_i32, %arg1 : i32, i32
  }
  func.func @transform_3(%arg0: i32, %arg1: i32) -> (i32, i32) {
    %c0_i32 = arith.constant 0 : i32
    return %arg0, %arg1 : i32, i32
  }
}

module attributes {stable_mosaic.version = 11 : i64} {
  func.func @_gemm_bias_relu_kernel(%arg0: i32, %arg1: i32, %arg2: memref<128x1296xbf16, #tpu.memory_space<vmem>>, %arg3: memref<1296x128xbf16, #tpu.memory_space<vmem>>, %arg4: memref<1x128xf32, #tpu.memory_space<vmem>>, %arg5: memref<128x128xf32, #tpu.memory_space<vmem>>) attributes {dimension_semantics = [#tpu.dimension_semantics<parallel>, #tpu.dimension_semantics<parallel>], iteration_bounds = array<i64: 1, 1>, scalar_prefetch = 0 : i64, scratch_operands = 0 : i64, tpu.core_type = #tpu.core_type<tc>, window_params = [{transform_indices = @transform_0, window_bounds = array<i64: 128, 1296>}, {transform_indices = @transform_1, window_bounds = array<i64: 1296, 128>}, {transform_indices = @transform_2, window_bounds = array<i64: 1, 128>}, {transform_indices = @transform_3, window_bounds = array<i64: 128, 128>}]} {
    %c0 = arith.constant 0 : index
    %c0_0 = arith.constant 0 : index
    %0 = vector.load %arg2[%c0, %c0_0] : memref<128x1296xbf16, #tpu.memory_space<vmem>>, vector<128x1296xbf16>
    %c0_1 = arith.constant 0 : index
    %c0_2 = arith.constant 0 : index
    %1 = vector.load %arg3[%c0_1, %c0_2] : memref<1296x128xbf16, #tpu.memory_space<vmem>>, vector<1296x128xbf16>
    %cst = arith.constant dense<0.000000e+00> : vector<128x128xf32>
    %2 = tpu.matmul %0, %1, %cst {dimension_numbers = #tpu.dot_dimension_numbers<[1], [0], [0], [1], [0, 0, 1, 1], [], []>} : vector<128x1296xbf16>, vector<1296x128xbf16>, vector<128x128xf32> -> vector<128x128xf32>
    %c0_3 = arith.constant 0 : index
    %c0_4 = arith.constant 0 : index
    %3 = vector.load %arg4[%c0_3, %c0_4] : memref<1x128xf32, #tpu.memory_space<vmem>>, vector<1x128xf32>
    %4 = vector.broadcast %3 : vector<1x128xf32> to vector<128x128xf32>
    %5 = arith.addf %2, %4 : vector<128x128xf32>
    %cst_5 = arith.constant 0.000000e+00 : f32
    %6 = vector.broadcast %cst_5 : f32 to vector<128x128xf32>
    %7 = arith.maximumf %5, %6 : vector<128x128xf32>
    %c0_6 = arith.constant 0 : index
    %c0_7 = arith.constant 0 : index
    %8 = vector.load %arg5[%c0_6, %c0_7] : memref<128x128xf32, #tpu.memory_space<vmem>>, vector<128x128xf32>
    tpu.vector_store %arg5[%c0_6, %c0_7], %7 {strides = array<i32>} : memref<128x128xf32, #tpu.memory_space<vmem>>, vector<128x128xf32>,
    return
  }
  func.func @transform_0(%arg0: i32, %arg1: i32) -> (i32, i32) {
    %c0_i32 = arith.constant 0 : i32
    %c0_i32_0 = arith.constant 0 : i32
    return %arg0, %c0_i32 : i32, i32
  }
  func.func @transform_1(%arg0: i32, %arg1: i32) -> (i32, i32) {
    %c0_i32 = arith.constant 0 : i32
    %c0_i32_0 = arith.constant 0 : i32
    return %c0_i32, %arg1 : i32, i32
  }
  func.func @transform_2(%arg0: i32, %arg1: i32) -> (i32, i32) {
    %c0_i32 = arith.constant 0 : i32
    %c0_i32_0 = arith.constant 0 : i32
    return %c0_i32, %arg1 : i32, i32
  }
  func.func @transform_3(%arg0: i32, %arg1: i32) -> (i32, i32) {
    %c0_i32 = arith.constant 0 : i32
    return %arg0, %arg1 : i32, i32
  }
}

module attributes {stable_mosaic.version = 11 : i64} {
  func.func @_gemm_bias_relu_kernel(%arg0: i32, %arg1: i32, %arg2: memref<128x144xbf16, #tpu.memory_space<vmem>>, %arg3: memref<144x128xbf16, #tpu.memory_space<vmem>>, %arg4: memref<1x128xf32, #tpu.memory_space<vmem>>, %arg5: memref<128x128xf32, #tpu.memory_space<vmem>>) attributes {dimension_semantics = [#tpu.dimension_semantics<parallel>, #tpu.dimension_semantics<parallel>], iteration_bounds = array<i64: 1, 1>, scalar_prefetch = 0 : i64, scratch_operands = 0 : i64, tpu.core_type = #tpu.core_type<tc>, window_params = [{transform_indices = @transform_0, window_bounds = array<i64: 128, 144>}, {transform_indices = @transform_1, window_bounds = array<i64: 144, 128>}, {transform_indices = @transform_2, window_bounds = array<i64: 1, 128>}, {transform_indices = @transform_3, window_bounds = array<i64: 128, 128>}]} {
    %c0 = arith.constant 0 : index
    %c0_0 = arith.constant 0 : index
    %0 = vector.load %arg2[%c0, %c0_0] : memref<128x144xbf16, #tpu.memory_space<vmem>>, vector<128x144xbf16>
    %c0_1 = arith.constant 0 : index
    %c0_2 = arith.constant 0 : index
    %1 = vector.load %arg3[%c0_1, %c0_2] : memref<144x128xbf16, #tpu.memory_space<vmem>>, vector<144x128xbf16>
    %cst = arith.constant dense<0.000000e+00> : vector<128x128xf32>
    %2 = tpu.matmul %0, %1, %cst {dimension_numbers = #tpu.dot_dimension_numbers<[1], [0], [0], [1], [0, 0, 1, 1], [], []>} : vector<128x144xbf16>, vector<144x128xbf16>, vector<128x128xf32> -> vector<128x128xf32>
    %c0_3 = arith.constant 0 : index
    %c0_4 = arith.constant 0 : index
    %3 = vector.load %arg4[%c0_3, %c0_4] : memref<1x128xf32, #tpu.memory_space<vmem>>, vector<1x128xf32>
    %4 = vector.broadcast %3 : vector<1x128xf32> to vector<128x128xf32>
    %5 = arith.addf %2, %4 : vector<128x128xf32>
    %cst_5 = arith.constant 0.000000e+00 : f32
    %6 = vector.broadcast %cst_5 : f32 to vector<128x128xf32>
    %7 = arith.maximumf %5, %6 : vector<128x128xf32>
    %c0_6 = arith.constant 0 : index
    %c0_7 = arith.constant 0 : index
    %8 = vector.load %arg5[%c0_6, %c0_7] : memref<128x128xf32, #tpu.memory_space<vmem>>, vector<128x128xf32>
    tpu.vector_store %arg5[%c0_6, %c0_7], %7 {strides = array<i32>} : memref<128x128xf32, #tpu.memory_space<vmem>>, vector<128x128xf32>,
    return
  }
  func.func @transform_0(%arg0: i32, %arg1: i32) -> (i32, i32) {
    %c0_i32 = arith.constant 0 : i32
    %c0_i32_0 = arith.constant 0 : i32
    return %arg0, %c0_i32 : i32, i32
  }
  func.func @transform_1(%arg0: i32, %arg1: i32) -> (i32, i32) {
    %c0_i32 = arith.constant 0 : i32
    %c0_i32_0 = arith.constant 0 : i32
    return %c0_i32, %arg1 : i32, i32
  }
  func.func @transform_2(%arg0: i32, %arg1: i32) -> (i32, i32) {
    %c0_i32 = arith.constant 0 : i32
    %c0_i32_0 = arith.constant 0 : i32
    return %c0_i32, %arg1 : i32, i32
  }
  func.func @transform_3(%arg0: i32, %arg1: i32) -> (i32, i32) {
    %c0_i32 = arith.constant 0 : i32
    return %arg0, %arg1 : i32, i32
  }
}

module attributes {stable_mosaic.version = 11 : i64} {
  func.func @_gemm_bias_relu_kernel(%arg0: i32, %arg1: i32, %arg2: memref<32x144xbf16, #tpu.memory_space<vmem>>, %arg3: memref<144x128xbf16, #tpu.memory_space<vmem>>, %arg4: memref<1x128xf32, #tpu.memory_space<vmem>>, %arg5: memref<32x128xf32, #tpu.memory_space<vmem>>) attributes {dimension_semantics = [#tpu.dimension_semantics<parallel>, #tpu.dimension_semantics<parallel>], iteration_bounds = array<i64: 1, 1>, scalar_prefetch = 0 : i64, scratch_operands = 0 : i64, tpu.core_type = #tpu.core_type<tc>, window_params = [{transform_indices = @transform_0, window_bounds = array<i64: 32, 144>}, {transform_indices = @transform_1, window_bounds = array<i64: 144, 128>}, {transform_indices = @transform_2, window_bounds = array<i64: 1, 128>}, {transform_indices = @transform_3, window_bounds = array<i64: 32, 128>}]} {
    %c0 = arith.constant 0 : index
    %c0_0 = arith.constant 0 : index
    %0 = vector.load %arg2[%c0, %c0_0] : memref<32x144xbf16, #tpu.memory_space<vmem>>, vector<32x144xbf16>
    %c0_1 = arith.constant 0 : index
    %c0_2 = arith.constant 0 : index
    %1 = vector.load %arg3[%c0_1, %c0_2] : memref<144x128xbf16, #tpu.memory_space<vmem>>, vector<144x128xbf16>
    %cst = arith.constant dense<0.000000e+00> : vector<32x128xf32>
    %2 = tpu.matmul %0, %1, %cst {dimension_numbers = #tpu.dot_dimension_numbers<[1], [0], [0], [1], [0, 0, 1, 1], [], []>} : vector<32x144xbf16>, vector<144x128xbf16>, vector<32x128xf32> -> vector<32x128xf32>
    %c0_3 = arith.constant 0 : index
    %c0_4 = arith.constant 0 : index
    %3 = vector.load %arg4[%c0_3, %c0_4] : memref<1x128xf32, #tpu.memory_space<vmem>>, vector<1x128xf32>
    %4 = vector.broadcast %3 : vector<1x128xf32> to vector<32x128xf32>
    %5 = arith.addf %2, %4 : vector<32x128xf32>
    %c0_5 = arith.constant 0 : index
    %c0_6 = arith.constant 0 : index
    %6 = vector.load %arg5[%c0_5, %c0_6] : memref<32x128xf32, #tpu.memory_space<vmem>>, vector<32x128xf32>
    tpu.vector_store %arg5[%c0_5, %c0_6], %5 {strides = array<i32>} : memref<32x128xf32, #tpu.memory_space<vmem>>, vector<32x128xf32>,
    return
  }
  func.func @transform_0(%arg0: i32, %arg1: i32) -> (i32, i32) {
    %c0_i32 = arith.constant 0 : i32
    %c0_i32_0 = arith.constant 0 : i32
    return %arg0, %c0_i32 : i32, i32
  }
  func.func @transform_1(%arg0: i32, %arg1: i32) -> (i32, i32) {
    %c0_i32 = arith.constant 0 : i32
    %c0_i32_0 = arith.constant 0 : i32
    return %c0_i32, %arg1 : i32, i32
  }
  func.func @transform_2(%arg0: i32, %arg1: i32) -> (i32, i32) {
    %c0_i32 = arith.constant 0 : i32
    %c0_i32_0 = arith.constant 0 : i32
    return %c0_i32, %arg1 : i32, i32
  }
  func.func @transform_3(%arg0: i32, %arg1: i32) -> (i32, i32) {
    %c0_i32 = arith.constant 0 : i32
    return %arg0, %arg1 : i32, i32
  }
}

module attributes {stable_mosaic.version = 11 : i64} {
  func.func @_gemm_bias_relu_kernel(%arg0: i32, %arg1: i32, %arg2: memref<8x288xbf16, #tpu.memory_space<vmem>>, %arg3: memref<288x128xbf16, #tpu.memory_space<vmem>>, %arg4: memref<1x128xf32, #tpu.memory_space<vmem>>, %arg5: memref<8x128xf32, #tpu.memory_space<vmem>>) attributes {dimension_semantics = [#tpu.dimension_semantics<parallel>, #tpu.dimension_semantics<parallel>], iteration_bounds = array<i64: 1, 1>, scalar_prefetch = 0 : i64, scratch_operands = 0 : i64, tpu.core_type = #tpu.core_type<tc>, window_params = [{transform_indices = @transform_0, window_bounds = array<i64: 8, 288>}, {transform_indices = @transform_1, window_bounds = array<i64: 288, 128>}, {transform_indices = @transform_2, window_bounds = array<i64: 1, 128>}, {transform_indices = @transform_3, window_bounds = array<i64: 8, 128>}]} {
    %c0 = arith.constant 0 : index
    %c0_0 = arith.constant 0 : index
    %0 = vector.load %arg2[%c0, %c0_0] : memref<8x288xbf16, #tpu.memory_space<vmem>>, vector<8x288xbf16>
    %c0_1 = arith.constant 0 : index
    %c0_2 = arith.constant 0 : index
    %1 = vector.load %arg3[%c0_1, %c0_2] : memref<288x128xbf16, #tpu.memory_space<vmem>>, vector<288x128xbf16>
    %cst = arith.constant dense<0.000000e+00> : vector<8x128xf32>
    %2 = tpu.matmul %0, %1, %cst {dimension_numbers = #tpu.dot_dimension_numbers<[1], [0], [0], [1], [0, 0, 1, 1], [], []>} : vector<8x288xbf16>, vector<288x128xbf16>, vector<8x128xf32> -> vector<8x128xf32>
    %c0_3 = arith.constant 0 : index
    %c0_4 = arith.constant 0 : index
    %3 = vector.load %arg4[%c0_3, %c0_4] : memref<1x128xf32, #tpu.memory_space<vmem>>, vector<1x128xf32>
    %4 = vector.broadcast %3 : vector<1x128xf32> to vector<8x128xf32>
    %5 = arith.addf %2, %4 : vector<8x128xf32>
    %cst_5 = arith.constant 0.000000e+00 : f32
    %6 = vector.broadcast %cst_5 : f32 to vector<8x128xf32>
    %7 = arith.maximumf %5, %6 : vector<8x128xf32>
    %c0_6 = arith.constant 0 : index
    %c0_7 = arith.constant 0 : index
    %8 = vector.load %arg5[%c0_6, %c0_7] : memref<8x128xf32, #tpu.memory_space<vmem>>, vector<8x128xf32>
    tpu.vector_store %arg5[%c0_6, %c0_7], %7 {strides = array<i32>} : memref<8x128xf32, #tpu.memory_space<vmem>>, vector<8x128xf32>,
    return
  }
  func.func @transform_0(%arg0: i32, %arg1: i32) -> (i32, i32) {
    %c0_i32 = arith.constant 0 : i32
    %c0_i32_0 = arith.constant 0 : i32
    return %arg0, %c0_i32 : i32, i32
  }
  func.func @transform_1(%arg0: i32, %arg1: i32) -> (i32, i32) {
    %c0_i32 = arith.constant 0 : i32
    %c0_i32_0 = arith.constant 0 : i32
    return %c0_i32, %arg1 : i32, i32
  }
  func.func @transform_2(%arg0: i32, %arg1: i32) -> (i32, i32) {
    %c0_i32 = arith.constant 0 : i32
    %c0_i32_0 = arith.constant 0 : i32
    return %c0_i32, %arg1 : i32, i32
  }
  func.func @transform_3(%arg0: i32, %arg1: i32) -> (i32, i32) {
    %c0_i32 = arith.constant 0 : i32
    return %arg0, %arg1 : i32, i32
  }
}

</mosaic_0001>

<bundles_post_ra>
// kernel: idnet_forward.10
= control target key start
LH: loop header
LB: loop body
LE: loop exit
PB: predicated region body
PF: predicated region fallthrough
CT: control target
= control target key end

     0   :  { %s1385_s12 = smov 0   ;;  %s1387_s13 = smov 0   ;;  %s1629_s0 = inlined_call_operand.vmem [shape: bf16[1024,27], index: 0, kind: input, shape index: {}]   ;;  %s1630_s1 = inlined_call_operand.vmem [shape: bf16[27,128], index: 1, kind: input, shape index: {}]   ;;  %s1631_s2 = inlined_call_operand.vmem [shape: f32[1,128], index: 2, kind: input, shape index: {}]   ;;  %s1632_s3 = inlined_call_operand.vmem [shape: f32[1024,128], index: 3, kind: output, shape index: {}]  }
   0x1   :  { %s1389_s14 = smov 0  }
   0x2 LB: > { %s25_s15 = sadd.s32 1, %s1358_s13  ;;  %p1101_p0 = scmp.ge.s32.totalorder %s1362_s14, 1  ;;  %s1362_s14 = sphi %s1389_s14, %s13_s14   ;;  %s1358_s13 = sphi %s1387_s13, %s1634_s13   ;;  %s1354_s12 = sphi %s1385_s12, %s1633_s12  }
   0x3   : > { %p27_p1 = scmp.ge.s32.totalorder %s25_s15, 2  ;;  %p169_p2 = scmp.lt.s32.totalorder %s1362_s14, 3 }
   0x5   : > { %s1636_s15 = smov (%p27_p1, %s25_s15), 0  ;;  %p170_p3 = pnand %p1101_p0, %p169_p2 }
   0x6   : > { %s1102_s18 = sshll.u32 (!%p170_p3), %s1354_s12, 6 }
   0x7   : > { %173 = sbr.rel (%p170_p3) target bundleno = 285 (0x11d), region = 32  ;;  %p204_p4 = scmp.lt.s32.totalorder (!%p170_p3), %s1102_s18, 127 }
   0xc   : > { %v1306_v0 = vld [vmem:[%s1630_s1 + $0x8] sm:$0x3f]   ;;  %vm569_vm0 = vcmask 1044480   ;;  %vm570_vm1 = vcmask 1045504   ;;  %v1364_v1 = vmov 65535   ;;  %v1307_v5 = vld [vmem:[%s1630_s1] sm:$0xff]  }
   0xd   : > { %v571_v2 = vsel %vm569_vm0, 4294967295, %v1364_v1  ;;  %s1638_s18 = smov (!%p204_p4, %s1102_s18), 127  ;;  %vm472_vm2 = vcmask 220160   ;;  %v1484_v38 = vld [vmem:[%s1631_s2] ss:$0 sm:$0xff] }
   0xe   : > { %v572_v3 = vsel %vm570_vm1, %v571_v2, 0  ;;  %s1103_s21 = sshll.u32 %s1638_s18, 2  ;;  %s1105_s27 = sshll.u32 %s1638_s18, 3 }
   0xf   : > { %v574_v4 = vand.u32 %v1306_v0, %v572_v3  ;;  %s1415_s24 = scalar_lea.vmem %s1629_s0, %s1103_s21  ;;  %s1492_s30 = scalar_lea.vmem %s1632_s3, %s1105_s27 }
  0x10   : > { %v1308_v6 = vld [vmem:[%s1415_s24] sm:$0xff]   ;;  %v1310_v8 = vld [vmem:[%s1415_s24 + $0x8] sm:$0xff]   ;;  %v1312_v10 = vld [vmem:[%s1415_s24 + $0x10] sm:$0xff]  }
  0x11   : > { %1209 = vmatprep.subr.bf16.mxu0 %v574_v4  ;;  %1277 = vmatprep.subr.bf16.mxu1 %v574_v4  ;;  %v1309_v7 = vld [vmem:[%s1415_s24 + $0x80] sm:$0xff]   ;;  %v1311_v9 = vld [vmem:[%s1415_s24 + $0x88] sm:$0xff]   ;;  %v1313_v11 = vld [vmem:[%s1415_s24 + $0x90] sm:$0xff]  }
  0x12   : > { %1210 = vmatpush3.bf16.msra.mxu0 %v574_v4  ;;  %1279 = vmatpush3.bf16.msra.mxu1 %v574_v4  ;;  %v1314_v12 = vld [vmem:[%s1415_s24 + $0x18] sm:$0xff]   ;;  %v1316_v14 = vld [vmem:[%s1415_s24 + $0x20] sm:$0xff]   ;;  %v1318_v16 = vld [vmem:[%s1415_s24 + $0x28] sm:$0xff]  }
  0x13   : > { %1211 = vmatprep.subr.bf16.mxu0 %v1307_v5  ;;  %1278 = vmatprep.subr.bf16.mxu1 %v1307_v5  ;;  %v1315_v13 = vld [vmem:[%s1415_s24 + $0x98] sm:$0xff]   ;;  %v1317_v15 = vld [vmem:[%s1415_s24 + $0xa0] sm:$0xff]   ;;  %v1319_v17 = vld [vmem:[%s1415_s24 + $0xa8] sm:$0xff]  }
  0x14   : > { %1213 = vmatprep.mubr.msk.bf16.mxu0 %vm472_vm2, %v1308_v6  ;;  %1245 = vmatprep.mubr.msk.bf16.mxu1 %vm472_vm2, %v1309_v7  ;;  %v1320_v18 = vld [vmem:[%s1415_s24 + $0x30] sm:$0xff]   ;;  %v1322_v20 = vld [vmem:[%s1415_s24 + $0x38] sm:$0xff]   ;;  %v1324_v22 = vld [vmem:[%s1415_s24 + $0x40] sm:$0xff]  }
  0x15   : > { %v1321_v19 = vld [vmem:[%s1415_s24 + $0xb0] sm:$0xff]   ;;  %v1323_v21 = vld [vmem:[%s1415_s24 + $0xb8] sm:$0xff]   ;;  %v1325_v23 = vld [vmem:[%s1415_s24 + $0xc0] sm:$0xff]  }
  0x16   : > { %1212 = vmatpush3.bf16.msra.mxu0 %v1307_v5  ;;  %1280 = vmatpush3.bf16.msra.mxu1 %v1307_v5  ;;  %v1326_v24 = vld [vmem:[%s1415_s24 + $0x48] sm:$0xff]   ;;  %v1328_v26 = vld [vmem:[%s1415_s24 + $0x50] sm:$0xff]   ;;  %v1330_v28 = vld [vmem:[%s1415_s24 + $0x58] sm:$0xff]  }
  0x17   : > { %v1327_v25 = vld [vmem:[%s1415_s24 + $0xc8] sm:$0xff]   ;;  %v1329_v27 = vld [vmem:[%s1415_s24 + $0xd0] sm:$0xff]   ;;  %v1331_v29 = vld [vmem:[%s1415_s24 + $0xd8] sm:$0xff]  }
  0x18   : > { %v1332_v30 = vld [vmem:[%s1415_s24 + $0x60] sm:$0xff]   ;;  %v1334_v32 = vld [vmem:[%s1415_s24 + $0x68] sm:$0xff]   ;;  %v1336_v34 = vld [vmem:[%s1415_s24 + $0x70] sm:$0xff]  }
  0x19   : > { %1214 = vmatmul.mubr.msk.bf16.vlgmr.msra.gmra.mxu0 %vm472_vm2, %v1310_v8  ;;  %1246 = vmatmul.mubr.msk.bf16.vlgmr.msra.gmra.mxu1 %vm472_vm2, %v1311_v9  ;;  %v1333_v31 = vld [vmem:[%s1415_s24 + $0xe0] sm:$0xff]   ;;  %v1335_v33 = vld [vmem:[%s1415_s24 + $0xe8] sm:$0xff]   ;;  %v1337_v35 = vld [vmem:[%s1415_s24 + $0xf0] sm:$0xff]  }
  0x1a   : > { %1217 = vmatprep.mubr.msk.bf16.mxu0 %vm472_vm2, %v1312_v10  ;;  %1249 = vmatprep.mubr.msk.bf16.mxu1 %vm472_vm2, %v1313_v11  ;;  %v1338_v36 = vld [vmem:[%s1415_s24 + $0x78] sm:$0xff]  }
  0x1b   : > { %v1339_v37 = vld [vmem:[%s1415_s24 + $0xf8] sm:$0xff]  }
  0x21   : > { %1218 = vmatmul.mubr.msk.bf16.gmra.mxu0 %vm472_vm2, %v1314_v12  ;;  %1250 = vmatmul.mubr.msk.bf16.gmra.mxu1 %vm472_vm2, %v1315_v13 }
  0x22   : > { %1221 = vmatprep.mubr.msk.bf16.mxu0 %vm472_vm2, %v1316_v14  ;;  %1253 = vmatprep.mubr.msk.bf16.mxu1 %vm472_vm2, %v1317_v15 }
  0x29   : > { %1222 = vmatmul.mubr.msk.bf16.gmra.mxu0 %vm472_vm2, %v1318_v16  ;;  %1254 = vmatmul.mubr.msk.bf16.gmra.mxu1 %vm472_vm2, %v1319_v17 }
  0x2a   : > { %1225 = vmatprep.mubr.msk.bf16.mxu0 %vm472_vm2, %v1320_v18  ;;  %1257 = vmatprep.mubr.msk.bf16.mxu1 %vm472_vm2, %v1321_v19 }
  0x31   : > { %1226 = vmatmul.mubr.msk.bf16.gmra.mxu0 %vm472_vm2, %v1322_v20  ;;  %1258 = vmatmul.mubr.msk.bf16.gmra.mxu1 %vm472_vm2, %v1323_v21 }
  0x32   : > { %1229 = vmatprep.mubr.msk.bf16.mxu0 %vm472_vm2, %v1324_v22  ;;  %1261 = vmatprep.mubr.msk.bf16.mxu1 %vm472_vm2, %v1325_v23 }
  0x39   : > { %1230 = vmatmul.mubr.msk.bf16.gmra.mxu0 %vm472_vm2, %v1326_v24  ;;  %1262 = vmatmul.mubr.msk.bf16.gmra.mxu1 %vm472_vm2, %v1327_v25 }
  0x3a   : > { %1233 = vmatprep.mubr.msk.bf16.mxu0 %vm472_vm2, %v1328_v26  ;;  %1265 = vmatprep.mubr.msk.bf16.mxu1 %vm472_vm2, %v1329_v27 }
  0x41   : > { %1234 = vmatmul.mubr.msk.bf16.gmra.mxu0 %vm472_vm2, %v1330_v28  ;;  %1266 = vmatmul.mubr.msk.bf16.gmra.mxu1 %vm472_vm2, %v1331_v29 }
  0x42   : > { %1237 = vmatprep.mubr.msk.bf16.mxu0 %vm472_vm2, %v1332_v30  ;;  %1269 = vmatprep.mubr.msk.bf16.mxu1 %vm472_vm2, %v1333_v31 }
  0x49   : > { %1238 = vmatmul.mubr.msk.bf16.gmra.mxu0 %vm472_vm2, %v1334_v32  ;;  %1270 = vmatmul.mubr.msk.bf16.gmra.mxu1 %vm472_vm2, %v1335_v33 }
  0x4a   : > { %1241 = vmatprep.mubr.msk.bf16.mxu0 %vm472_vm2, %v1336_v34  ;;  %1273 = vmatprep.mubr.msk.bf16.mxu1 %vm472_vm2, %v1337_v35 }
  0x51   : > { %1242 = vmatmul.mubr.msk.bf16.gmra.mxu0 %vm472_vm2, %v1338_v36  ;;  %1274 = vmatmul.mubr.msk.bf16.gmra.mxu1 %vm472_vm2, %v1339_v37 }
  0xd9   : > { %v1215_v39 = vpop.f32.mrf.mxu0  ;;  %v1247_v40 = vpop.f32.mrf.mxu1 }
  0xda   : > { %v619_v41 = vadd.f32 %v1215_v39, %v1484_v38  ;;  %v747_v42 = vadd.f32 %v1247_v40, %v1484_v38 }
  0xdb   : > { %v610_v43 = vpop.f32.mrf.mxu0  ;;  %v738_v44 = vpop.f32.mrf.mxu1 }
  0xdc   : > { %v867_v45 = vmax.f32 %v619_v41, 0.0  ;;  %v899_v46 = vmax.f32 %v747_v42, 0.0  ;;  %v611_v47 = vadd.f32 %v1484_v38, %v610_v43  ;;  %v739_v48 = vadd.f32 %v1484_v38, %v738_v44 }
  0xdd   : > { %v1216_v49 = vpop.f32.mrf.mxu0  ;;  %v1248_v50 = vpop.f32.mrf.mxu1 }
  0xde   : > { %931 = vst [vmem:[%s1492_s30 + $0x10] sm:$0xff] %v867_v45  ;;  %963 = vst [vmem:[%s1492_s30 + $0x110] sm:$0xff] %v899_v46  ;;  %v865_v51 = vmax.f32 %v611_v47, 0.0  ;;  %v897_v52 = vmax.f32 %v739_v48, 0.0  ;;  %v622_v53 = vadd.f32 %v1216_v49, %v1484_v38  ;;  %v750_v54 = vadd.f32 %v1248_v50, %v1484_v38 }
  0xdf   : > { %v613_v55 = vpop.f32.mrf.mxu0  ;;  %v741_v56 = vpop.f32.mrf.mxu1 }
  0xe0   : > { %929 = vst [vmem:[%s1492_s30] sm:$0xff] %v865_v51  ;;  %961 = vst [vmem:[%s1492_s30 + $0x100] sm:$0xff] %v897_v52  ;;  %v868_v57 = vmax.f32 %v622_v53, 0.0  ;;  %v900_v58 = vmax.f32 %v750_v54, 0.0  ;;  %v614_v59 = vadd.f32 %v1484_v38, %v613_v55  ;;  %v742_v60 = vadd.f32 %v1484_v38, %v741_v56 }
  0xe1   : > { %v1219_v61 = vpop.f32.mrf.mxu0  ;;  %v1251_v62 = vpop.f32.mrf.mxu1 }
  0xe2   : > { %932 = vst [vmem:[%s1492_s30 + $0x18] sm:$0xff] %v868_v57  ;;  %964 = vst [vmem:[%s1492_s30 + $0x118] sm:$0xff] %v900_v58  ;;  %v866_v63 = vmax.f32 %v614_v59, 0.0  ;;  %v898_v0 = vmax.f32 %v742_v60, 0.0  ;;  %v635_v1 = vadd.f32 %v1219_v61, %v1484_v38  ;;  %v763_v2 = vadd.f32 %v1251_v62, %v1484_v38 }
  0xe3   : > { %v626_v3 = vpop.f32.mrf.mxu0  ;;  %v754_v4 = vpop.f32.mrf.mxu1 }
  0xe4   : > { %930 = vst [vmem:[%s1492_s30 + $0x8] sm:$0xff] %v866_v63  ;;  %962 = vst [vmem:[%s1492_s30 + $0x108] sm:$0xff] %v898_v0  ;;  %v871_v5 = vmax.f32 %v635_v1, 0.0  ;;  %v903_v6 = vmax.f32 %v763_v2, 0.0  ;;  %v627_v7 = vadd.f32 %v1484_v38, %v626_v3  ;;  %v755_v8 = vadd.f32 %v1484_v38, %v754_v4 }
  0xe5   : > { %v1220_v9 = vpop.f32.mrf.mxu0  ;;  %v1252_v10 = vpop.f32.mrf.mxu1 }
  0xe6   : > { %935 = vst [vmem:[%s1492_s30 + $0x30] sm:$0xff] %v871_v5  ;;  %967 = vst [vmem:[%s1492_s30 + $0x130] sm:$0xff] %v903_v6  ;;  %v869_v11 = vmax.f32 %v627_v7, 0.0  ;;  %v901_v12 = vmax.f32 %v755_v8, 0.0  ;;  %v638_v13 = vadd.f32 %v1220_v9, %v1484_v38  ;;  %v766_v14 = vadd.f32 %v1252_v10, %v1484_v38 }
  0xe7   : > { %v629_v15 = vpop.f32.mrf.mxu0  ;;  %v757_v16 = vpop.f32.mrf.mxu1 }
  0xe8   : > { %933 = vst [vmem:[%s1492_s30 + $0x20] sm:$0xff] %v869_v11  ;;  %965 = vst [vmem:[%s1492_s30 + $0x120] sm:$0xff] %v901_v12  ;;  %v872_v17 = vmax.f32 %v638_v13, 0.0  ;;  %v904_v18 = vmax.f32 %v766_v14, 0.0  ;;  %v630_v19 = vadd.f32 %v1484_v38, %v629_v15  ;;  %v758_v20 = vadd.f32 %v1484_v38, %v757_v16 }
  0xe9   : > { %v1223_v21 = vpop.f32.mrf.mxu0  ;;  %v1255_v22 = vpop.f32.mrf.mxu1 }
  0xea   : > { %936 = vst [vmem:[%s1492_s30 + $0x38] sm:$0xff] %v872_v17  ;;  %968 = vst [vmem:[%s1492_s30 + $0x138] sm:$0xff] %v904_v18  ;;  %v870_v23 = vmax.f32 %v630_v19, 0.0  ;;  %v902_v24 = vmax.f32 %v758_v20, 0.0  ;;  %v651_v25 = vadd.f32 %v1223_v21, %v1484_v38  ;;  %v779_v26 = vadd.f32 %v1255_v22, %v1484_v38 }
  0xeb   : > { %v642_v27 = vpop.f32.mrf.mxu0  ;;  %v770_v28 = vpop.f32.mrf.mxu1 }
  0xec   : > { %934 = vst [vmem:[%s1492_s30 + $0x28] sm:$0xff] %v870_v23  ;;  %966 = vst [vmem:[%s1492_s30 + $0x128] sm:$0xff] %v902_v24  ;;  %v875_v29 = vmax.f32 %v651_v25, 0.0  ;;  %v907_v30 = vmax.f32 %v779_v26, 0.0  ;;  %v643_v31 = vadd.f32 %v1484_v38, %v642_v27  ;;  %v771_v32 = vadd.f32 %v1484_v38, %v770_v28 }
  0xed   : > { %v1224_v33 = vpop.f32.mrf.mxu0  ;;  %v1256_v34 = vpop.f32.mrf.mxu1 }
  0xee   : > { %939 = vst [vmem:[%s1492_s30 + $0x50] sm:$0xff] %v875_v29  ;;  %971 = vst [vmem:[%s1492_s30 + $0x150] sm:$0xff] %v907_v30  ;;  %v873_v35 = vmax.f32 %v643_v31, 0.0  ;;  %v905_v36 = vmax.f32 %v771_v32, 0.0  ;;  %v654_v37 = vadd.f32 %v1224_v33, %v1484_v38  ;;  %v782_v39 = vadd.f32 %v1256_v34, %v1484_v38 }
  0xef   : > { %v645_v40 = vpop.f32.mrf.mxu0  ;;  %v773_v41 = vpop.f32.mrf.mxu1 }
  0xf0   : > { %937 = vst [vmem:[%s1492_s30 + $0x40] sm:$0xff] %v873_v35  ;;  %969 = vst [vmem:[%s1492_s30 + $0x140] sm:$0xff] %v905_v36  ;;  %v876_v42 = vmax.f32 %v654_v37, 0.0  ;;  %v908_v43 = vmax.f32 %v782_v39, 0.0  ;;  %v646_v44 = vadd.f32 %v1484_v38, %v645_v40  ;;  %v774_v45 = vadd.f32 %v1484_v38, %v773_v41 }
  0xf1   : > { %v1227_v46 = vpop.f32.mrf.mxu0  ;;  %v1259_v47 = vpop.f32.mrf.mxu1 }
  0xf2   : > { %940 = vst [vmem:[%s1492_s30 + $0x58] sm:$0xff] %v876_v42  ;;  %972 = vst [vmem:[%s1492_s30 + $0x158] sm:$0xff] %v908_v43  ;;  %v874_v48 = vmax.f32 %v646_v44, 0.0  ;;  %v906_v49 = vmax.f32 %v774_v45, 0.0  ;;  %v667_v50 = vadd.f32 %v1227_v46, %v1484_v38  ;;  %v795_v51 = vadd.f32 %v1259_v47, %v1484_v38 }
  0xf3   : > { %v658_v52 = vpop.f32.mrf.mxu0  ;;  %v786_v53 = vpop.f32.mrf.mxu1 }
  0xf4   : > { %938 = vst [vmem:[%s1492_s30 + $0x48] sm:$0xff] %v874_v48  ;;  %970 = vst [vmem:[%s1492_s30 + $0x148] sm:$0xff] %v906_v49  ;;  %v879_v54 = vmax.f32 %v667_v50, 0.0  ;;  %v911_v55 = vmax.f32 %v795_v51, 0.0  ;;  %v659_v56 = vadd.f32 %v1484_v38, %v658_v52  ;;  %v787_v57 = vadd.f32 %v1484_v38, %v786_v53 }
  0xf5   : > { %v1228_v58 = vpop.f32.mrf.mxu0  ;;  %v1260_v59 = vpop.f32.mrf.mxu1 }
  0xf6   : > { %943 = vst [vmem:[%s1492_s30 + $0x70] sm:$0xff] %v879_v54  ;;  %975 = vst [vmem:[%s1492_s30 + $0x170] sm:$0xff] %v911_v55  ;;  %v877_v60 = vmax.f32 %v659_v56, 0.0  ;;  %v909_v61 = vmax.f32 %v787_v57, 0.0  ;;  %v670_v62 = vadd.f32 %v1228_v58, %v1484_v38  ;;  %v798_v63 = vadd.f32 %v1260_v59, %v1484_v38 }
  0xf7   : > { %v661_v0 = vpop.f32.mrf.mxu0  ;;  %v789_v1 = vpop.f32.mrf.mxu1 }
  0xf8   : > { %941 = vst [vmem:[%s1492_s30 + $0x60] sm:$0xff] %v877_v60  ;;  %973 = vst [vmem:[%s1492_s30 + $0x160] sm:$0xff] %v909_v61  ;;  %v880_v2 = vmax.f32 %v670_v62, 0.0  ;;  %v912_v3 = vmax.f32 %v798_v63, 0.0  ;;  %v662_v4 = vadd.f32 %v1484_v38, %v661_v0  ;;  %v790_v5 = vadd.f32 %v1484_v38, %v789_v1 }
  0xf9   : > { %v1231_v6 = vpop.f32.mrf.mxu0  ;;  %v1263_v7 = vpop.f32.mrf.mxu1 }
  0xfa   : > { %944 = vst [vmem:[%s1492_s30 + $0x78] sm:$0xff] %v880_v2  ;;  %976 = vst [vmem:[%s1492_s30 + $0x178] sm:$0xff] %v912_v3  ;;  %v878_v8 = vmax.f32 %v662_v4, 0.0  ;;  %v910_v9 = vmax.f32 %v790_v5, 0.0  ;;  %v683_v10 = vadd.f32 %v1231_v6, %v1484_v38  ;;  %v811_v11 = vadd.f32 %v1263_v7, %v1484_v38 }
  0xfb   : > { %v674_v12 = vpop.f32.mrf.mxu0  ;;  %v802_v13 = vpop.f32.mrf.mxu1 }
  0xfc   : > { %942 = vst [vmem:[%s1492_s30 + $0x68] sm:$0xff] %v878_v8  ;;  %974 = vst [vmem:[%s1492_s30 + $0x168] sm:$0xff] %v910_v9  ;;  %v883_v14 = vmax.f32 %v683_v10, 0.0  ;;  %v915_v15 = vmax.f32 %v811_v11, 0.0  ;;  %v675_v16 = vadd.f32 %v1484_v38, %v674_v12  ;;  %v803_v17 = vadd.f32 %v1484_v38, %v802_v13 }
  0xfd   : > { %v1232_v18 = vpop.f32.mrf.mxu0  ;;  %v1264_v19 = vpop.f32.mrf.mxu1 }
  0xfe   : > { %947 = vst [vmem:[%s1492_s30 + $0x90] sm:$0xff] %v883_v14  ;;  %979 = vst [vmem:[%s1492_s30 + $0x190] sm:$0xff] %v915_v15  ;;  %v881_v20 = vmax.f32 %v675_v16, 0.0  ;;  %v913_v21 = vmax.f32 %v803_v17, 0.0  ;;  %v686_v22 = vadd.f32 %v1232_v18, %v1484_v38  ;;  %v814_v23 = vadd.f32 %v1264_v19, %v1484_v38 }
  0xff   : > { %v677_v24 = vpop.f32.mrf.mxu0  ;;  %v805_v25 = vpop.f32.mrf.mxu1 }
 0x100   : > { %945 = vst [vmem:[%s1492_s30 + $0x80] sm:$0xff] %v881_v20  ;;  %977 = vst [vmem:[%s1492_s30 + $0x180] sm:$0xff] %v913_v21  ;;  %v884_v26 = vmax.f32 %v686_v22, 0.0  ;;  %v916_v27 = vmax.f32 %v814_v23, 0.0  ;;  %v678_v28 = vadd.f32 %v1484_v38, %v677_v24  ;;  %v806_v29 = vadd.f32 %v1484_v38, %v805_v25 }
 0x101   : > { %v1235_v30 = vpop.f32.mrf.mxu0  ;;  %v1267_v31 = vpop.f32.mrf.mxu1 }
 0x102   : > { %948 = vst [vmem:[%s1492_s30 + $0x98] sm:$0xff] %v884_v26  ;;  %980 = vst [vmem:[%s1492_s30 + $0x198] sm:$0xff] %v916_v27  ;;  %v882_v32 = vmax.f32 %v678_v28, 0.0  ;;  %v914_v33 = vmax.f32 %v806_v29, 0.0  ;;  %v699_v34 = vadd.f32 %v1235_v30, %v1484_v38  ;;  %v827_v35 = vadd.f32 %v1267_v31, %v1484_v38 }
 0x103   : > { %v690_v36 = vpop.f32.mrf.mxu0  ;;  %v818_v37 = vpop.f32.mrf.mxu1 }
 0x104   : > { %946 = vst [vmem:[%s1492_s30 + $0x88] sm:$0xff] %v882_v32  ;;  %978 = vst [vmem:[%s1492_s30 + $0x188] sm:$0xff] %v914_v33  ;;  %v887_v39 = vmax.f32 %v699_v34, 0.0  ;;  %v919_v40 = vmax.f32 %v827_v35, 0.0  ;;  %v691_v41 = vadd.f32 %v1484_v38, %v690_v36  ;;  %v819_v42 = vadd.f32 %v1484_v38, %v818_v37 }
 0x105   : > { %v1236_v43 = vpop.f32.mrf.mxu0  ;;  %v1268_v44 = vpop.f32.mrf.mxu1 }
 0x106   : > { %951 = vst [vmem:[%s1492_s30 + $0xb0] sm:$0xff] %v887_v39  ;;  %983 = vst [vmem:[%s1492_s30 + $0x1b0] sm:$0xff] %v919_v40  ;;  %v885_v45 = vmax.f32 %v691_v41, 0.0  ;;  %v917_v46 = vmax.f32 %v819_v42, 0.0  ;;  %v702_v47 = vadd.f32 %v1236_v43, %v1484_v38  ;;  %v830_v48 = vadd.f32 %v1268_v44, %v1484_v38 }
 0x107   : > { %v693_v49 = vpop.f32.mrf.mxu0  ;;  %v821_v50 = vpop.f32.mrf.mxu1 }
 0x108   : > { %949 = vst [vmem:[%s1492_s30 + $0xa0] sm:$0xff] %v885_v45  ;;  %981 = vst [vmem:[%s1492_s30 + $0x1a0] sm:$0xff] %v917_v46  ;;  %v888_v51 = vmax.f32 %v702_v47, 0.0  ;;  %v920_v52 = vmax.f32 %v830_v48, 0.0  ;;  %v694_v53 = vadd.f32 %v1484_v38, %v693_v49  ;;  %v822_v54 = vadd.f32 %v1484_v38, %v821_v50 }
 0x109   : > { %v1239_v55 = vpop.f32.mrf.mxu0  ;;  %v1271_v56 = vpop.f32.mrf.mxu1 }
 0x10a   : > { %952 = vst [vmem:[%s1492_s30 + $0xb8] sm:$0xff] %v888_v51  ;;  %984 = vst [vmem:[%s1492_s30 + $0x1b8] sm:$0xff] %v920_v52  ;;  %v886_v57 = vmax.f32 %v694_v53, 0.0  ;;  %v918_v58 = vmax.f32 %v822_v54, 0.0  ;;  %v715_v59 = vadd.f32 %v1239_v55, %v1484_v38  ;;  %v843_v60 = vadd.f32 %v1271_v56, %v1484_v38 }
 0x10b   : > { %v706_v61 = vpop.f32.mrf.mxu0  ;;  %v834_v62 = vpop.f32.mrf.mxu1 }
 0x10c   : > { %950 = vst [vmem:[%s1492_s30 + $0xa8] sm:$0xff] %v886_v57  ;;  %982 = vst [vmem:[%s1492_s30 + $0x1a8] sm:$0xff] %v918_v58  ;;  %v891_v63 = vmax.f32 %v715_v59, 0.0  ;;  %v923_v0 = vmax.f32 %v843_v60, 0.0  ;;  %v707_v1 = vadd.f32 %v1484_v38, %v706_v61  ;;  %v835_v2 = vadd.f32 %v1484_v38, %v834_v62 }
 0x10d   : > { %v1240_v3 = vpop.f32.mrf.mxu0  ;;  %v1272_v4 = vpop.f32.mrf.mxu1 }
 0x10e   : > { %955 = vst [vmem:[%s1492_s30 + $0xd0] sm:$0xff] %v891_v63  ;;  %987 = vst [vmem:[%s1492_s30 + $0x1d0] sm:$0xff] %v923_v0  ;;  %v889_v5 = vmax.f32 %v707_v1, 0.0  ;;  %v921_v6 = vmax.f32 %v835_v2, 0.0  ;;  %v718_v7 = vadd.f32 %v1240_v3, %v1484_v38  ;;  %v846_v8 = vadd.f32 %v1272_v4, %v1484_v38 }
 0x10f   : > { %v709_v9 = vpop.f32.mrf.mxu0  ;;  %v837_v10 = vpop.f32.mrf.mxu1 }
 0x110   : > { %953 = vst [vmem:[%s1492_s30 + $0xc0] sm:$0xff] %v889_v5  ;;  %985 = vst [vmem:[%s1492_s30 + $0x1c0] sm:$0xff] %v921_v6  ;;  %v892_v11 = vmax.f32 %v718_v7, 0.0  ;;  %v924_v12 = vmax.f32 %v846_v8, 0.0  ;;  %v710_v13 = vadd.f32 %v1484_v38, %v709_v9  ;;  %v838_v14 = vadd.f32 %v1484_v38, %v837_v10 }
 0x111   : > { %v1243_v15 = vpop.f32.mrf.mxu0  ;;  %v1275_v16 = vpop.f32.mrf.mxu1 }
 0x112   : > { %956 = vst [vmem:[%s1492_s30 + $0xd8] sm:$0xff] %v892_v11  ;;  %988 = vst [vmem:[%s1492_s30 + $0x1d8] sm:$0xff] %v924_v12  ;;  %v890_v17 = vmax.f32 %v710_v13, 0.0  ;;  %v922_v18 = vmax.f32 %v838_v14, 0.0  ;;  %v731_v19 = vadd.f32 %v1243_v15, %v1484_v38  ;;  %v859_v20 = vadd.f32 %v1275_v16, %v1484_v38 }
 0x113   : > { %v722_v21 = vpop.f32.mrf.mxu0  ;;  %v850_v22 = vpop.f32.mrf.mxu1 }
 0x114   : > { %954 = vst [vmem:[%s1492_s30 + $0xc8] sm:$0xff] %v890_v17  ;;  %986 = vst [vmem:[%s1492_s30 + $0x1c8] sm:$0xff] %v922_v18  ;;  %v895_v23 = vmax.f32 %v731_v19, 0.0  ;;  %v927_v24 = vmax.f32 %v859_v20, 0.0  ;;  %v723_v25 = vadd.f32 %v1484_v38, %v722_v21  ;;  %v851_v26 = vadd.f32 %v1484_v38, %v850_v22 }
 0x115   : > { %v1244_v27 = vpop.f32.mrf.mxu0  ;;  %v1276_v28 = vpop.f32.mrf.mxu1 }
 0x116   : > { %959 = vst [vmem:[%s1492_s30 + $0xf0] sm:$0xff] %v895_v23  ;;  %991 = vst [vmem:[%s1492_s30 + $0x1f0] sm:$0xff] %v927_v24  ;;  %v893_v29 = vmax.f32 %v723_v25, 0.0  ;;  %v925_v30 = vmax.f32 %v851_v26, 0.0  ;;  %v734_v31 = vadd.f32 %v1244_v27, %v1484_v38  ;;  %v862_v32 = vadd.f32 %v1276_v28, %v1484_v38 }
 0x117   : > { %v725_v33 = vpop.f32.mrf.mxu0  ;;  %v853_v34 = vpop.f32.mrf.mxu1 }
 0x118   : > { %957 = vst [vmem:[%s1492_s30 + $0xe0] sm:$0xff] %v893_v29  ;;  %989 = vst [vmem:[%s1492_s30 + $0x1e0] sm:$0xff] %v925_v30  ;;  %v896_v35 = vmax.f32 %v734_v31, 0.0  ;;  %v928_v36 = vmax.f32 %v862_v32, 0.0  ;;  %v726_v37 = vadd.f32 %v1484_v38, %v725_v33  ;;  %v854_v39 = vadd.f32 %v1484_v38, %v853_v34 }
 0x11a   : > { %960 = vst [vmem:[%s1492_s30 + $0xf8] sm:$0xff] %v896_v35  ;;  %992 = vst [vmem:[%s1492_s30 + $0x1f8] sm:$0xff] %v928_v36  ;;  %v894_v40 = vmax.f32 %v726_v37, 0.0  ;;  %v926_v41 = vmax.f32 %v854_v39, 0.0 }
 0x11c   : > { %958 = vst [vmem:[%s1492_s30 + $0xe8] sm:$0xff] %v894_v40  ;;  %990 = vst [vmem:[%s1492_s30 + $0x1e8] sm:$0xff] %v926_v41 }
 0x11d PF: > { %s13_s14 = sadd.s32 1, %s1362_s14   ;;  %s1633_s12 = smov %s1358_s13 }
 0x11e   : > { %p10_p5 = scmp.ge.s32.totalorder %s13_s14, 4   ;;  %s1634_s13 = smov %s1636_s15 }
 0x120   :  { %12 = sbr.rel (!%p10_p5) target bundleno = 2 (0x2), region = 68 }

// kernel: idnet_forward.11
= control target key start
LH: loop header
LB: loop body
LE: loop exit
PB: predicated region body
PF: predicated region fallthrough
CT: control target
= control target key end

     0   :  { %s1590_s12 = smov 0   ;;  %s1592_s13 = smov 0   ;;  %s1890_s0 = inlined_call_operand.vmem [shape: bf16[1024,144], index: 0, kind: input, shape index: {}]   ;;  %s1891_s1 = inlined_call_operand.vmem [shape: bf16[144,128], index: 1, kind: input, shape index: {}]   ;;  %s1892_s2 = inlined_call_operand.vmem [shape: f32[1,128], index: 2, kind: input, shape index: {}]   ;;  %s1893_s3 = inlined_call_operand.vmem [shape: f32[1024,128], index: 3, kind: output, shape index: {}]  }
   0x1   :  { %s1594_s14 = smov 0  }
   0x2 LB: > { %s25_s15 = sadd.s32 1, %s1563_s13  ;;  %p1282_p0 = scmp.ge.s32.totalorder %s1567_s14, 1  ;;  %s1567_s14 = sphi %s1594_s14, %s13_s14   ;;  %s1563_s13 = sphi %s1592_s13, %s1895_s13   ;;  %s1559_s12 = sphi %s1590_s12, %s1894_s12  }
   0x3   : > { %p27_p1 = scmp.ge.s32.totalorder %s25_s15, 2  ;;  %p170_p2 = scmp.lt.s32.totalorder %s1567_s14, 3 }
   0x5   : > { %s1897_s15 = smov (%p27_p1, %s25_s15), 0  ;;  %p171_p3 = pnand %p1282_p0, %p170_p2 }
   0x6   : > { %s1283_s18 = sshll.u32 (!%p171_p3), %s1559_s12, 6 }
   0x7   : > { %174 = sbr.rel (%p171_p3) target bundleno = 371 (0x173), region = 32  ;;  %p206_p4 = scmp.lt.s32.totalorder (!%p171_p3), %s1283_s18, 127 }
   0xc   : > { %v1440_v0 = vld [vmem:[%s1891_s1 + $0x38] sm:$0xff]   ;;  %v1569_v1 = vmov 0   ;;  %v1441_v2 = vld [vmem:[%s1891_s1 + $0x30] sm:$0xff]   ;;  %s1899_s18 = smov (!%p206_p4, %s1283_s18), 127  ;;  %v1442_v3 = vld [vmem:[%s1891_s1 + $0x28] sm:$0xff]   ;;  %vm660_vm0 = vcmask 130048  }
   0xd   : > { %757 = vmatprep.subr.bf16.mxu0 %v1569_v1  ;;  %1397 = vmatprep.subr.bf16.mxu1 %v1569_v1  ;;  %s1396_s23 = sshll.u32 %s1899_s18, 3  ;;  %v1443_v4 = vld [vmem:[%s1891_s1 + $0x20] sm:$0xff]   ;;  %v1444_v7 = vld [vmem:[%s1891_s1 + $0x18] sm:$0xff]   ;;  %v1445_v8 = vld [vmem:[%s1891_s1 + $0x10] sm:$0xff]  }
   0xe   : > { %758 = vmatpush1.bf16.msra.mxu0 %v1440_v0  ;;  %1406 = vmatpush1.bf16.msra.mxu1 %v1440_v0  ;;  %s1625_s26 = scalar_lea.vmem %s1890_s0, %s1396_s23  ;;  %v1446_v9 = vld [vmem:[%s1891_s1 + $0x8] sm:$0xff]   ;;  %v1447_v10 = vld [vmem:[%s1891_s1] sm:$0xff]   ;;  %s1753_s20 = scalar_lea.vmem %s1893_s3, %s1396_s23 }
   0xf   : > { %759 = vmatprep.subr.bf16.mxu0 %v1569_v1  ;;  %1398 = vmatprep.subr.bf16.mxu1 %v1569_v1  ;;  %v1451_v5 = vld [vmem:[%s1625_s26 + $0x4] ss:$8 sps:$4 sm:$0xff]   ;;  %v1449_v12 = vld [vmem:[%s1625_s26] ss:$8 sps:$4 sm:$0xff]   ;;  %v1455_v14 = vld [vmem:[%s1625_s26 + $0x14] ss:$8 sps:$4 sm:$0xff]  }
  0x10   : > { %v1454_v6 = vld [vmem:[%s1625_s26 + $0x104] ss:$8 sps:$4 sm:$0xff]   ;;  %1362 = vmatprep.mubr.msk.bf16.mxu0 %vm660_vm0, %v1451_v5  ;;  %v1452_v13 = vld [vmem:[%s1625_s26 + $0x100] ss:$8 sps:$4 sm:$0xff]   ;;  %v1457_v15 = vld [vmem:[%s1625_s26 + $0x114] ss:$8 sps:$4 sm:$0xff]  }
  0x11   : > { %1378 = vmatprep.mubr.msk.bf16.mxu1 %vm660_vm0, %v1454_v6  ;;  %v1448_v11 = vld [vmem:[%s1891_s1 + $0x40] sm:$0xff]   ;;  %v1459_v16 = vld [vmem:[%s1625_s26 + $0x10] ss:$8 sps:$4 sm:$0xff]   ;;  %v1467_v22 = vld [vmem:[%s1625_s26 + $0x34] ss:$8 sps:$4 sm:$0xff]  }
  0x12   : > { %760 = vmatpush1.bf16.msra.mxu0 %v1441_v2  ;;  %1407 = vmatpush1.bf16.msra.mxu1 %v1441_v2  ;;  %v1460_v17 = vld [vmem:[%s1625_s26 + $0x110] ss:$8 sps:$4 sm:$0xff]   ;;  %v1461_v18 = vld [vmem:[%s1625_s26 + $0x24] ss:$8 sps:$4 sm:$0xff]   ;;  %v1465_v20 = vld [vmem:[%s1625_s26 + $0x20] ss:$8 sps:$4 sm:$0xff]  }
  0x13   : > { %761 = vmatprep.subr.bf16.mxu0 %v1569_v1  ;;  %1399 = vmatprep.subr.bf16.mxu1 %v1569_v1  ;;  %v1463_v19 = vld [vmem:[%s1625_s26 + $0x124] ss:$8 sps:$4 sm:$0xff]   ;;  %v1466_v21 = vld [vmem:[%s1625_s26 + $0x120] ss:$8 sps:$4 sm:$0xff]   ;;  %v1469_v23 = vld [vmem:[%s1625_s26 + $0x134] ss:$8 sps:$4 sm:$0xff]  }
  0x14   : > { %v1471_v24 = vld [vmem:[%s1625_s26 + $0x30] ss:$8 sps:$4 sm:$0xff]   ;;  %v1473_v26 = vld [vmem:[%s1625_s26 + $0x44] ss:$8 sps:$4 sm:$0xff]   ;;  %v1477_v28 = vld [vmem:[%s1625_s26 + $0x40] ss:$8 sps:$4 sm:$0xff]  }
  0x15   : > { %v1472_v25 = vld [vmem:[%s1625_s26 + $0x130] ss:$8 sps:$4 sm:$0xff]   ;;  %v1475_v27 = vld [vmem:[%s1625_s26 + $0x144] ss:$8 sps:$4 sm:$0xff]   ;;  %v1478_v29 = vld [vmem:[%s1625_s26 + $0x140] ss:$8 sps:$4 sm:$0xff]  }
  0x16   : > { %762 = vmatpush1.bf16.msra.mxu0 %v1442_v3  ;;  %1408 = vmatpush1.bf16.msra.mxu1 %v1442_v3  ;;  %v1479_v30 = vld [vmem:[%s1625_s26 + $0x54] ss:$8 sps:$4 sm:$0xff]   ;;  %v1483_v32 = vld [vmem:[%s1625_s26 + $0x50] ss:$8 sps:$4 sm:$0xff]   ;;  %v1485_v34 = vld [vmem:[%s1625_s26 + $0x64] ss:$8 sps:$4 sm:$0xff]  }
  0x17   : > { %763 = vmatprep.subr.bf16.mxu0 %v1569_v1  ;;  %1400 = vmatprep.subr.bf16.mxu1 %v1569_v1  ;;  %v1481_v31 = vld [vmem:[%s1625_s26 + $0x154] ss:$8 sps:$4 sm:$0xff]   ;;  %v1484_v33 = vld [vmem:[%s1625_s26 + $0x150] ss:$8 sps:$4 sm:$0xff]   ;;  %v1487_v35 = vld [vmem:[%s1625_s26 + $0x164] ss:$8 sps:$4 sm:$0xff]  }
  0x18   : > { %v1489_v36 = vld [vmem:[%s1625_s26 + $0x60] ss:$8 sps:$4 sm:$0xff]   ;;  %v1491_v38 = vld [vmem:[%s1625_s26 + $0x74] ss:$8 sps:$4 sm:$0xff]   ;;  %v1495_v40 = vld [vmem:[%s1625_s26 + $0x70] ss:$8 sps:$4 sm:$0xff]  }
  0x19   : > { %v1490_v37 = vld [vmem:[%s1625_s26 + $0x160] ss:$8 sps:$4 sm:$0xff]   ;;  %v1493_v39 = vld [vmem:[%s1625_s26 + $0x174] ss:$8 sps:$4 sm:$0xff]   ;;  %v1496_v41 = vld [vmem:[%s1625_s26 + $0x170] ss:$8 sps:$4 sm:$0xff]  }
  0x1a   : > { %764 = vmatpush1.bf16.msra.mxu0 %v1443_v4  ;;  %1409 = vmatpush1.bf16.msra.mxu1 %v1443_v4  ;;  %v1497_v42 = vld [vmem:[%s1625_s26 + $0x84] ss:$8 sps:$4 sm:$0xff]   ;;  %v1501_v44 = vld [vmem:[%s1625_s26 + $0x80] ss:$8 sps:$4 sm:$0xff]   ;;  %v1503_v46 = vld [vmem:[%s1625_s26 + $0x94] ss:$8 sps:$4 sm:$0xff]  }
  0x1b   : > { %765 = vmatprep.subr.bf16.mxu0 %v1569_v1  ;;  %1401 = vmatprep.subr.bf16.mxu1 %v1569_v1  ;;  %v1499_v43 = vld [vmem:[%s1625_s26 + $0x184] ss:$8 sps:$4 sm:$0xff]   ;;  %v1502_v45 = vld [vmem:[%s1625_s26 + $0x180] ss:$8 sps:$4 sm:$0xff]   ;;  %v1505_v47 = vld [vmem:[%s1625_s26 + $0x194] ss:$8 sps:$4 sm:$0xff]  }
  0x1c   : > { %v1507_v48 = vld [vmem:[%s1625_s26 + $0x90] ss:$8 sps:$4 sm:$0xff]   ;;  %v1509_v50 = vld [vmem:[%s1625_s26 + $0xa4] ss:$8 sps:$4 sm:$0xff]   ;;  %v1513_v52 = vld [vmem:[%s1625_s26 + $0xa0] ss:$8 sps:$4 sm:$0xff]  }
  0x1d   : > { %v1508_v49 = vld [vmem:[%s1625_s26 + $0x190] ss:$8 sps:$4 sm:$0xff]   ;;  %v1511_v51 = vld [vmem:[%s1625_s26 + $0x1a4] ss:$8 sps:$4 sm:$0xff]   ;;  %v1514_v53 = vld [vmem:[%s1625_s26 + $0x1a0] ss:$8 sps:$4 sm:$0xff]  }
  0x1e   : > { %766 = vmatpush1.bf16.msra.mxu0 %v1444_v7  ;;  %1410 = vmatpush1.bf16.msra.mxu1 %v1444_v7  ;;  %v1515_v54 = vld [vmem:[%s1625_s26 + $0xb4] ss:$8 sps:$4 sm:$0xff]   ;;  %v1519_v56 = vld [vmem:[%s1625_s26 + $0xb0] ss:$8 sps:$4 sm:$0xff]   ;;  %v1521_v58 = vld [vmem:[%s1625_s26 + $0xc4] ss:$8 sps:$4 sm:$0xff]  }
  0x1f   : > { %767 = vmatprep.subr.bf16.mxu0 %v1569_v1  ;;  %1402 = vmatprep.subr.bf16.mxu1 %v1569_v1  ;;  %v1517_v55 = vld [vmem:[%s1625_s26 + $0x1b4] ss:$8 sps:$4 sm:$0xff]   ;;  %v1520_v57 = vld [vmem:[%s1625_s26 + $0x1b0] ss:$8 sps:$4 sm:$0xff]   ;;  %v1523_v59 = vld [vmem:[%s1625_s26 + $0x1c4] ss:$8 sps:$4 sm:$0xff]  }
  0x20   : > { %v1525_v60 = vld [vmem:[%s1625_s26 + $0xc0] ss:$8 sps:$4 sm:$0xff]   ;;  %v1527_v62 = vld [vmem:[%s1625_s26 + $0xd4] ss:$8 sps:$4 sm:$0xff]   ;;  %v1531_v0 = vld [vmem:[%s1625_s26 + $0xd0] ss:$8 sps:$4 sm:$0xff]  }
  0x21   : > { %v1526_v61 = vld [vmem:[%s1625_s26 + $0x1c0] ss:$8 sps:$4 sm:$0xff]   ;;  %v1529_v63 = vld [vmem:[%s1625_s26 + $0x1d4] ss:$8 sps:$4 sm:$0xff]   ;;  %v1533_v2 = vld [vmem:[%s1625_s26 + $0xe4] ss:$8 sps:$4 sm:$0xff]  }
  0x22   : > { %768 = vmatpush1.bf16.msra.mxu0 %v1445_v8  ;;  %1411 = vmatpush1.bf16.msra.mxu1 %v1445_v8  ;;  %v1535_v3 = vld [vmem:[%s1625_s26 + $0x1e4] ss:$8 sps:$4 sm:$0xff]   ;;  %v1537_v4 = vld [vmem:[%s1625_s26 + $0xe0] ss:$8 sps:$4 sm:$0xff]   ;;  %v1539_v6 = vld [vmem:[%s1625_s26 + $0xf4] ss:$8 sps:$4 sm:$0xff]  }
  0x23   : > { %769 = vmatprep.subr.bf16.mxu0 %v1569_v1  ;;  %1403 = vmatprep.subr.bf16.mxu1 %v1569_v1  ;;  %v1538_v5 = vld [vmem:[%s1625_s26 + $0x1e0] ss:$8 sps:$4 sm:$0xff]   ;;  %v1541_v7 = vld [vmem:[%s1625_s26 + $0x1f4] ss:$8 sps:$4 sm:$0xff]   ;;  %v1543_v8 = vld [vmem:[%s1625_s26 + $0xf0] ss:$8 sps:$4 sm:$0xff]  }
  0x26   : > { %770 = vmatpush1.bf16.msra.mxu0 %v1446_v9  ;;  %1412 = vmatpush1.bf16.msra.mxu1 %v1446_v9  ;;  %v1544_v9 = vld [vmem:[%s1625_s26 + $0x1f0] ss:$8 sps:$4 sm:$0xff]  }
  0x27   : > { %771 = vmatprep.subr.bf16.mxu0 %v1569_v1  ;;  %1404 = vmatprep.subr.bf16.mxu1 %v1569_v1 }
  0x2a   : > { %772 = vmatpush1.bf16.msra.mxu0 %v1447_v10  ;;  %1413 = vmatpush1.bf16.msra.mxu1 %v1447_v10  ;;  %v1744_v10 = vld [vmem:[%s1892_s2] ss:$0 sm:$0xff] }
  0x2b   : > { %787 = vmatprep.subr.bf16.mxu0 %v1569_v1  ;;  %1405 = vmatprep.subr.bf16.mxu1 %v1569_v1  ;;  %v1532_v1 = vld [vmem:[%s1625_s26 + $0x1d0] ss:$8 sps:$4 sm:$0xff]  }
  0x2e   : > { %788 = vmatpush2.bf16.msra.mxu0 %v1448_v11  ;;  %1414 = vmatpush2.bf16.msra.mxu1 %v1448_v11 }
  0x31   : > { %790 = vmatmul.mubr.bf16.vlgmr.msra.gmra.mxu0 %v1449_v12  ;;  %918 = vmatmul.mubr.bf16.vlgmr.msra.gmra.mxu1 %v1452_v13 }
  0x32   : > { %1363 = vmatprep.mubr.msk.bf16.mxu0 %vm660_vm0, %v1455_v14  ;;  %1379 = vmatprep.mubr.msk.bf16.mxu1 %vm660_vm0, %v1457_v15 }
  0x39   : > { %798 = vmatmul.mubr.bf16.gmra.mxu0 %v1459_v16  ;;  %926 = vmatmul.mubr.bf16.gmra.mxu1 %v1460_v17 }
  0x3a   : > { %1364 = vmatprep.mubr.msk.bf16.mxu0 %vm660_vm0, %v1461_v18  ;;  %1380 = vmatprep.mubr.msk.bf16.mxu1 %vm660_vm0, %v1463_v19 }
  0x41   : > { %806 = vmatmul.mubr.bf16.gmra.mxu0 %v1465_v20  ;;  %934 = vmatmul.mubr.bf16.gmra.mxu1 %v1466_v21 }
  0x42   : > { %1365 = vmatprep.mubr.msk.bf16.mxu0 %vm660_vm0, %v1467_v22  ;;  %1381 = vmatprep.mubr.msk.bf16.mxu1 %vm660_vm0, %v1469_v23 }
  0x49   : > { %814 = vmatmul.mubr.bf16.gmra.mxu0 %v1471_v24  ;;  %942 = vmatmul.mubr.bf16.gmra.mxu1 %v1472_v25 }
  0x4a   : > { %1366 = vmatprep.mubr.msk.bf16.mxu0 %vm660_vm0, %v1473_v26  ;;  %1382 = vmatprep.mubr.msk.bf16.mxu1 %vm660_vm0, %v1475_v27 }
  0x51   : > { %822 = vmatmul.mubr.bf16.gmra.mxu0 %v1477_v28  ;;  %950 = vmatmul.mubr.bf16.gmra.mxu1 %v1478_v29 }
  0x52   : > { %1367 = vmatprep.mubr.msk.bf16.mxu0 %vm660_vm0, %v1479_v30  ;;  %1383 = vmatprep.mubr.msk.bf16.mxu1 %vm660_vm0, %v1481_v31 }
  0x59   : > { %830 = vmatmul.mubr.bf16.gmra.mxu0 %v1483_v32  ;;  %958 = vmatmul.mubr.bf16.gmra.mxu1 %v1484_v33 }
  0x5a   : > { %1368 = vmatprep.mubr.msk.bf16.mxu0 %vm660_vm0, %v1485_v34  ;;  %1384 = vmatprep.mubr.msk.bf16.mxu1 %vm660_vm0, %v1487_v35 }
  0x61   : > { %838 = vmatmul.mubr.bf16.gmra.mxu0 %v1489_v36  ;;  %966 = vmatmul.mubr.bf16.gmra.mxu1 %v1490_v37 }
  0x62   : > { %1369 = vmatprep.mubr.msk.bf16.mxu0 %vm660_vm0, %v1491_v38  ;;  %1385 = vmatprep.mubr.msk.bf16.mxu1 %vm660_vm0, %v1493_v39 }
  0x69   : > { %846 = vmatmul.mubr.bf16.gmra.mxu0 %v1495_v40  ;;  %974 = vmatmul.mubr.bf16.gmra.mxu1 %v1496_v41 }
  0x6a   : > { %1370 = vmatprep.mubr.msk.bf16.mxu0 %vm660_vm0, %v1497_v42  ;;  %1386 = vmatprep.mubr.msk.bf16.mxu1 %vm660_vm0, %v1499_v43 }
  0x71   : > { %854 = vmatmul.mubr.bf16.gmra.mxu0 %v1501_v44  ;;  %982 = vmatmul.mubr.bf16.gmra.mxu1 %v1502_v45 }
  0x72   : > { %1371 = vmatprep.mubr.msk.bf16.mxu0 %vm660_vm0, %v1503_v46  ;;  %1387 = vmatprep.mubr.msk.bf16.mxu1 %vm660_vm0, %v1505_v47 }
  0x79   : > { %862 = vmatmul.mubr.bf16.gmra.mxu0 %v1507_v48  ;;  %990 = vmatmul.mubr.bf16.gmra.mxu1 %v1508_v49 }
  0x7a   : > { %1372 = vmatprep.mubr.msk.bf16.mxu0 %vm660_vm0, %v1509_v50  ;;  %1388 = vmatprep.mubr.msk.bf16.mxu1 %vm660_vm0, %v1511_v51 }
  0x81   : > { %870 = vmatmul.mubr.bf16.gmra.mxu0 %v1513_v52  ;;  %998 = vmatmul.mubr.bf16.gmra.mxu1 %v1514_v53 }
  0x82   : > { %1373 = vmatprep.mubr.msk.bf16.mxu0 %vm660_vm0, %v1515_v54  ;;  %1389 = vmatprep.mubr.msk.bf16.mxu1 %vm660_vm0, %v1517_v55 }
  0x89   : > { %878 = vmatmul.mubr.bf16.gmra.mxu0 %v1519_v56  ;;  %1006 = vmatmul.mubr.bf16.gmra.mxu1 %v1520_v57 }
  0x8a   : > { %1374 = vmatprep.mubr.msk.bf16.mxu0 %vm660_vm0, %v1521_v58  ;;  %1390 = vmatprep.mubr.msk.bf16.mxu1 %vm660_vm0, %v1523_v59 }
  0x91   : > { %886 = vmatmul.mubr.bf16.gmra.mxu0 %v1525_v60  ;;  %1014 = vmatmul.mubr.bf16.gmra.mxu1 %v1526_v61 }
  0x92   : > { %1375 = vmatprep.mubr.msk.bf16.mxu0 %vm660_vm0, %v1527_v62  ;;  %1391 = vmatprep.mubr.msk.bf16.mxu1 %vm660_vm0, %v1529_v63 }
  0x99   : > { %894 = vmatmul.mubr.bf16.gmra.mxu0 %v1531_v0  ;;  %1022 = vmatmul.mubr.bf16.gmra.mxu1 %v1532_v1 }
  0x9a   : > { %1376 = vmatprep.mubr.msk.bf16.mxu0 %vm660_vm0, %v1533_v2  ;;  %1392 = vmatprep.mubr.msk.bf16.mxu1 %vm660_vm0, %v1535_v3 }
  0xa1   : > { %902 = vmatmul.mubr.bf16.gmra.mxu0 %v1537_v4  ;;  %1030 = vmatmul.mubr.bf16.gmra.mxu1 %v1538_v5 }
  0xa2   : > { %1377 = vmatprep.mubr.msk.bf16.mxu0 %vm660_vm0, %v1539_v6  ;;  %1393 = vmatprep.mubr.msk.bf16.mxu1 %vm660_vm0, %v1541_v7 }
  0xa9   : > { %910 = vmatmul.mubr.bf16.gmra.mxu0 %v1543_v8  ;;  %1038 = vmatmul.mubr.bf16.gmra.mxu1 %v1544_v9 }
  0xf1   : > { %v791_v11 = vpop.f32.mrf.mxu0  ;;  %v919_v12 = vpop.f32.mrf.mxu1 }
  0xf2   : > { %v792_v13 = vadd.f32 %v1744_v10, %v791_v11  ;;  %v920_v14 = vadd.f32 %v1744_v10, %v919_v12 }
  0xf3   : > { %v793_v15 = vpop.f32.mrf.mxu0  ;;  %v921_v16 = vpop.f32.mrf.mxu1 }
  0xf4   : > { %v1046_v17 = vmax.f32 %v792_v13, 0.0  ;;  %v1078_v18 = vmax.f32 %v920_v14, 0.0 }
  0xf5   : > { %v794_v19 = vpop.f32.mrf.mxu0  ;;  %v922_v20 = vpop.f32.mrf.mxu1 }
  0xf6   : > { %1110 = vst [vmem:[%s1753_s20] sm:$0xff] %v1046_v17  ;;  %1142 = vst [vmem:[%s1753_s20 + $0x100] sm:$0xff] %v1078_v18  ;;  %v795_v21 = vadd.f32 %v1744_v10, %v794_v19  ;;  %v923_v22 = vadd.f32 %v1744_v10, %v922_v20 }
  0xf7   : > { %v796_v23 = vpop.f32.mrf.mxu0  ;;  %v924_v24 = vpop.f32.mrf.mxu1 }
  0xf8   : > { %v1047_v25 = vmax.f32 %v795_v21, 0.0  ;;  %v1079_v26 = vmax.f32 %v923_v22, 0.0 }
  0xf9   : > { %v799_v27 = vpop.f32.mrf.mxu0  ;;  %v927_v28 = vpop.f32.mrf.mxu1 }
  0xfa   : > { %1111 = vst [vmem:[%s1753_s20 + $0x8] sm:$0xff] %v1047_v25  ;;  %1143 = vst [vmem:[%s1753_s20 + $0x108] sm:$0xff] %v1079_v26  ;;  %v800_v29 = vadd.f32 %v1744_v10, %v799_v27  ;;  %v928_v30 = vadd.f32 %v1744_v10, %v927_v28 }
  0xfb   : > { %v801_v31 = vpop.f32.mrf.mxu0  ;;  %v929_v32 = vpop.f32.mrf.mxu1 }
  0xfc   : > { %v1048_v33 = vmax.f32 %v800_v29, 0.0  ;;  %v1080_v34 = vmax.f32 %v928_v30, 0.0 }
  0xfd   : > { %v802_v35 = vpop.f32.mrf.mxu0  ;;  %v930_v36 = vpop.f32.mrf.mxu1 }
  0xfe   : > { %1112 = vst [vmem:[%s1753_s20 + $0x10] sm:$0xff] %v1048_v33  ;;  %1144 = vst [vmem:[%s1753_s20 + $0x110] sm:$0xff] %v1080_v34  ;;  %v803_v37 = vadd.f32 %v1744_v10, %v802_v35  ;;  %v931_v38 = vadd.f32 %v1744_v10, %v930_v36 }
  0xff   : > { %v804_v39 = vpop.f32.mrf.mxu0  ;;  %v932_v40 = vpop.f32.mrf.mxu1 }
 0x100   : > { %v1049_v41 = vmax.f32 %v803_v37, 0.0  ;;  %v1081_v42 = vmax.f32 %v931_v38, 0.0 }
 0x101   : > { %v807_v43 = vpop.f32.mrf.mxu0  ;;  %v935_v44 = vpop.f32.mrf.mxu1 }
 0x102   : > { %1113 = vst [vmem:[%s1753_s20 + $0x18] sm:$0xff] %v1049_v41  ;;  %1145 = vst [vmem:[%s1753_s20 + $0x118] sm:$0xff] %v1081_v42  ;;  %v808_v45 = vadd.f32 %v1744_v10, %v807_v43  ;;  %v936_v46 = vadd.f32 %v1744_v10, %v935_v44 }
 0x103   : > { %v809_v47 = vpop.f32.mrf.mxu0  ;;  %v937_v48 = vpop.f32.mrf.mxu1 }
 0x104   : > { %v1050_v49 = vmax.f32 %v808_v45, 0.0  ;;  %v1082_v50 = vmax.f32 %v936_v46, 0.0 }
 0x105   : > { %v810_v51 = vpop.f32.mrf.mxu0  ;;  %v938_v52 = vpop.f32.mrf.mxu1 }
 0x106   : > { %1114 = vst [vmem:[%s1753_s20 + $0x20] sm:$0xff] %v1050_v49  ;;  %1146 = vst [vmem:[%s1753_s20 + $0x120] sm:$0xff] %v1082_v50  ;;  %v811_v53 = vadd.f32 %v1744_v10, %v810_v51  ;;  %v939_v54 = vadd.f32 %v1744_v10, %v938_v52 }
 0x107   : > { %v812_v55 = vpop.f32.mrf.mxu0  ;;  %v940_v56 = vpop.f32.mrf.mxu1 }
 0x108   : > { %v1051_v57 = vmax.f32 %v811_v53, 0.0  ;;  %v1083_v58 = vmax.f32 %v939_v54, 0.0 }
 0x109   : > { %v815_v59 = vpop.f32.mrf.mxu0  ;;  %v943_v60 = vpop.f32.mrf.mxu1 }
 0x10a   : > { %1115 = vst [vmem:[%s1753_s20 + $0x28] sm:$0xff] %v1051_v57  ;;  %1147 = vst [vmem:[%s1753_s20 + $0x128] sm:$0xff] %v1083_v58  ;;  %v816_v61 = vadd.f32 %v1744_v10, %v815_v59  ;;  %v944_v62 = vadd.f32 %v1744_v10, %v943_v60 }
 0x10b   : > { %v817_v63 = vpop.f32.mrf.mxu0  ;;  %v945_v0 = vpop.f32.mrf.mxu1 }
 0x10c   : > { %v1052_v1 = vmax.f32 %v816_v61, 0.0  ;;  %v1084_v2 = vmax.f32 %v944_v62, 0.0 }
 0x10d   : > { %v818_v3 = vpop.f32.mrf.mxu0  ;;  %v946_v4 = vpop.f32.mrf.mxu1 }
 0x10e   : > { %1116 = vst [vmem:[%s1753_s20 + $0x30] sm:$0xff] %v1052_v1  ;;  %1148 = vst [vmem:[%s1753_s20 + $0x130] sm:$0xff] %v1084_v2  ;;  %v819_v5 = vadd.f32 %v1744_v10, %v818_v3  ;;  %v947_v6 = vadd.f32 %v1744_v10, %v946_v4 }
 0x10f   : > { %v820_v7 = vpop.f32.mrf.mxu0  ;;  %v948_v8 = vpop.f32.mrf.mxu1 }
 0x110   : > { %v1053_v9 = vmax.f32 %v819_v5, 0.0  ;;  %v1085_v11 = vmax.f32 %v947_v6, 0.0 }
 0x111   : > { %v823_v12 = vpop.f32.mrf.mxu0  ;;  %v951_v13 = vpop.f32.mrf.mxu1 }
 0x112   : > { %1117 = vst [vmem:[%s1753_s20 + $0x38] sm:$0xff] %v1053_v9  ;;  %1149 = vst [vmem:[%s1753_s20 + $0x138] sm:$0xff] %v1085_v11  ;;  %v824_v14 = vadd.f32 %v1744_v10, %v823_v12  ;;  %v952_v15 = vadd.f32 %v1744_v10, %v951_v13 }
 0x113   : > { %v825_v16 = vpop.f32.mrf.mxu0  ;;  %v953_v17 = vpop.f32.mrf.mxu1 }
 0x114   : > { %v1054_v18 = vmax.f32 %v824_v14, 0.0  ;;  %v1086_v19 = vmax.f32 %v952_v15, 0.0 }
 0x115   : > { %v826_v20 = vpop.f32.mrf.mxu0  ;;  %v954_v21 = vpop.f32.mrf.mxu1 }
 0x116   : > { %1118 = vst [vmem:[%s1753_s20 + $0x40] sm:$0xff] %v1054_v18  ;;  %1150 = vst [vmem:[%s1753_s20 + $0x140] sm:$0xff] %v1086_v19  ;;  %v827_v22 = vadd.f32 %v1744_v10, %v826_v20  ;;  %v955_v23 = vadd.f32 %v1744_v10, %v954_v21 }
 0x117   : > { %v828_v24 = vpop.f32.mrf.mxu0  ;;  %v956_v25 = vpop.f32.mrf.mxu1 }
 0x118   : > { %v1055_v26 = vmax.f32 %v827_v22, 0.0  ;;  %v1087_v27 = vmax.f32 %v955_v23, 0.0 }
 0x119   : > { %v831_v28 = vpop.f32.mrf.mxu0  ;;  %v959_v29 = vpop.f32.mrf.mxu1 }
 0x11a   : > { %1119 = vst [vmem:[%s1753_s20 + $0x48] sm:$0xff] %v1055_v26  ;;  %1151 = vst [vmem:[%s1753_s20 + $0x148] sm:$0xff] %v1087_v27  ;;  %v832_v30 = vadd.f32 %v1744_v10, %v831_v28  ;;  %v960_v31 = vadd.f32 %v1744_v10, %v959_v29 }
 0x11b   : > { %v833_v32 = vpop.f32.mrf.mxu0  ;;  %v961_v33 = vpop.f32.mrf.mxu1 }
 0x11c   : > { %v1056_v34 = vmax.f32 %v832_v30, 0.0  ;;  %v1088_v35 = vmax.f32 %v960_v31, 0.0 }
 0x11d   : > { %v834_v36 = vpop.f32.mrf.mxu0  ;;  %v962_v37 = vpop.f32.mrf.mxu1 }
 0x11e   : > { %1120 = vst [vmem:[%s1753_s20 + $0x50] sm:$0xff] %v1056_v34  ;;  %1152 = vst [vmem:[%s1753_s20 + $0x150] sm:$0xff] %v1088_v35  ;;  %v835_v38 = vadd.f32 %v1744_v10, %v834_v36  ;;  %v963_v39 = vadd.f32 %v1744_v10, %v962_v37 }
 0x11f   : > { %v836_v40 = vpop.f32.mrf.mxu0  ;;  %v964_v41 = vpop.f32.mrf.mxu1 }
 0x120   : > { %v1057_v42 = vmax.f32 %v835_v38, 0.0  ;;  %v1089_v43 = vmax.f32 %v963_v39, 0.0 }
 0x121   : > { %v839_v44 = vpop.f32.mrf.mxu0  ;;  %v967_v45 = vpop.f32.mrf.mxu1 }
 0x122   : > { %1121 = vst [vmem:[%s1753_s20 + $0x58] sm:$0xff] %v1057_v42  ;;  %1153 = vst [vmem:[%s1753_s20 + $0x158] sm:$0xff] %v1089_v43  ;;  %v840_v46 = vadd.f32 %v1744_v10, %v839_v44  ;;  %v968_v47 = vadd.f32 %v1744_v10, %v967_v45 }
 0x123   : > { %v841_v48 = vpop.f32.mrf.mxu0  ;;  %v969_v49 = vpop.f32.mrf.mxu1 }
 0x124   : > { %v1058_v50 = vmax.f32 %v840_v46, 0.0  ;;  %v1090_v51 = vmax.f32 %v968_v47, 0.0 }
 0x125   : > { %v842_v52 = vpop.f32.mrf.mxu0  ;;  %v970_v53 = vpop.f32.mrf.mxu1 }
 0x126   : > { %1122 = vst [vmem:[%s1753_s20 + $0x60] sm:$0xff] %v1058_v50  ;;  %1154 = vst [vmem:[%s1753_s20 + $0x160] sm:$0xff] %v1090_v51  ;;  %v843_v54 = vadd.f32 %v1744_v10, %v842_v52  ;;  %v971_v55 = vadd.f32 %v1744_v10, %v970_v53 }
 0x127   : > { %v844_v56 = vpop.f32.mrf.mxu0  ;;  %v972_v57 = vpop.f32.mrf.mxu1 }
 0x128   : > { %v1059_v58 = vmax.f32 %v843_v54, 0.0  ;;  %v1091_v59 = vmax.f32 %v971_v55, 0.0 }
 0x129   : > { %v847_v60 = vpop.f32.mrf.mxu0  ;;  %v975_v61 = vpop.f32.mrf.mxu1 }
 0x12a   : > { %1123 = vst [vmem:[%s1753_s20 + $0x68] sm:$0xff] %v1059_v58  ;;  %1155 = vst [vmem:[%s1753_s20 + $0x168] sm:$0xff] %v1091_v59  ;;  %v848_v62 = vadd.f32 %v1744_v10, %v847_v60  ;;  %v976_v63 = vadd.f32 %v1744_v10, %v975_v61 }
 0x12b   : > { %v849_v0 = vpop.f32.mrf.mxu0  ;;  %v977_v1 = vpop.f32.mrf.mxu1 }
 0x12c   : > { %v1060_v2 = vmax.f32 %v848_v62, 0.0  ;;  %v1092_v3 = vmax.f32 %v976_v63, 0.0 }
 0x12d   : > { %v850_v4 = vpop.f32.mrf.mxu0  ;;  %v978_v5 = vpop.f32.mrf.mxu1 }
 0x12e   : > { %1124 = vst [vmem:[%s1753_s20 + $0x70] sm:$0xff] %v1060_v2  ;;  %1156 = vst [vmem:[%s1753_s20 + $0x170] sm:$0xff] %v1092_v3  ;;  %v851_v6 = vadd.f32 %v1744_v10, %v850_v4  ;;  %v979_v7 = vadd.f32 %v1744_v10, %v978_v5 }
 0x12f   : > { %v852_v8 = vpop.f32.mrf.mxu0  ;;  %v980_v9 = vpop.f32.mrf.mxu1 }
 0x130   : > { %v1061_v11 = vmax.f32 %v851_v6, 0.0  ;;  %v1093_v12 = vmax.f32 %v979_v7, 0.0 }
 0x131   : > { %v855_v13 = vpop.f32.mrf.mxu0  ;;  %v983_v14 = vpop.f32.mrf.mxu1 }
 0x132   : > { %1125 = vst [vmem:[%s1753_s20 + $0x78] sm:$0xff] %v1061_v11  ;;  %1157 = vst [vmem:[%s1753_s20 + $0x178] sm:$0xff] %v1093_v12  ;;  %v856_v15 = vadd.f32 %v1744_v10, %v855_v13  ;;  %v984_v16 = vadd.f32 %v1744_v10, %v983_v14 }
 0x133   : > { %v857_v17 = vpop.f32.mrf.mxu0  ;;  %v985_v18 = vpop.f32.mrf.mxu1 }
 0x134   : > { %v1062_v19 = vmax.f32 %v856_v15, 0.0  ;;  %v1094_v20 = vmax.f32 %v984_v16, 0.0 }
 0x135   : > { %v858_v21 = vpop.f32.mrf.mxu0  ;;  %v986_v22 = vpop.f32.mrf.mxu1 }
 0x136   : > { %1126 = vst [vmem:[%s1753_s20 + $0x80] sm:$0xff] %v1062_v19  ;;  %1158 = vst [vmem:[%s1753_s20 + $0x180] sm:$0xff] %v1094_v20  ;;  %v859_v23 = vadd.f32 %v1744_v10, %v858_v21  ;;  %v987_v24 = vadd.f32 %v1744_v10, %v986_v22 }
 0x137   : > { %v860_v25 = vpop.f32.mrf.mxu0  ;;  %v988_v26 = vpop.f32.mrf.mxu1 }
 0x138   : > { %v1063_v27 = vmax.f32 %v859_v23, 0.0  ;;  %v1095_v28 = vmax.f32 %v987_v24, 0.0 }
 0x139   : > { %v863_v29 = vpop.f32.mrf.mxu0  ;;  %v991_v30 = vpop.f32.mrf.mxu1 }
 0x13a   : > { %1127 = vst [vmem:[%s1753_s20 + $0x88] sm:$0xff] %v1063_v27  ;;  %1159 = vst [vmem:[%s1753_s20 + $0x188] sm:$0xff] %v1095_v28  ;;  %v864_v31 = vadd.f32 %v1744_v10, %v863_v29  ;;  %v992_v32 = vadd.f32 %v1744_v10, %v991_v30 }
 0x13b   : > { %v865_v33 = vpop.f32.mrf.mxu0  ;;  %v993_v34 = vpop.f32.mrf.mxu1 }
 0x13c   : > { %v1064_v35 = vmax.f32 %v864_v31, 0.0  ;;  %v1096_v36 = vmax.f32 %v992_v32, 0.0 }
 0x13d   : > { %v866_v37 = vpop.f32.mrf.mxu0  ;;  %v994_v38 = vpop.f32.mrf.mxu1 }
 0x13e   : > { %1128 = vst [vmem:[%s1753_s20 + $0x90] sm:$0xff] %v1064_v35  ;;  %1160 = vst [vmem:[%s1753_s20 + $0x190] sm:$0xff] %v1096_v36  ;;  %v867_v39 = vadd.f32 %v1744_v10, %v866_v37  ;;  %v995_v40 = vadd.f32 %v1744_v10, %v994_v38 }
 0x13f   : > { %v868_v41 = vpop.f32.mrf.mxu0  ;;  %v996_v42 = vpop.f32.mrf.mxu1 }
 0x140   : > { %v1065_v43 = vmax.f32 %v867_v39, 0.0  ;;  %v1097_v44 = vmax.f32 %v995_v40, 0.0 }
 0x141   : > { %v871_v45 = vpop.f32.mrf.mxu0  ;;  %v999_v46 = vpop.f32.mrf.mxu1 }
 0x142   : > { %1129 = vst [vmem:[%s1753_s20 + $0x98] sm:$0xff] %v1065_v43  ;;  %1161 = vst [vmem:[%s1753_s20 + $0x198] sm:$0xff] %v1097_v44  ;;  %v872_v47 = vadd.f32 %v1744_v10, %v871_v45  ;;  %v1000_v48 = vadd.f32 %v1744_v10, %v999_v46 }
 0x143   : > { %v873_v49 = vpop.f32.mrf.mxu0  ;;  %v1001_v50 = vpop.f32.mrf.mxu1 }
 0x144   : > { %v1066_v51 = vmax.f32 %v872_v47, 0.0  ;;  %v1098_v52 = vmax.f32 %v1000_v48, 0.0 }
 0x145   : > { %v874_v53 = vpop.f32.mrf.mxu0  ;;  %v1002_v54 = vpop.f32.mrf.mxu1 }
 0x146   : > { %1130 = vst [vmem:[%s1753_s20 + $0xa0] sm:$0xff] %v1066_v51  ;;  %1162 = vst [vmem:[%s1753_s20 + $0x1a0] sm:$0xff] %v1098_v52  ;;  %v875_v55 = vadd.f32 %v1744_v10, %v874_v53  ;;  %v1003_v56 = vadd.f32 %v1744_v10, %v1002_v54 }
 0x147   : > { %v876_v57 = vpop.f32.mrf.mxu0  ;;  %v1004_v58 = vpop.f32.mrf.mxu1 }
 0x148   : > { %v1067_v59 = vmax.f32 %v875_v55, 0.0  ;;  %v1099_v60 = vmax.f32 %v1003_v56, 0.0 }
 0x149   : > { %v879_v61 = vpop.f32.mrf.mxu0  ;;  %v1007_v62 = vpop.f32.mrf.mxu1 }
 0x14a   : > { %1131 = vst [vmem:[%s1753_s20 + $0xa8] sm:$0xff] %v1067_v59  ;;  %1163 = vst [vmem:[%s1753_s20 + $0x1a8] sm:$0xff] %v1099_v60  ;;  %v880_v63 = vadd.f32 %v1744_v10, %v879_v61  ;;  %v1008_v0 = vadd.f32 %v1744_v10, %v1007_v62 }
 0x14b   : > { %v881_v1 = vpop.f32.mrf.mxu0  ;;  %v1009_v2 = vpop.f32.mrf.mxu1 }
 0x14c   : > { %v1068_v3 = vmax.f32 %v880_v63, 0.0  ;;  %v1100_v4 = vmax.f32 %v1008_v0, 0.0 }
 0x14d   : > { %v882_v5 = vpop.f32.mrf.mxu0  ;;  %v1010_v6 = vpop.f32.mrf.mxu1 }
 0x14e   : > { %1132 = vst [vmem:[%s1753_s20 + $0xb0] sm:$0xff] %v1068_v3  ;;  %1164 = vst [vmem:[%s1753_s20 + $0x1b0] sm:$0xff] %v1100_v4  ;;  %v883_v7 = vadd.f32 %v1744_v10, %v882_v5  ;;  %v1011_v8 = vadd.f32 %v1744_v10, %v1010_v6 }
 0x14f   : > { %v884_v9 = vpop.f32.mrf.mxu0  ;;  %v1012_v11 = vpop.f32.mrf.mxu1 }
 0x150   : > { %v1069_v12 = vmax.f32 %v883_v7, 0.0  ;;  %v1101_v13 = vmax.f32 %v1011_v8, 0.0 }
 0x151   : > { %v887_v14 = vpop.f32.mrf.mxu0  ;;  %v1015_v15 = vpop.f32.mrf.mxu1 }
 0x152   : > { %1133 = vst [vmem:[%s1753_s20 + $0xb8] sm:$0xff] %v1069_v12  ;;  %1165 = vst [vmem:[%s1753_s20 + $0x1b8] sm:$0xff] %v1101_v13  ;;  %v888_v16 = vadd.f32 %v1744_v10, %v887_v14  ;;  %v1016_v17 = vadd.f32 %v1744_v10, %v1015_v15 }
 0x153   : > { %v889_v18 = vpop.f32.mrf.mxu0  ;;  %v1017_v19 = vpop.f32.mrf.mxu1 }
 0x154   : > { %v1070_v20 = vmax.f32 %v888_v16, 0.0  ;;  %v1102_v21 = vmax.f32 %v1016_v17, 0.0 }
 0x155   : > { %v890_v22 = vpop.f32.mrf.mxu0  ;;  %v1018_v23 = vpop.f32.mrf.mxu1 }
 0x156   : > { %1134 = vst [vmem:[%s1753_s20 + $0xc0] sm:$0xff] %v1070_v20  ;;  %1166 = vst [vmem:[%s1753_s20 + $0x1c0] sm:$0xff] %v1102_v21  ;;  %v891_v24 = vadd.f32 %v1744_v10, %v890_v22  ;;  %v1019_v25 = vadd.f32 %v1744_v10, %v1018_v23 }
 0x157   : > { %v892_v26 = vpop.f32.mrf.mxu0  ;;  %v1020_v27 = vpop.f32.mrf.mxu1 }
 0x158   : > { %v1071_v28 = vmax.f32 %v891_v24, 0.0  ;;  %v1103_v29 = vmax.f32 %v1019_v25, 0.0 }
 0x159   : > { %v895_v30 = vpop.f32.mrf.mxu0  ;;  %v1023_v31 = vpop.f32.mrf.mxu1 }
 0x15a   : > { %1135 = vst [vmem:[%s1753_s20 + $0xc8] sm:$0xff] %v1071_v28  ;;  %1167 = vst [vmem:[%s1753_s20 + $0x1c8] sm:$0xff] %v1103_v29  ;;  %v896_v32 = vadd.f32 %v1744_v10, %v895_v30  ;;  %v1024_v33 = vadd.f32 %v1744_v10, %v1023_v31 }
 0x15b   : > { %v897_v34 = vpop.f32.mrf.mxu0  ;;  %v1025_v35 = vpop.f32.mrf.mxu1 }
 0x15c   : > { %v1072_v36 = vmax.f32 %v896_v32, 0.0  ;;  %v1104_v37 = vmax.f32 %v1024_v33, 0.0 }
 0x15d   : > { %v898_v38 = vpop.f32.mrf.mxu0  ;;  %v1026_v39 = vpop.f32.mrf.mxu1 }
 0x15e   : > { %1136 = vst [vmem:[%s1753_s20 + $0xd0] sm:$0xff] %v1072_v36  ;;  %1168 = vst [vmem:[%s1753_s20 + $0x1d0] sm:$0xff] %v1104_v37  ;;  %v899_v40 = vadd.f32 %v1744_v10, %v898_v38  ;;  %v1027_v41 = vadd.f32 %v1744_v10, %v1026_v39 }
 0x15f   : > { %v900_v42 = vpop.f32.mrf.mxu0  ;;  %v1028_v43 = vpop.f32.mrf.mxu1 }
 0x160   : > { %v1073_v44 = vmax.f32 %v899_v40, 0.0  ;;  %v1105_v45 = vmax.f32 %v1027_v41, 0.0 }
 0x161   : > { %v903_v46 = vpop.f32.mrf.mxu0  ;;  %v1031_v47 = vpop.f32.mrf.mxu1 }
 0x162   : > { %1137 = vst [vmem:[%s1753_s20 + $0xd8] sm:$0xff] %v1073_v44  ;;  %1169 = vst [vmem:[%s1753_s20 + $0x1d8] sm:$0xff] %v1105_v45  ;;  %v904_v48 = vadd.f32 %v1744_v10, %v903_v46  ;;  %v1032_v49 = vadd.f32 %v1744_v10, %v1031_v47 }
 0x163   : > { %v905_v50 = vpop.f32.mrf.mxu0  ;;  %v1033_v51 = vpop.f32.mrf.mxu1 }
 0x164   : > { %v1074_v52 = vmax.f32 %v904_v48, 0.0  ;;  %v1106_v53 = vmax.f32 %v1032_v49, 0.0 }
 0x165   : > { %v906_v54 = vpop.f32.mrf.mxu0  ;;  %v1034_v55 = vpop.f32.mrf.mxu1 }
 0x166   : > { %1138 = vst [vmem:[%s1753_s20 + $0xe0] sm:$0xff] %v1074_v52  ;;  %1170 = vst [vmem:[%s1753_s20 + $0x1e0] sm:$0xff] %v1106_v53  ;;  %v907_v56 = vadd.f32 %v1744_v10, %v906_v54  ;;  %v1035_v57 = vadd.f32 %v1744_v10, %v1034_v55 }
 0x167   : > { %v908_v58 = vpop.f32.mrf.mxu0  ;;  %v1036_v59 = vpop.f32.mrf.mxu1 }
 0x168   : > { %v1075_v60 = vmax.f32 %v907_v56, 0.0  ;;  %v1107_v61 = vmax.f32 %v1035_v57, 0.0 }
 0x169   : > { %v911_v62 = vpop.f32.mrf.mxu0  ;;  %v1039_v63 = vpop.f32.mrf.mxu1 }
 0x16a   : > { %1139 = vst [vmem:[%s1753_s20 + $0xe8] sm:$0xff] %v1075_v60  ;;  %1171 = vst [vmem:[%s1753_s20 + $0x1e8] sm:$0xff] %v1107_v61  ;;  %v912_v0 = vadd.f32 %v1744_v10, %v911_v62  ;;  %v1040_v1 = vadd.f32 %v1744_v10, %v1039_v63 }
 0x16b   : > { %v913_v2 = vpop.f32.mrf.mxu0  ;;  %v1041_v3 = vpop.f32.mrf.mxu1 }
 0x16c   : > { %v1076_v4 = vmax.f32 %v912_v0, 0.0  ;;  %v1108_v5 = vmax.f32 %v1040_v1, 0.0 }
 0x16d   : > { %v914_v6 = vpop.f32.mrf.mxu0  ;;  %v1042_v7 = vpop.f32.mrf.mxu1 }
 0x16e   : > { %1140 = vst [vmem:[%s1753_s20 + $0xf0] sm:$0xff] %v1076_v4  ;;  %1172 = vst [vmem:[%s1753_s20 + $0x1f0] sm:$0xff] %v1108_v5  ;;  %v915_v8 = vadd.f32 %v1744_v10, %v914_v6  ;;  %v1043_v9 = vadd.f32 %v1744_v10, %v1042_v7 }
 0x16f   : > { %v916_v11 = vpop.f32.mrf.mxu0  ;;  %v1044_v12 = vpop.f32.mrf.mxu1 }
 0x170   : > { %v1077_v13 = vmax.f32 %v915_v8, 0.0  ;;  %v1109_v14 = vmax.f32 %v1043_v9, 0.0 }
 0x172   : > { %1141 = vst [vmem:[%s1753_s20 + $0xf8] sm:$0xff] %v1077_v13  ;;  %1173 = vst [vmem:[%s1753_s20 + $0x1f8] sm:$0xff] %v1109_v14 }
 0x173 PF: > { %s13_s14 = sadd.s32 1, %s1567_s14   ;;  %s1894_s12 = smov %s1563_s13 }
 0x174   : > { %p10_p5 = scmp.ge.s32.totalorder %s13_s14, 4   ;;  %s1895_s13 = smov %s1897_s15 }
 0x176   :  { %12 = sbr.rel (!%p10_p5) target bundleno = 2 (0x2), region = 68 }

// kernel: idnet_forward.12
= control target key start
LH: loop header
LB: loop body
LE: loop exit
PB: predicated region body
PF: predicated region fallthrough
CT: control target
= control target key end

     0   :  { %s2586_s12 = smov 0   ;;  %s2588_s13 = smov 0   ;;  %s3028_s0 = inlined_call_operand.vmem [shape: bf16[1024,432], index: 0, kind: input, shape index: {}]   ;;  %s3029_s1 = inlined_call_operand.vmem [shape: bf16[432,128], index: 1, kind: input, shape index: {}]   ;;  %s3030_s2 = inlined_call_operand.vmem [shape: f32[1,128], index: 2, kind: input, shape index: {}]   ;;  %s3031_s3 = inlined_call_operand.vmem [shape: f32[1024,128], index: 3, kind: output, shape index: {}]  }
   0x1   :  { %s2590_s14 = smov 0  }
   0x2 LB: > { %s25_s15 = sadd.s32 1, %s2559_s13  ;;  %p2099_p0 = scmp.ge.s32.totalorder %s2563_s14, 1  ;;  %s2563_s14 = sphi %s2590_s14, %s13_s14   ;;  %s2559_s13 = sphi %s2588_s13, %s3033_s13   ;;  %s2555_s12 = sphi %s2586_s12, %s3032_s12  }
   0x3   : > { %p27_p1 = scmp.ge.s32.totalorder %s25_s15, 2  ;;  %p170_p2 = scmp.lt.s32.totalorder %s2563_s14, 3 }
   0x5   : > { %s3035_s15 = smov (%p27_p1, %s25_s15), 0  ;;  %p171_p3 = pnand %p2099_p0, %p170_p2 }
   0x6   : > { %s2100_s28 = sshll.u32 (!%p171_p3), %s2555_s12, 6 }
   0x7   : > { %174 = sbr.rel (%p171_p3) target bundleno = 529 (0x211), region = 32  ;;  %p206_p4 = scmp.lt.s32.totalorder (!%p171_p3), %s2100_s28, 127 }
   0xc   : > { %v2321_v0 = vld [vmem:[%s3029_s1 + $0x38] sm:$0xff]   ;;  %v2565_v1 = vmov 0   ;;  %v2322_v2 = vld [vmem:[%s3029_s1 + $0x30] sm:$0xff]   ;;  %v2323_v4 = vld [vmem:[%s3029_s1 + $0x28] sm:$0xff]   ;;  %s3037_s28 = smov (!%p206_p4, %s2100_s28), 127  ;;  %vm1188_vm0 = vcmask 392192  }
   0xd   : > { %1285 = vmatprep.subr.bf16.mxu0 %v2565_v1  ;;  %1574 = vmatprep.subr.bf16.mxu1 %v2565_v1  ;;  %v2326_v3 = vld [vmem:[%s3029_s1 + $0xb8] sm:$0xff]   ;;  %v2328_v5 = vld [vmem:[%s3029_s1 + $0xb0] sm:$0xff]   ;;  %v2324_v6 = vld [vmem:[%s3029_s1 + $0x20] sm:$0xff]   ;;  %s2295_s12 = sshll.u32 %s3037_s28, 4  ;;  %s2104_s5 = sshll.u32 %s3037_s28, 3 }
   0xe   : > { %1286 = vmatpush1.bf16.msra.mxu0 %v2321_v0  ;;  %1575 = vmatpush1.bf16.msra.mxu1 %v2326_v3  ;;  %v2330_v7 = vld [vmem:[%s3029_s1 + $0xa8] sm:$0xff]   ;;  %v2325_v8 = vld [vmem:[%s3029_s1 + $0x18] sm:$0xff]   ;;  %v2332_v9 = vld [vmem:[%s3029_s1 + $0xa0] sm:$0xff]   ;;  %s2665_s22 = scalar_lea.vmem %s3028_s0, %s2295_s12  ;;  %s2867_s8 = scalar_lea.vmem %s3031_s3, %s2104_s5 }
   0xf   : > { %1287 = vmatprep.subr.bf16.mxu0 %v2565_v1  ;;  %1576 = vmatprep.subr.bf16.mxu1 %v2565_v1  ;;  %v2327_v10 = vld [vmem:[%s3029_s1 + $0x10] sm:$0xff]   ;;  %v2334_v11 = vld [vmem:[%s3029_s1 + $0x98] sm:$0xff]   ;;  %v2329_v12 = vld [vmem:[%s3029_s1 + $0x8] sm:$0xff]  }
  0x10   : > { %v2336_v13 = vld [vmem:[%s3029_s1 + $0x90] sm:$0xff]   ;;  %v2331_v14 = vld [vmem:[%s3029_s1] sm:$0xff]   ;;  %v2338_v15 = vld [vmem:[%s3029_s1 + $0x88] sm:$0xff]  }
  0x11   : > { %v2349_v16 = vld [vmem:[%s2665_s22 + $0xc] ss:$16 sps:$4 sm:$0xff]   ;;  %v2353_v17 = vld [vmem:[%s2665_s22 + $0x4] ss:$16 sps:$4 sm:$0xff]   ;;  %v2347_v27 = vld [vmem:[%s2665_s22 + $0x8] ss:$16 sps:$4 sm:$0xff]  }
  0x12   : > { %1288 = vmatpush1.bf16.msra.mxu0 %v2322_v2  ;;  %1577 = vmatpush1.bf16.msra.mxu1 %v2328_v5  ;;  %v2333_v18 = vld [vmem:[%s3029_s1 + $0x78] sm:$0xff]   ;;  %v2340_v19 = vld [vmem:[%s3029_s1 + $0x80] sm:$0xff]   ;;  %v2335_v20 = vld [vmem:[%s3029_s1 + $0x70] sm:$0xff]  }
  0x13   : > { %1289 = vmatprep.subr.bf16.mxu0 %v2565_v1  ;;  %1578 = vmatprep.subr.bf16.mxu1 %v2565_v1  ;;  %v2342_v21 = vld [vmem:[%s3029_s1 + $0xd0] sm:$0xff]   ;;  %v2337_v22 = vld [vmem:[%s3029_s1 + $0x68] sm:$0xff]   ;;  %v2339_v24 = vld [vmem:[%s3029_s1 + $0x60] sm:$0xff]  }
  0x14   : > { %2261 = vmatprep.mubr.msk.bf16.mxu1 %vm1188_vm0, %v2349_v16  ;;  %1317 = vmatprep.mubr.bf16.mxu0 %v2353_v17  ;;  %v2344_v23 = vld [vmem:[%s3029_s1 + $0xc8] sm:$0xff]   ;;  %v2346_v25 = vld [vmem:[%s3029_s1 + $0xc0] sm:$0xff]   ;;  %v2341_v26 = vld [vmem:[%s3029_s1 + $0x58] sm:$0xff]  }
  0x15   : > { %v2354_v28 = vld [vmem:[%s2665_s22 + $0x2c] ss:$16 sps:$4 sm:$0xff]   ;;  %v2343_v29 = vld [vmem:[%s3029_s1 + $0x50] sm:$0xff]   ;;  %v2356_v31 = vld [vmem:[%s2665_s22 + $0x28] ss:$16 sps:$4 sm:$0xff]  }
  0x16   : > { %1290 = vmatpush1.bf16.msra.mxu0 %v2323_v4  ;;  %1579 = vmatpush1.bf16.msra.mxu1 %v2330_v7  ;;  %v2345_v30 = vld [vmem:[%s3029_s1 + $0x48] sm:$0xff]   ;;  %v2350_v33 = vld [vmem:[%s3029_s1 + $0x40] sm:$0xff]  }
  0x17   : > { %1291 = vmatprep.subr.bf16.mxu0 %v2565_v1  ;;  %1580 = vmatprep.subr.bf16.mxu1 %v2565_v1  ;;  %v2360_v32 = vld [vmem:[%s2665_s22 + $0x4c] ss:$16 sps:$4 sm:$0xff]   ;;  %v2351_v34 = vld [vmem:[%s2665_s22] ss:$16 sps:$4 sm:$0xff]   ;;  %v2357_v35 = vld [vmem:[%s2665_s22 + $0x24] ss:$16 sps:$4 sm:$0xff]  }
  0x18   : > { %v2362_v36 = vld [vmem:[%s2665_s22 + $0x48] ss:$16 sps:$4 sm:$0xff]   ;;  %v2366_v37 = vld [vmem:[%s2665_s22 + $0x6c] ss:$16 sps:$4 sm:$0xff]   ;;  %v2359_v38 = vld [vmem:[%s2665_s22 + $0x20] ss:$16 sps:$4 sm:$0xff]  }
  0x19   : > { %v2363_v39 = vld [vmem:[%s2665_s22 + $0x44] ss:$16 sps:$4 sm:$0xff]   ;;  %v2368_v40 = vld [vmem:[%s2665_s22 + $0x68] ss:$16 sps:$4 sm:$0xff]   ;;  %v2372_v41 = vld [vmem:[%s2665_s22 + $0x8c] ss:$16 sps:$4 sm:$0xff]  }
  0x1a   : > { %1292 = vmatpush1.bf16.msra.mxu0 %v2324_v6  ;;  %1581 = vmatpush1.bf16.msra.mxu1 %v2332_v9  ;;  %v2365_v42 = vld [vmem:[%s2665_s22 + $0x40] ss:$16 sps:$4 sm:$0xff]   ;;  %v2369_v43 = vld [vmem:[%s2665_s22 + $0x64] ss:$16 sps:$4 sm:$0xff]   ;;  %v2374_v44 = vld [vmem:[%s2665_s22 + $0x88] ss:$16 sps:$4 sm:$0xff]  }
  0x1b   : > { %1293 = vmatprep.subr.bf16.mxu0 %v2565_v1  ;;  %1582 = vmatprep.subr.bf16.mxu1 %v2565_v1  ;;  %v2378_v45 = vld [vmem:[%s2665_s22 + $0xac] ss:$16 sps:$4 sm:$0xff]   ;;  %v2371_v46 = vld [vmem:[%s2665_s22 + $0x60] ss:$16 sps:$4 sm:$0xff]   ;;  %v2375_v47 = vld [vmem:[%s2665_s22 + $0x84] ss:$16 sps:$4 sm:$0xff]  }
  0x1c   : > { %v2380_v48 = vld [vmem:[%s2665_s22 + $0xa8] ss:$16 sps:$4 sm:$0xff]   ;;  %v2384_v49 = vld [vmem:[%s2665_s22 + $0xcc] ss:$16 sps:$4 sm:$0xff]   ;;  %v2377_v50 = vld [vmem:[%s2665_s22 + $0x80] ss:$16 sps:$4 sm:$0xff]  }
  0x1d   : > { %v2381_v51 = vld [vmem:[%s2665_s22 + $0xa4] ss:$16 sps:$4 sm:$0xff]   ;;  %v2386_v52 = vld [vmem:[%s2665_s22 + $0xc8] ss:$16 sps:$4 sm:$0xff]   ;;  %v2390_v53 = vld [vmem:[%s2665_s22 + $0xec] ss:$16 sps:$4 sm:$0xff]  }
  0x1e   : > { %1294 = vmatpush1.bf16.msra.mxu0 %v2325_v8  ;;  %1583 = vmatpush1.bf16.msra.mxu1 %v2334_v11  ;;  %v2383_v54 = vld [vmem:[%s2665_s22 + $0xa0] ss:$16 sps:$4 sm:$0xff]   ;;  %v2387_v55 = vld [vmem:[%s2665_s22 + $0xc4] ss:$16 sps:$4 sm:$0xff]   ;;  %v2392_v56 = vld [vmem:[%s2665_s22 + $0xe8] ss:$16 sps:$4 sm:$0xff]  }
  0x1f   : > { %1295 = vmatprep.subr.bf16.mxu0 %v2565_v1  ;;  %1584 = vmatprep.subr.bf16.mxu1 %v2565_v1  ;;  %v2396_v57 = vld [vmem:[%s2665_s22 + $0x10c] ss:$16 sps:$4 sm:$0xff]   ;;  %v2389_v58 = vld [vmem:[%s2665_s22 + $0xc0] ss:$16 sps:$4 sm:$0xff]   ;;  %v2393_v59 = vld [vmem:[%s2665_s22 + $0xe4] ss:$16 sps:$4 sm:$0xff]  }
  0x20   : > { %v2398_v60 = vld [vmem:[%s2665_s22 + $0x108] ss:$16 sps:$4 sm:$0xff]   ;;  %v2402_v61 = vld [vmem:[%s2665_s22 + $0x12c] ss:$16 sps:$4 sm:$0xff]   ;;  %v2395_v62 = vld [vmem:[%s2665_s22 + $0xe0] ss:$16 sps:$4 sm:$0xff]  }
  0x21   : > { %v2399_v63 = vld [vmem:[%s2665_s22 + $0x104] ss:$16 sps:$4 sm:$0xff]   ;;  %v2404_v0 = vld [vmem:[%s2665_s22 + $0x128] ss:$16 sps:$4 sm:$0xff]   ;;  %v2401_v2 = vld [vmem:[%s2665_s22 + $0x100] ss:$16 sps:$4 sm:$0xff]  }
  0x22   : > { %1296 = vmatpush1.bf16.msra.mxu0 %v2327_v10  ;;  %1585 = vmatpush1.bf16.msra.mxu1 %v2336_v13  ;;  %v2405_v3 = vld [vmem:[%s2665_s22 + $0x124] ss:$16 sps:$4 sm:$0xff]   ;;  %v2410_v4 = vld [vmem:[%s2665_s22 + $0x148] ss:$16 sps:$4 sm:$0xff]   ;;  %v2414_v5 = vld [vmem:[%s2665_s22 + $0x16c] ss:$16 sps:$4 sm:$0xff]  }
  0x23   : > { %1297 = vmatprep.subr.bf16.mxu0 %v2565_v1  ;;  %1586 = vmatprep.subr.bf16.mxu1 %v2565_v1  ;;  %v2407_v6 = vld [vmem:[%s2665_s22 + $0x120] ss:$16 sps:$4 sm:$0xff]   ;;  %v2411_v7 = vld [vmem:[%s2665_s22 + $0x144] ss:$16 sps:$4 sm:$0xff]   ;;  %v2416_v8 = vld [vmem:[%s2665_s22 + $0x168] ss:$16 sps:$4 sm:$0xff]  }
  0x24   : > { %v2420_v9 = vld [vmem:[%s2665_s22 + $0x18c] ss:$16 sps:$4 sm:$0xff]   ;;  %v2413_v10 = vld [vmem:[%s2665_s22 + $0x140] ss:$16 sps:$4 sm:$0xff]   ;;  %v2417_v11 = vld [vmem:[%s2665_s22 + $0x164] ss:$16 sps:$4 sm:$0xff]  }
  0x25   : > { %v2426_v13 = vld [vmem:[%s2665_s22 + $0x1ac] ss:$16 sps:$4 sm:$0xff]   ;;  %v2428_v16 = vld [vmem:[%s2665_s22 + $0x1a8] ss:$16 sps:$4 sm:$0xff]  }
  0x26   : > { %1298 = vmatpush1.bf16.msra.mxu0 %v2329_v12  ;;  %1587 = vmatpush1.bf16.msra.mxu1 %v2338_v15  ;;  %v2422_v12 = vld [vmem:[%s2665_s22 + $0x188] ss:$16 sps:$4 sm:$0xff]   ;;  %v2423_v15 = vld [vmem:[%s2665_s22 + $0x184] ss:$16 sps:$4 sm:$0xff]   ;;  %v2432_v17 = vld [vmem:[%s2665_s22 + $0x1cc] ss:$16 sps:$4 sm:$0xff]  }
  0x27   : > { %1299 = vmatprep.subr.bf16.mxu0 %v2565_v1  ;;  %1588 = vmatprep.subr.bf16.mxu1 %v2565_v1 }
  0x2a   : > { %1300 = vmatpush1.bf16.msra.mxu0 %v2331_v14  ;;  %1589 = vmatpush1.bf16.msra.mxu1 %v2340_v19  ;;  %v2419_v14 = vld [vmem:[%s2665_s22 + $0x160] ss:$16 sps:$4 sm:$0xff]   ;;  %v2429_v19 = vld [vmem:[%s2665_s22 + $0x1a4] ss:$16 sps:$4 sm:$0xff]  }
  0x2b   : > { %1301 = vmatprep.subr.bf16.mxu0 %v2565_v1  ;;  %1600 = vmatprep.subr.bf16.mxu1 %v2565_v1 }
  0x2e   : > { %1302 = vmatpush2.bf16.msra.mxu0 %v2333_v18  ;;  %1601 = vmatpush2.bf16.msra.mxu1 %v2342_v21  ;;  %v2425_v18 = vld [vmem:[%s2665_s22 + $0x180] ss:$16 sps:$4 sm:$0xff]   ;;  %v2438_v21 = vld [vmem:[%s2665_s22 + $0x1ec] ss:$16 sps:$4 sm:$0xff]  }
  0x2f   : > { %1303 = vmatprep.subr.bf16.mxu0 %v2565_v1  ;;  %1602 = vmatprep.subr.bf16.mxu1 %v2565_v1 }
  0x32   : > { %1304 = vmatpush2.bf16.msra.mxu0 %v2335_v20  ;;  %1603 = vmatpush2.bf16.msra.mxu1 %v2344_v23  ;;  %v2434_v20 = vld [vmem:[%s2665_s22 + $0x1c8] ss:$16 sps:$4 sm:$0xff]   ;;  %v2435_v23 = vld [vmem:[%s2665_s22 + $0x1c4] ss:$16 sps:$4 sm:$0xff]  }
  0x33   : > { %1305 = vmatprep.subr.bf16.mxu0 %v2565_v1  ;;  %1604 = vmatprep.subr.bf16.mxu1 %v2565_v1 }
  0x36   : > { %1306 = vmatpush2.bf16.msra.mxu0 %v2337_v22  ;;  %1605 = vmatpush2.bf16.msra.mxu1 %v2346_v25  ;;  %v2431_v22 = vld [vmem:[%s2665_s22 + $0x1a0] ss:$16 sps:$4 sm:$0xff]   ;;  %v2444_v25 = vld [vmem:[%s2665_s22 + $0x20c] ss:$16 sps:$4 sm:$0xff]  }
  0x37   : > { %1307 = vmatprep.subr.bf16.mxu0 %v2565_v1 }
  0x39   : > { %1607 = vmatmul.mubr.bf16.vlgmr.msra.gmra.mxu1 %v2347_v27  ;;  %v2441_v27 = vld [vmem:[%s2665_s22 + $0x1e4] ss:$16 sps:$4 sm:$0xff]  }
  0x3a   : > { %1308 = vmatpush2.bf16.msra.mxu0 %v2339_v24  ;;  %2262 = vmatprep.mubr.msk.bf16.mxu1 %vm1188_vm0, %v2354_v28  ;;  %v2440_v24 = vld [vmem:[%s2665_s22 + $0x1e8] ss:$16 sps:$4 sm:$0xff]  }
  0x3b   : > { %1309 = vmatprep.subr.bf16.mxu0 %v2565_v1  ;;  %v2446_v28 = vld [vmem:[%s2665_s22 + $0x208] ss:$16 sps:$4 sm:$0xff]  }
  0x3e   : > { %1310 = vmatpush2.bf16.msra.mxu0 %v2341_v26  ;;  %v2437_v26 = vld [vmem:[%s2665_s22 + $0x1c0] ss:$16 sps:$4 sm:$0xff]  }
  0x3f   : > { %1311 = vmatprep.subr.bf16.mxu0 %v2565_v1 }
  0x41   : > { %1615 = vmatmul.mubr.bf16.gmra.mxu1 %v2356_v31  ;;  %v2447_v31 = vld [vmem:[%s2665_s22 + $0x204] ss:$16 sps:$4 sm:$0xff]  }
  0x42   : > { %1312 = vmatpush2.bf16.msra.mxu0 %v2343_v29  ;;  %2263 = vmatprep.mubr.msk.bf16.mxu1 %vm1188_vm0, %v2360_v32  ;;  %v2450_v29 = vld [vmem:[%s2665_s22 + $0x22c] ss:$16 sps:$4 sm:$0xff]   ;;  %v2452_v32 = vld [vmem:[%s2665_s22 + $0x228] ss:$16 sps:$4 sm:$0xff]  }
  0x43   : > { %1313 = vmatprep.subr.bf16.mxu0 %v2565_v1 }
  0x46   : > { %1314 = vmatpush2.bf16.msra.mxu0 %v2345_v30  ;;  %v2443_v30 = vld [vmem:[%s2665_s22 + $0x1e0] ss:$16 sps:$4 sm:$0xff]  }
  0x47   : > { %1315 = vmatprep.subr.bf16.mxu0 %v2565_v1  ;;  %v2408_v1 = vld [vmem:[%s2665_s22 + $0x14c] ss:$16 sps:$4 sm:$0xff]  }
  0x49   : > { %1623 = vmatmul.mubr.bf16.gmra.mxu1 %v2362_v36  ;;  %v2458_v36 = vld [vmem:[%s2665_s22 + $0x248] ss:$16 sps:$4 sm:$0xff]  }
  0x4a   : > { %1316 = vmatpush2.bf16.msra.mxu0 %v2350_v33  ;;  %2264 = vmatprep.mubr.msk.bf16.mxu1 %vm1188_vm0, %v2366_v37  ;;  %v2456_v33 = vld [vmem:[%s2665_s22 + $0x24c] ss:$16 sps:$4 sm:$0xff]  }
  0x4b   : > { %v2462_v37 = vld [vmem:[%s2665_s22 + $0x26c] ss:$16 sps:$4 sm:$0xff]  }
  0x4d   : > { %1318 = vmatmul.mubr.bf16.vlgmr.msra.gmra.mxu0 %v2351_v34  ;;  %v2449_v34 = vld [vmem:[%s2665_s22 + $0x200] ss:$16 sps:$4 sm:$0xff]  }
  0x4e   : > { %1325 = vmatprep.mubr.bf16.mxu0 %v2357_v35  ;;  %v2453_v35 = vld [vmem:[%s2665_s22 + $0x224] ss:$16 sps:$4 sm:$0xff]  }
  0x51   : > { %1631 = vmatmul.mubr.bf16.gmra.mxu1 %v2368_v40  ;;  %v2464_v40 = vld [vmem:[%s2665_s22 + $0x268] ss:$16 sps:$4 sm:$0xff]  }
  0x52   : > { %2265 = vmatprep.mubr.msk.bf16.mxu1 %vm1188_vm0, %v2372_v41  ;;  %v2468_v41 = vld [vmem:[%s2665_s22 + $0x28c] ss:$16 sps:$4 sm:$0xff]  }
  0x55   : > { %1326 = vmatmul.mubr.bf16.gmra.mxu0 %v2359_v38  ;;  %v2455_v38 = vld [vmem:[%s2665_s22 + $0x220] ss:$16 sps:$4 sm:$0xff]  }
  0x56   : > { %1333 = vmatprep.mubr.bf16.mxu0 %v2363_v39  ;;  %v2459_v39 = vld [vmem:[%s2665_s22 + $0x244] ss:$16 sps:$4 sm:$0xff]  }
  0x59   : > { %1639 = vmatmul.mubr.bf16.gmra.mxu1 %v2374_v44  ;;  %v2470_v44 = vld [vmem:[%s2665_s22 + $0x288] ss:$16 sps:$4 sm:$0xff]  }
  0x5a   : > { %2266 = vmatprep.mubr.msk.bf16.mxu1 %vm1188_vm0, %v2378_v45  ;;  %v2474_v45 = vld [vmem:[%s2665_s22 + $0x2ac] ss:$16 sps:$4 sm:$0xff]  }
  0x5d   : > { %1334 = vmatmul.mubr.bf16.gmra.mxu0 %v2365_v42  ;;  %v2461_v42 = vld [vmem:[%s2665_s22 + $0x240] ss:$16 sps:$4 sm:$0xff]  }
  0x5e   : > { %1341 = vmatprep.mubr.bf16.mxu0 %v2369_v43  ;;  %v2465_v43 = vld [vmem:[%s2665_s22 + $0x264] ss:$16 sps:$4 sm:$0xff]  }
  0x61   : > { %1647 = vmatmul.mubr.bf16.gmra.mxu1 %v2380_v48  ;;  %v2476_v48 = vld [vmem:[%s2665_s22 + $0x2a8] ss:$16 sps:$4 sm:$0xff]  }
  0x62   : > { %2267 = vmatprep.mubr.msk.bf16.mxu1 %vm1188_vm0, %v2384_v49  ;;  %v2480_v49 = vld [vmem:[%s2665_s22 + $0x2cc] ss:$16 sps:$4 sm:$0xff]  }
  0x65   : > { %1342 = vmatmul.mubr.bf16.gmra.mxu0 %v2371_v46  ;;  %v2467_v46 = vld [vmem:[%s2665_s22 + $0x260] ss:$16 sps:$4 sm:$0xff]  }
  0x66   : > { %1349 = vmatprep.mubr.bf16.mxu0 %v2375_v47  ;;  %v2471_v47 = vld [vmem:[%s2665_s22 + $0x284] ss:$16 sps:$4 sm:$0xff]  }
  0x69   : > { %1655 = vmatmul.mubr.bf16.gmra.mxu1 %v2386_v52  ;;  %v2482_v52 = vld [vmem:[%s2665_s22 + $0x2c8] ss:$16 sps:$4 sm:$0xff]  }
  0x6a   : > { %2268 = vmatprep.mubr.msk.bf16.mxu1 %vm1188_vm0, %v2390_v53  ;;  %v2486_v53 = vld [vmem:[%s2665_s22 + $0x2ec] ss:$16 sps:$4 sm:$0xff]  }
  0x6d   : > { %1350 = vmatmul.mubr.bf16.gmra.mxu0 %v2377_v50  ;;  %v2473_v50 = vld [vmem:[%s2665_s22 + $0x280] ss:$16 sps:$4 sm:$0xff]  }
  0x6e   : > { %1357 = vmatprep.mubr.bf16.mxu0 %v2381_v51  ;;  %v2477_v51 = vld [vmem:[%s2665_s22 + $0x2a4] ss:$16 sps:$4 sm:$0xff]  }
  0x71   : > { %1663 = vmatmul.mubr.bf16.gmra.mxu1 %v2392_v56  ;;  %v2488_v56 = vld [vmem:[%s2665_s22 + $0x2e8] ss:$16 sps:$4 sm:$0xff]  }
  0x72   : > { %2269 = vmatprep.mubr.msk.bf16.mxu1 %vm1188_vm0, %v2396_v57  ;;  %v2492_v57 = vld [vmem:[%s2665_s22 + $0x30c] ss:$16 sps:$4 sm:$0xff]  }
  0x75   : > { %1358 = vmatmul.mubr.bf16.gmra.mxu0 %v2383_v54  ;;  %v2479_v54 = vld [vmem:[%s2665_s22 + $0x2a0] ss:$16 sps:$4 sm:$0xff]  }
  0x76   : > { %1365 = vmatprep.mubr.bf16.mxu0 %v2387_v55  ;;  %v2483_v55 = vld [vmem:[%s2665_s22 + $0x2c4] ss:$16 sps:$4 sm:$0xff]  }
  0x79   : > { %1671 = vmatmul.mubr.bf16.gmra.mxu1 %v2398_v60  ;;  %v2494_v60 = vld [vmem:[%s2665_s22 + $0x308] ss:$16 sps:$4 sm:$0xff]  }
  0x7a   : > { %2270 = vmatprep.mubr.msk.bf16.mxu1 %vm1188_vm0, %v2402_v61  ;;  %v2498_v61 = vld [vmem:[%s2665_s22 + $0x32c] ss:$16 sps:$4 sm:$0xff]  }
  0x7d   : > { %1366 = vmatmul.mubr.bf16.gmra.mxu0 %v2389_v58  ;;  %v2485_v58 = vld [vmem:[%s2665_s22 + $0x2c0] ss:$16 sps:$4 sm:$0xff]  }
  0x7e   : > { %1373 = vmatprep.mubr.bf16.mxu0 %v2393_v59  ;;  %v2489_v59 = vld [vmem:[%s2665_s22 + $0x2e4] ss:$16 sps:$4 sm:$0xff]  }
  0x81   : > { %1679 = vmatmul.mubr.bf16.gmra.mxu1 %v2404_v0  ;;  %v2491_v0 = vld [vmem:[%s2665_s22 + $0x2e0] ss:$16 sps:$4 sm:$0xff]  }
  0x82   : > { %2271 = vmatprep.mubr.msk.bf16.mxu1 %vm1188_vm0, %v2408_v1  ;;  %v2495_v1 = vld [vmem:[%s2665_s22 + $0x304] ss:$16 sps:$4 sm:$0xff]  }
  0x85   : > { %1374 = vmatmul.mubr.bf16.gmra.mxu0 %v2395_v62 }
  0x86   : > { %1381 = vmatprep.mubr.bf16.mxu0 %v2399_v63 }
  0x89   : > { %1687 = vmatmul.mubr.bf16.gmra.mxu1 %v2410_v4  ;;  %v2504_v4 = vld [vmem:[%s2665_s22 + $0x34c] ss:$16 sps:$4 sm:$0xff]  }
  0x8a   : > { %2272 = vmatprep.mubr.msk.bf16.mxu1 %vm1188_vm0, %v2414_v5 }
  0x8d   : > { %1382 = vmatmul.mubr.bf16.gmra.mxu0 %v2401_v2 }
  0x8e   : > { %1389 = vmatprep.mubr.bf16.mxu0 %v2405_v3  ;;  %v2500_v3 = vld [vmem:[%s2665_s22 + $0x328] ss:$16 sps:$4 sm:$0xff]  }
  0x91   : > { %1695 = vmatmul.mubr.bf16.gmra.mxu1 %v2416_v8  ;;  %v2497_v8 = vld [vmem:[%s2665_s22 + $0x300] ss:$16 sps:$4 sm:$0xff]  }
  0x92   : > { %2273 = vmatprep.mubr.msk.bf16.mxu1 %vm1188_vm0, %v2420_v9  ;;  %v2501_v9 = vld [vmem:[%s2665_s22 + $0x324] ss:$16 sps:$4 sm:$0xff]  }
  0x95   : > { %1390 = vmatmul.mubr.bf16.gmra.mxu0 %v2407_v6 }
  0x96   : > { %1397 = vmatprep.mubr.bf16.mxu0 %v2411_v7 }
  0x99   : > { %1703 = vmatmul.mubr.bf16.gmra.mxu1 %v2422_v12  ;;  %v2858_v12 = vld [vmem:[%s3030_s2] ss:$0 sm:$0xff] }
  0x9a   : > { %2274 = vmatprep.mubr.msk.bf16.mxu1 %vm1188_vm0, %v2426_v13  ;;  %v2510_v13 = vld [vmem:[%s2665_s22 + $0x36c] ss:$16 sps:$4 sm:$0xff]  }
  0x9d   : > { %1398 = vmatmul.mubr.bf16.gmra.mxu0 %v2413_v10 }
  0x9e   : > { %1405 = vmatprep.mubr.bf16.mxu0 %v2417_v11  ;;  %v2506_v11 = vld [vmem:[%s2665_s22 + $0x348] ss:$16 sps:$4 sm:$0xff]  }
  0xa1   : > { %1711 = vmatmul.mubr.bf16.gmra.mxu1 %v2428_v16 }
  0xa2   : > { %2275 = vmatprep.mubr.msk.bf16.mxu1 %vm1188_vm0, %v2432_v17 }
  0xa5   : > { %1406 = vmatmul.mubr.bf16.gmra.mxu0 %v2419_v14 }
  0xa6   : > { %1413 = vmatprep.mubr.bf16.mxu0 %v2423_v15 }
  0xa9   : > { %1719 = vmatmul.mubr.bf16.gmra.mxu1 %v2434_v20 }
  0xaa   : > { %2276 = vmatprep.mubr.msk.bf16.mxu1 %vm1188_vm0, %v2438_v21 }
  0xad   : > { %1414 = vmatmul.mubr.bf16.gmra.mxu0 %v2425_v18 }
  0xae   : > { %1421 = vmatprep.mubr.bf16.mxu0 %v2429_v19 }
  0xb1   : > { %1727 = vmatmul.mubr.bf16.gmra.mxu1 %v2440_v24 }
  0xb2   : > { %2277 = vmatprep.mubr.msk.bf16.mxu1 %vm1188_vm0, %v2444_v25  ;;  %v2507_v25 = vld [vmem:[%s2665_s22 + $0x344] ss:$16 sps:$4 sm:$0xff]  }
  0xb5   : > { %1422 = vmatmul.mubr.bf16.gmra.mxu0 %v2431_v22  ;;  %v2503_v22 = vld [vmem:[%s2665_s22 + $0x320] ss:$16 sps:$4 sm:$0xff]  }
  0xb6   : > { %1429 = vmatprep.mubr.bf16.mxu0 %v2435_v23 }
  0xb9   : > { %1735 = vmatmul.mubr.bf16.gmra.mxu1 %v2446_v28 }
  0xba   : > { %2278 = vmatprep.mubr.msk.bf16.mxu1 %vm1188_vm0, %v2450_v29  ;;  %v2516_v29 = vld [vmem:[%s2665_s22 + $0x38c] ss:$16 sps:$4 sm:$0xff]  }
  0xbd   : > { %1430 = vmatmul.mubr.bf16.gmra.mxu0 %v2437_v26 }
  0xbe   : > { %1437 = vmatprep.mubr.bf16.mxu0 %v2441_v27  ;;  %v2512_v27 = vld [vmem:[%s2665_s22 + $0x368] ss:$16 sps:$4 sm:$0xff]  }
  0xc1   : > { %1743 = vmatmul.mubr.bf16.gmra.mxu1 %v2452_v32 }
  0xc2   : > { %2279 = vmatprep.mubr.msk.bf16.mxu1 %vm1188_vm0, %v2456_v33 }
  0xc5   : > { %1438 = vmatmul.mubr.bf16.gmra.mxu0 %v2443_v30 }
  0xc6   : > { %1445 = vmatprep.mubr.bf16.mxu0 %v2447_v31 }
  0xc9   : > { %1751 = vmatmul.mubr.bf16.gmra.mxu1 %v2458_v36 }
  0xca   : > { %2280 = vmatprep.mubr.msk.bf16.mxu1 %vm1188_vm0, %v2462_v37 }
  0xcd   : > { %1446 = vmatmul.mubr.bf16.gmra.mxu0 %v2449_v34 }
  0xce   : > { %1453 = vmatprep.mubr.bf16.mxu0 %v2453_v35 }
  0xd1   : > { %1759 = vmatmul.mubr.bf16.gmra.mxu1 %v2464_v40  ;;  %v2509_v40 = vld [vmem:[%s2665_s22 + $0x340] ss:$16 sps:$4 sm:$0xff]  }
  0xd2   : > { %2281 = vmatprep.mubr.msk.bf16.mxu1 %vm1188_vm0, %v2468_v41 }
  0xd5   : > { %1454 = vmatmul.mubr.bf16.gmra.mxu0 %v2455_v38 }
  0xd6   : > { %1461 = vmatprep.mubr.bf16.mxu0 %v2459_v39 }
  0xd9   : > { %1767 = vmatmul.mubr.bf16.gmra.mxu1 %v2470_v44 }
  0xda   : > { %2282 = vmatprep.mubr.msk.bf16.mxu1 %vm1188_vm0, %v2474_v45  ;;  %v2518_v45 = vld [vmem:[%s2665_s22 + $0x388] ss:$16 sps:$4 sm:$0xff]  }
  0xdd   : > { %1462 = vmatmul.mubr.bf16.gmra.mxu0 %v2461_v42 }
  0xde   : > { %1469 = vmatprep.mubr.bf16.mxu0 %v2465_v43  ;;  %v2513_v43 = vld [vmem:[%s2665_s22 + $0x364] ss:$16 sps:$4 sm:$0xff]  }
  0xe1   : > { %1775 = vmatmul.mubr.bf16.gmra.mxu1 %v2476_v48 }
  0xe2   : > { %2283 = vmatprep.mubr.msk.bf16.mxu1 %vm1188_vm0, %v2480_v49 }
  0xe5   : > { %1470 = vmatmul.mubr.bf16.gmra.mxu0 %v2467_v46 }
  0xe6   : > { %1477 = vmatprep.mubr.bf16.mxu0 %v2471_v47  ;;  %v2522_v47 = vld [vmem:[%s2665_s22 + $0x3ac] ss:$16 sps:$4 sm:$0xff]  }
  0xe9   : > { %1783 = vmatmul.mubr.bf16.gmra.mxu1 %v2482_v52 }
  0xea   : > { %2284 = vmatprep.mubr.msk.bf16.mxu1 %vm1188_vm0, %v2486_v53 }
  0xed   : > { %1478 = vmatmul.mubr.bf16.gmra.mxu0 %v2473_v50 }
  0xee   : > { %1485 = vmatprep.mubr.bf16.mxu0 %v2477_v51 }
  0xf1   : > { %1791 = vmatmul.mubr.bf16.gmra.mxu1 %v2488_v56 }
  0xf2   : > { %2285 = vmatprep.mubr.msk.bf16.mxu1 %vm1188_vm0, %v2492_v57 }
  0xf5   : > { %1486 = vmatmul.mubr.bf16.gmra.mxu0 %v2479_v54 }
  0xf6   : > { %1493 = vmatprep.mubr.bf16.mxu0 %v2483_v55 }
  0xf9   : > { %v1608_v62 = vpop.f32.mrf.mxu1  ;;  %1799 = vmatmul.mubr.bf16.gmra.mxu1 %v2494_v60 }
  0xfa   : > { %2286 = vmatprep.mubr.msk.bf16.mxu1 %vm1188_vm0, %v2498_v61  ;;  %v2521_v61 = vld [vmem:[%s2665_s22 + $0x384] ss:$16 sps:$4 sm:$0xff]  }
  0xfb   : > { %v1610_v63 = vpop.f32.mrf.mxu1 }
  0xfc   : > { %v2524_v63 = vld [vmem:[%s2665_s22 + $0x3a8] ss:$16 sps:$4 sm:$0xff]  }
  0xfd   : > { %1494 = vmatmul.mubr.bf16.gmra.mxu0 %v2485_v58  ;;  %v1611_v2 = vpop.f32.mrf.mxu1  ;;  %v2515_v58 = vld [vmem:[%s2665_s22 + $0x360] ss:$16 sps:$4 sm:$0xff]  }
  0xfe   : > { %1501 = vmatprep.mubr.bf16.mxu0 %v2489_v59 }
  0xff   : > { %v1613_v5 = vpop.f32.mrf.mxu1 }
 0x101   : > { %v1616_v6 = vpop.f32.mrf.mxu1  ;;  %1807 = vmatmul.mubr.bf16.gmra.mxu1 %v2500_v3 }
 0x102   : > { %2287 = vmatprep.mubr.msk.bf16.mxu1 %vm1188_vm0, %v2504_v4 }
 0x103   : > { %v1618_v7 = vpop.f32.mrf.mxu1 }
 0x105   : > { %1502 = vmatmul.mubr.bf16.gmra.mxu0 %v2491_v0  ;;  %v1619_v10 = vpop.f32.mrf.mxu1 }
 0x106   : > { %1509 = vmatprep.mubr.bf16.mxu0 %v2495_v1  ;;  %v2528_v1 = vld [vmem:[%s2665_s22 + $0x3cc] ss:$16 sps:$4 sm:$0xff]  }
 0x107   : > { %v1621_v14 = vpop.f32.mrf.mxu1 }
 0x109   : > { %v1624_v17 = vpop.f32.mrf.mxu1  ;;  %1815 = vmatmul.mubr.bf16.gmra.mxu1 %v2506_v11 }
 0x10a   : > { %2288 = vmatprep.mubr.msk.bf16.mxu1 %vm1188_vm0, %v2510_v13  ;;  %v2519_v13 = vld [vmem:[%s2665_s22 + $0x380] ss:$16 sps:$4 sm:$0xff]  }
 0x10b   : > { %v1626_v20 = vpop.f32.mrf.mxu1 }
 0x10c   : > { %v2534_v20 = vld [vmem:[%s2665_s22 + $0x3ec] ss:$16 sps:$4 sm:$0xff]  }
 0x10d   : > { %v1319_v15 = vpop.f32.mrf.mxu0  ;;  %1510 = vmatmul.mubr.bf16.gmra.mxu0 %v2497_v8  ;;  %v1627_v26 = vpop.f32.mrf.mxu1 }
 0x10e   : > { %v1320_v16 = vadd.f32 %v2858_v12, %v1319_v15  ;;  %1517 = vmatprep.mubr.bf16.mxu0 %v2501_v9 }
 0x10f   : > { %v1321_v18 = vpop.f32.mrf.mxu0  ;;  %v1629_v31 = vpop.f32.mrf.mxu1 }
 0x110   : > { %v1609_v19 = vadd.f32 %v1608_v62, %v1320_v16  ;;  %v2527_v16 = vld [vmem:[%s2665_s22 + $0x3a4] ss:$16 sps:$4 sm:$0xff]   ;;  %v2530_v18 = vld [vmem:[%s2665_s22 + $0x3c8] ss:$16 sps:$4 sm:$0xff]   ;;  %v2525_v31 = vld [vmem:[%s2665_s22 + $0x3a0] ss:$16 sps:$4 sm:$0xff]  }
 0x111   : > { %v1322_v21 = vpop.f32.mrf.mxu0  ;;  %v1632_v35 = vpop.f32.mrf.mxu1  ;;  %1823 = vmatmul.mubr.bf16.gmra.mxu1 %v2512_v27 }
 0x112   : > { %v1863_v23 = vmax.f32 %v1609_v19, 0.0  ;;  %v1323_v24 = vadd.f32 %v2858_v12, %v1322_v21  ;;  %2289 = vmatprep.mubr.msk.bf16.mxu1 %vm1188_vm0, %v2516_v29 }
 0x113   : > { %v1324_v28 = vpop.f32.mrf.mxu0  ;;  %v1634_v38 = vpop.f32.mrf.mxu1 }
 0x114   : > { %1927 = vst [vmem:[%s2867_s8] sm:$0xff] %v1863_v23  ;;  %v1612_v30 = vadd.f32 %v1611_v2, %v1323_v24 }
 0x115   : > { %v1327_v32 = vpop.f32.mrf.mxu0  ;;  %1518 = vmatmul.mubr.bf16.gmra.mxu0 %v2503_v22  ;;  %v1635_v44 = vpop.f32.mrf.mxu1 }
 0x116   : > { %v1864_v33 = vmax.f32 %v1612_v30, 0.0  ;;  %v1328_v34 = vadd.f32 %v2858_v12, %v1327_v32  ;;  %1525 = vmatprep.mubr.bf16.mxu0 %v2507_v25 }
 0x117   : > { %v1329_v36 = vpop.f32.mrf.mxu0  ;;  %v1637_v49 = vpop.f32.mrf.mxu1 }
 0x118   : > { %1928 = vst [vmem:[%s2867_s8 + $0x8] sm:$0xff] %v1864_v33  ;;  %v1617_v37 = vadd.f32 %v1616_v6, %v1328_v34  ;;  %v2533_v34 = vld [vmem:[%s2665_s22 + $0x3c4] ss:$16 sps:$4 sm:$0xff]   ;;  %v2536_v36 = vld [vmem:[%s2665_s22 + $0x3e8] ss:$16 sps:$4 sm:$0xff]  }
 0x119   : > { %v1330_v39 = vpop.f32.mrf.mxu0  ;;  %v1640_v53 = vpop.f32.mrf.mxu1  ;;  %1831 = vmatmul.mubr.bf16.gmra.mxu1 %v2518_v45 }
 0x11a   : > { %v1865_v41 = vmax.f32 %v1617_v37, 0.0  ;;  %v1331_v42 = vadd.f32 %v2858_v12, %v1330_v39  ;;  %2290 = vmatprep.mubr.msk.bf16.mxu1 %vm1188_vm0, %v2522_v47 }
 0x11b   : > { %v1332_v46 = vpop.f32.mrf.mxu0  ;;  %v1642_v56 = vpop.f32.mrf.mxu1 }
 0x11c   : > { %1929 = vst [vmem:[%s2867_s8 + $0x10] sm:$0xff] %v1865_v41  ;;  %v1620_v48 = vadd.f32 %v1619_v10, %v1331_v42 }
 0x11d   : > { %v1335_v50 = vpop.f32.mrf.mxu0  ;;  %1526 = vmatmul.mubr.bf16.gmra.mxu0 %v2509_v40  ;;  %v1643_v62 = vpop.f32.mrf.mxu1 }
 0x11e   : > { %v1866_v51 = vmax.f32 %v1620_v48, 0.0  ;;  %v1336_v52 = vadd.f32 %v2858_v12, %v1335_v50  ;;  %1533 = vmatprep.mubr.bf16.mxu0 %v2513_v43  ;;  %v2531_v48 = vld [vmem:[%s2665_s22 + $0x3c0] ss:$16 sps:$4 sm:$0xff]  }
 0x11f   : > { %v1337_v54 = vpop.f32.mrf.mxu0  ;;  %v1645_v3 = vpop.f32.mrf.mxu1 }
 0x120   : > { %1930 = vst [vmem:[%s2867_s8 + $0x18] sm:$0xff] %v1866_v51  ;;  %v1625_v55 = vadd.f32 %v1624_v17, %v1336_v52  ;;  %v2539_v51 = vld [vmem:[%s2665_s22 + $0x3e4] ss:$16 sps:$4 sm:$0xff]  }
 0x121   : > { %v1338_v57 = vpop.f32.mrf.mxu0  ;;  %v1648_v7 = vpop.f32.mrf.mxu1  ;;  %1839 = vmatmul.mubr.bf16.gmra.mxu1 %v2524_v63 }
 0x122   : > { %v1867_v59 = vmax.f32 %v1625_v55, 0.0  ;;  %v1339_v60 = vadd.f32 %v2858_v12, %v1338_v57  ;;  %2291 = vmatprep.mubr.msk.bf16.mxu1 %vm1188_vm0, %v2528_v1 }
 0x123   : > { %v1340_v0 = vpop.f32.mrf.mxu0  ;;  %v1650_v10 = vpop.f32.mrf.mxu1 }
 0x124   : > { %1931 = vst [vmem:[%s2867_s8 + $0x20] sm:$0xff] %v1867_v59  ;;  %v1628_v2 = vadd.f32 %v1627_v26, %v1339_v60  ;;  %v2537_v0 = vld [vmem:[%s2665_s22 + $0x3e0] ss:$16 sps:$4 sm:$0xff]  }
 0x125   : > { %v1343_v4 = vpop.f32.mrf.mxu0  ;;  %1534 = vmatmul.mubr.bf16.gmra.mxu0 %v2515_v58  ;;  %v1651_v17 = vpop.f32.mrf.mxu1 }
 0x126   : > { %v1868_v5 = vmax.f32 %v1628_v2, 0.0  ;;  %v1344_v6 = vadd.f32 %v2858_v12, %v1343_v4  ;;  %1541 = vmatprep.mubr.bf16.mxu0 %v2521_v61 }
 0x127   : > { %v1345_v8 = vpop.f32.mrf.mxu0  ;;  %v1653_v22 = vpop.f32.mrf.mxu1 }
 0x128   : > { %1932 = vst [vmem:[%s2867_s8 + $0x28] sm:$0xff] %v1868_v5  ;;  %v1633_v9 = vadd.f32 %v1632_v35, %v1344_v6 }
 0x129   : > { %v1346_v11 = vpop.f32.mrf.mxu0  ;;  %v1656_v26 = vpop.f32.mrf.mxu1  ;;  %1847 = vmatmul.mubr.bf16.gmra.mxu1 %v2530_v18 }
 0x12a   : > { %v1869_v14 = vmax.f32 %v1633_v9, 0.0  ;;  %v1347_v15 = vadd.f32 %v2858_v12, %v1346_v11  ;;  %2292 = vmatprep.mubr.msk.bf16.mxu1 %vm1188_vm0, %v2534_v20 }
 0x12b   : > { %v1348_v19 = vpop.f32.mrf.mxu0  ;;  %v1658_v29 = vpop.f32.mrf.mxu1 }
 0x12c   : > { %1933 = vst [vmem:[%s2867_s8 + $0x30] sm:$0xff] %v1869_v14  ;;  %v1636_v21 = vadd.f32 %v1635_v44, %v1347_v15 }
 0x12d   : > { %v1351_v23 = vpop.f32.mrf.mxu0  ;;  %1542 = vmatmul.mubr.bf16.gmra.mxu0 %v2519_v13  ;;  %v1659_v35 = vpop.f32.mrf.mxu1 }
 0x12e   : > { %v1870_v24 = vmax.f32 %v1636_v21, 0.0  ;;  %v1352_v25 = vadd.f32 %v2858_v12, %v1351_v23  ;;  %1549 = vmatprep.mubr.bf16.mxu0 %v2527_v16 }
 0x12f   : > { %v1353_v27 = vpop.f32.mrf.mxu0  ;;  %v1661_v39 = vpop.f32.mrf.mxu1 }
 0x130   : > { %1934 = vst [vmem:[%s2867_s8 + $0x38] sm:$0xff] %v1870_v24  ;;  %v1641_v28 = vadd.f32 %v1640_v53, %v1352_v25 }
 0x131   : > { %v1354_v30 = vpop.f32.mrf.mxu0  ;;  %v1664_v43 = vpop.f32.mrf.mxu1  ;;  %1855 = vmatmul.mubr.bf16.gmra.mxu1 %v2536_v36 }
 0x132   : > { %v1871_v32 = vmax.f32 %v1641_v28, 0.0  ;;  %v1355_v33 = vadd.f32 %v2858_v12, %v1354_v30 }
 0x133   : > { %v1356_v37 = vpop.f32.mrf.mxu0  ;;  %v1666_v46 = vpop.f32.mrf.mxu1 }
 0x134   : > { %1935 = vst [vmem:[%s2867_s8 + $0x40] sm:$0xff] %v1871_v32  ;;  %v1644_v38 = vadd.f32 %v1643_v62, %v1355_v33 }
 0x135   : > { %v1359_v40 = vpop.f32.mrf.mxu0  ;;  %1550 = vmatmul.mubr.bf16.gmra.mxu0 %v2525_v31  ;;  %v1667_v52 = vpop.f32.mrf.mxu1 }
 0x136   : > { %v1872_v41 = vmax.f32 %v1644_v38, 0.0  ;;  %v1360_v42 = vadd.f32 %v2858_v12, %v1359_v40  ;;  %1557 = vmatprep.mubr.bf16.mxu0 %v2533_v34 }
 0x137   : > { %v1361_v44 = vpop.f32.mrf.mxu0  ;;  %v1669_v55 = vpop.f32.mrf.mxu1 }
 0x138   : > { %1936 = vst [vmem:[%s2867_s8 + $0x48] sm:$0xff] %v1872_v41  ;;  %v1649_v45 = vadd.f32 %v1648_v7, %v1360_v42 }
 0x139   : > { %v1362_v47 = vpop.f32.mrf.mxu0  ;;  %v1672_v59 = vpop.f32.mrf.mxu1 }
 0x13a   : > { %v1873_v49 = vmax.f32 %v1649_v45, 0.0  ;;  %v1363_v50 = vadd.f32 %v2858_v12, %v1362_v47 }
 0x13b   : > { %v1364_v53 = vpop.f32.mrf.mxu0  ;;  %v1674_v62 = vpop.f32.mrf.mxu1 }
 0x13c   : > { %1937 = vst [vmem:[%s2867_s8 + $0x50] sm:$0xff] %v1873_v49  ;;  %v1652_v54 = vadd.f32 %v1651_v17, %v1363_v50 }
 0x13d   : > { %v1367_v56 = vpop.f32.mrf.mxu0  ;;  %1558 = vmatmul.mubr.bf16.gmra.mxu0 %v2531_v48  ;;  %v1675_v3 = vpop.f32.mrf.mxu1 }
 0x13e   : > { %v1874_v57 = vmax.f32 %v1652_v54, 0.0  ;;  %v1368_v58 = vadd.f32 %v2858_v12, %v1367_v56  ;;  %1565 = vmatprep.mubr.bf16.mxu0 %v2539_v51 }
 0x13f   : > { %v1369_v60 = vpop.f32.mrf.mxu0  ;;  %v1677_v6 = vpop.f32.mrf.mxu1 }
 0x140   : > { %1938 = vst [vmem:[%s2867_s8 + $0x58] sm:$0xff] %v1874_v57  ;;  %v1657_v61 = vadd.f32 %v1656_v26, %v1368_v58 }
 0x141   : > { %v1370_v63 = vpop.f32.mrf.mxu0  ;;  %v1680_v10 = vpop.f32.mrf.mxu1 }
 0x142   : > { %v1875_v1 = vmax.f32 %v1657_v61, 0.0  ;;  %v1371_v2 = vadd.f32 %v2858_v12, %v1370_v63 }
 0x143   : > { %v1372_v4 = vpop.f32.mrf.mxu0  ;;  %v1682_v14 = vpop.f32.mrf.mxu1 }
 0x144   : > { %1939 = vst [vmem:[%s2867_s8 + $0x60] sm:$0xff] %v1875_v1  ;;  %v1660_v5 = vadd.f32 %v1659_v35, %v1371_v2 }
 0x145   : > { %v1375_v7 = vpop.f32.mrf.mxu0  ;;  %1566 = vmatmul.mubr.bf16.gmra.mxu0 %v2537_v0  ;;  %v1683_v18 = vpop.f32.mrf.mxu1 }
 0x146   : > { %v1876_v8 = vmax.f32 %v1660_v5, 0.0  ;;  %v1376_v9 = vadd.f32 %v2858_v12, %v1375_v7 }
 0x147   : > { %v1377_v11 = vpop.f32.mrf.mxu0  ;;  %v1685_v21 = vpop.f32.mrf.mxu1 }
 0x148   : > { %1940 = vst [vmem:[%s2867_s8 + $0x68] sm:$0xff] %v1876_v8  ;;  %v1665_v13 = vadd.f32 %v1664_v43, %v1376_v9 }
 0x149   : > { %v1378_v15 = vpop.f32.mrf.mxu0  ;;  %v1688_v25 = vpop.f32.mrf.mxu1 }
 0x14a   : > { %v1877_v16 = vmax.f32 %v1665_v13, 0.0  ;;  %v1379_v17 = vadd.f32 %v2858_v12, %v1378_v15 }
 0x14b   : > { %v1380_v19 = vpop.f32.mrf.mxu0  ;;  %v1690_v28 = vpop.f32.mrf.mxu1 }
 0x14c   : > { %1941 = vst [vmem:[%s2867_s8 + $0x70] sm:$0xff] %v1877_v16  ;;  %v1668_v20 = vadd.f32 %v1667_v52, %v1379_v17 }
 0x14d   : > { %v1383_v22 = vpop.f32.mrf.mxu0  ;;  %v1691_v32 = vpop.f32.mrf.mxu1 }
 0x14e   : > { %v1878_v23 = vmax.f32 %v1668_v20, 0.0  ;;  %v1384_v24 = vadd.f32 %v2858_v12, %v1383_v22 }
 0x14f   : > { %v1385_v26 = vpop.f32.mrf.mxu0  ;;  %v1693_v35 = vpop.f32.mrf.mxu1 }
 0x150   : > { %1942 = vst [vmem:[%s2867_s8 + $0x78] sm:$0xff] %v1878_v23  ;;  %v1673_v27 = vadd.f32 %v1672_v59, %v1384_v24 }
 0x151   : > { %v1386_v29 = vpop.f32.mrf.mxu0  ;;  %v1696_v39 = vpop.f32.mrf.mxu1 }
 0x152   : > { %v1879_v30 = vmax.f32 %v1673_v27, 0.0  ;;  %v1387_v31 = vadd.f32 %v2858_v12, %v1386_v29 }
 0x153   : > { %v1388_v33 = vpop.f32.mrf.mxu0  ;;  %v1698_v42 = vpop.f32.mrf.mxu1 }
 0x154   : > { %1943 = vst [vmem:[%s2867_s8 + $0x80] sm:$0xff] %v1879_v30  ;;  %v1676_v34 = vadd.f32 %v1675_v3, %v1387_v31 }
 0x155   : > { %v1391_v36 = vpop.f32.mrf.mxu0  ;;  %v1699_v46 = vpop.f32.mrf.mxu1 }
 0x156   : > { %v1880_v37 = vmax.f32 %v1676_v34, 0.0  ;;  %v1392_v38 = vadd.f32 %v2858_v12, %v1391_v36 }
 0x157   : > { %v1393_v40 = vpop.f32.mrf.mxu0  ;;  %v1701_v49 = vpop.f32.mrf.mxu1 }
 0x158   : > { %1944 = vst [vmem:[%s2867_s8 + $0x88] sm:$0xff] %v1880_v37  ;;  %v1681_v41 = vadd.f32 %v1680_v10, %v1392_v38 }
 0x159   : > { %v1394_v43 = vpop.f32.mrf.mxu0  ;;  %v1704_v53 = vpop.f32.mrf.mxu1 }
 0x15a   : > { %v1881_v44 = vmax.f32 %v1681_v41, 0.0  ;;  %v1395_v45 = vadd.f32 %v2858_v12, %v1394_v43 }
 0x15b   : > { %v1396_v47 = vpop.f32.mrf.mxu0  ;;  %v1706_v56 = vpop.f32.mrf.mxu1 }
 0x15c   : > { %1945 = vst [vmem:[%s2867_s8 + $0x90] sm:$0xff] %v1881_v44  ;;  %v1684_v48 = vadd.f32 %v1683_v18, %v1395_v45 }
 0x15d   : > { %v1399_v50 = vpop.f32.mrf.mxu0  ;;  %v1707_v60 = vpop.f32.mrf.mxu1 }
 0x15e   : > { %v1882_v51 = vmax.f32 %v1684_v48, 0.0  ;;  %v1400_v52 = vadd.f32 %v2858_v12, %v1399_v50 }
 0x15f   : > { %v1401_v54 = vpop.f32.mrf.mxu0  ;;  %v1709_v63 = vpop.f32.mrf.mxu1 }
 0x160   : > { %1946 = vst [vmem:[%s2867_s8 + $0x98] sm:$0xff] %v1882_v51  ;;  %v1689_v55 = vadd.f32 %v1688_v25, %v1400_v52 }
 0x161   : > { %v1402_v57 = vpop.f32.mrf.mxu0  ;;  %v1712_v3 = vpop.f32.mrf.mxu1 }
 0x162   : > { %v1883_v58 = vmax.f32 %v1689_v55, 0.0  ;;  %v1403_v59 = vadd.f32 %v2858_v12, %v1402_v57 }
 0x163   : > { %v1404_v61 = vpop.f32.mrf.mxu0  ;;  %v1714_v6 = vpop.f32.mrf.mxu1 }
 0x164   : > { %1947 = vst [vmem:[%s2867_s8 + $0xa0] sm:$0xff] %v1883_v58  ;;  %v1692_v62 = vadd.f32 %v1691_v32, %v1403_v59 }
 0x165   : > { %v1407_v0 = vpop.f32.mrf.mxu0  ;;  %v1715_v10 = vpop.f32.mrf.mxu1 }
 0x166   : > { %v1884_v1 = vmax.f32 %v1692_v62, 0.0  ;;  %v1408_v2 = vadd.f32 %v2858_v12, %v1407_v0 }
 0x167   : > { %v1409_v4 = vpop.f32.mrf.mxu0  ;;  %v1717_v14 = vpop.f32.mrf.mxu1 }
 0x168   : > { %1948 = vst [vmem:[%s2867_s8 + $0xa8] sm:$0xff] %v1884_v1  ;;  %v1697_v5 = vadd.f32 %v1696_v39, %v1408_v2 }
 0x169   : > { %v1410_v7 = vpop.f32.mrf.mxu0  ;;  %v1720_v18 = vpop.f32.mrf.mxu1 }
 0x16a   : > { %v1885_v8 = vmax.f32 %v1697_v5, 0.0  ;;  %v1411_v9 = vadd.f32 %v2858_v12, %v1410_v7 }
 0x16b   : > { %v1412_v11 = vpop.f32.mrf.mxu0  ;;  %v1722_v21 = vpop.f32.mrf.mxu1 }
 0x16c   : > { %1949 = vst [vmem:[%s2867_s8 + $0xb0] sm:$0xff] %v1885_v8  ;;  %v1700_v13 = vadd.f32 %v1699_v46, %v1411_v9 }
 0x16d   : > { %v1415_v15 = vpop.f32.mrf.mxu0  ;;  %v1723_v25 = vpop.f32.mrf.mxu1 }
 0x16e   : > { %v1886_v16 = vmax.f32 %v1700_v13, 0.0  ;;  %v1416_v17 = vadd.f32 %v2858_v12, %v1415_v15 }
 0x16f   : > { %v1417_v19 = vpop.f32.mrf.mxu0  ;;  %v1725_v28 = vpop.f32.mrf.mxu1 }
 0x170   : > { %1950 = vst [vmem:[%s2867_s8 + $0xb8] sm:$0xff] %v1886_v16  ;;  %v1705_v20 = vadd.f32 %v1704_v53, %v1416_v17 }
 0x171   : > { %v1418_v22 = vpop.f32.mrf.mxu0  ;;  %v1728_v32 = vpop.f32.mrf.mxu1 }
 0x172   : > { %v1887_v23 = vmax.f32 %v1705_v20, 0.0  ;;  %v1419_v24 = vadd.f32 %v2858_v12, %v1418_v22 }
 0x173   : > { %v1420_v26 = vpop.f32.mrf.mxu0  ;;  %v1730_v35 = vpop.f32.mrf.mxu1 }
 0x174   : > { %1951 = vst [vmem:[%s2867_s8 + $0xc0] sm:$0xff] %v1887_v23  ;;  %v1708_v27 = vadd.f32 %v1707_v60, %v1419_v24 }
 0x175   : > { %v1423_v29 = vpop.f32.mrf.mxu0  ;;  %v1731_v39 = vpop.f32.mrf.mxu1 }
 0x176   : > { %v1888_v30 = vmax.f32 %v1708_v27, 0.0  ;;  %v1424_v31 = vadd.f32 %v2858_v12, %v1423_v29 }
 0x177   : > { %v1425_v33 = vpop.f32.mrf.mxu0  ;;  %v1733_v42 = vpop.f32.mrf.mxu1 }
 0x178   : > { %1952 = vst [vmem:[%s2867_s8 + $0xc8] sm:$0xff] %v1888_v30  ;;  %v1713_v34 = vadd.f32 %v1712_v3, %v1424_v31 }
 0x179   : > { %v1426_v36 = vpop.f32.mrf.mxu0  ;;  %v1736_v46 = vpop.f32.mrf.mxu1 }
 0x17a   : > { %v1889_v37 = vmax.f32 %v1713_v34, 0.0  ;;  %v1427_v38 = vadd.f32 %v2858_v12, %v1426_v36 }
 0x17b   : > { %v1428_v40 = vpop.f32.mrf.mxu0  ;;  %v1738_v49 = vpop.f32.mrf.mxu1 }
 0x17c   : > { %1953 = vst [vmem:[%s2867_s8 + $0xd0] sm:$0xff] %v1889_v37  ;;  %v1716_v41 = vadd.f32 %v1715_v10, %v1427_v38 }
 0x17d   : > { %v1431_v43 = vpop.f32.mrf.mxu0  ;;  %v1739_v53 = vpop.f32.mrf.mxu1 }
 0x17e   : > { %v1890_v44 = vmax.f32 %v1716_v41, 0.0  ;;  %v1432_v45 = vadd.f32 %v2858_v12, %v1431_v43 }
 0x17f   : > { %v1433_v47 = vpop.f32.mrf.mxu0  ;;  %v1741_v56 = vpop.f32.mrf.mxu1 }
 0x180   : > { %1954 = vst [vmem:[%s2867_s8 + $0xd8] sm:$0xff] %v1890_v44  ;;  %v1721_v48 = vadd.f32 %v1720_v18, %v1432_v45 }
 0x181   : > { %v1434_v50 = vpop.f32.mrf.mxu0  ;;  %v1744_v60 = vpop.f32.mrf.mxu1 }
 0x182   : > { %v1891_v51 = vmax.f32 %v1721_v48, 0.0  ;;  %v1435_v52 = vadd.f32 %v2858_v12, %v1434_v50 }
 0x183   : > { %v1436_v54 = vpop.f32.mrf.mxu0  ;;  %v1746_v63 = vpop.f32.mrf.mxu1 }
 0x184   : > { %1955 = vst [vmem:[%s2867_s8 + $0xe0] sm:$0xff] %v1891_v51  ;;  %v1724_v55 = vadd.f32 %v1723_v25, %v1435_v52 }
 0x185   : > { %v1439_v57 = vpop.f32.mrf.mxu0  ;;  %v1747_v3 = vpop.f32.mrf.mxu1 }
 0x186   : > { %v1892_v58 = vmax.f32 %v1724_v55, 0.0  ;;  %v1440_v59 = vadd.f32 %v2858_v12, %v1439_v57 }
 0x187   : > { %v1441_v61 = vpop.f32.mrf.mxu0  ;;  %v1749_v6 = vpop.f32.mrf.mxu1 }
 0x188   : > { %1956 = vst [vmem:[%s2867_s8 + $0xe8] sm:$0xff] %v1892_v58  ;;  %v1729_v62 = vadd.f32 %v1728_v32, %v1440_v59 }
 0x189   : > { %v1442_v0 = vpop.f32.mrf.mxu0  ;;  %v1752_v10 = vpop.f32.mrf.mxu1 }
 0x18a   : > { %v1893_v1 = vmax.f32 %v1729_v62, 0.0  ;;  %v1443_v2 = vadd.f32 %v2858_v12, %v1442_v0 }
 0x18b   : > { %v1444_v4 = vpop.f32.mrf.mxu0  ;;  %v1754_v14 = vpop.f32.mrf.mxu1 }
 0x18c   : > { %1957 = vst [vmem:[%s2867_s8 + $0xf0] sm:$0xff] %v1893_v1  ;;  %v1732_v5 = vadd.f32 %v1731_v39, %v1443_v2 }
 0x18d   : > { %v1447_v7 = vpop.f32.mrf.mxu0  ;;  %v1755_v18 = vpop.f32.mrf.mxu1 }
 0x18e   : > { %v1894_v8 = vmax.f32 %v1732_v5, 0.0  ;;  %v1448_v9 = vadd.f32 %v2858_v12, %v1447_v7 }
 0x18f   : > { %v1449_v11 = vpop.f32.mrf.mxu0  ;;  %v1757_v21 = vpop.f32.mrf.mxu1 }
 0x190   : > { %1958 = vst [vmem:[%s2867_s8 + $0xf8] sm:$0xff] %v1894_v8  ;;  %v1737_v13 = vadd.f32 %v1736_v46, %v1448_v9 }
 0x191   : > { %v1450_v15 = vpop.f32.mrf.mxu0  ;;  %v1760_v25 = vpop.f32.mrf.mxu1 }
 0x192   : > { %v1895_v16 = vmax.f32 %v1737_v13, 0.0  ;;  %v1451_v17 = vadd.f32 %v2858_v12, %v1450_v15 }
 0x193   : > { %v1452_v19 = vpop.f32.mrf.mxu0  ;;  %v1762_v28 = vpop.f32.mrf.mxu1 }
 0x194   : > { %1959 = vst [vmem:[%s2867_s8 + $0x100] sm:$0xff] %v1895_v16  ;;  %v1740_v20 = vadd.f32 %v1739_v53, %v1451_v17 }
 0x195   : > { %v1455_v22 = vpop.f32.mrf.mxu0  ;;  %v1763_v32 = vpop.f32.mrf.mxu1 }
 0x196   : > { %v1896_v23 = vmax.f32 %v1740_v20, 0.0  ;;  %v1456_v24 = vadd.f32 %v2858_v12, %v1455_v22 }
 0x197   : > { %v1457_v26 = vpop.f32.mrf.mxu0  ;;  %v1765_v35 = vpop.f32.mrf.mxu1 }
 0x198   : > { %1960 = vst [vmem:[%s2867_s8 + $0x108] sm:$0xff] %v1896_v23  ;;  %v1745_v27 = vadd.f32 %v1744_v60, %v1456_v24 }
 0x199   : > { %v1458_v29 = vpop.f32.mrf.mxu0  ;;  %v1768_v39 = vpop.f32.mrf.mxu1 }
 0x19a   : > { %v1897_v30 = vmax.f32 %v1745_v27, 0.0  ;;  %v1459_v31 = vadd.f32 %v2858_v12, %v1458_v29 }
 0x19b   : > { %v1460_v33 = vpop.f32.mrf.mxu0  ;;  %v1770_v42 = vpop.f32.mrf.mxu1 }
 0x19c   : > { %1961 = vst [vmem:[%s2867_s8 + $0x110] sm:$0xff] %v1897_v30  ;;  %v1748_v34 = vadd.f32 %v1747_v3, %v1459_v31 }
 0x19d   : > { %v1463_v36 = vpop.f32.mrf.mxu0  ;;  %v1771_v46 = vpop.f32.mrf.mxu1 }
 0x19e   : > { %v1898_v37 = vmax.f32 %v1748_v34, 0.0  ;;  %v1464_v38 = vadd.f32 %v2858_v12, %v1463_v36 }
 0x19f   : > { %v1465_v40 = vpop.f32.mrf.mxu0  ;;  %v1773_v49 = vpop.f32.mrf.mxu1 }
 0x1a0   : > { %1962 = vst [vmem:[%s2867_s8 + $0x118] sm:$0xff] %v1898_v37  ;;  %v1753_v41 = vadd.f32 %v1752_v10, %v1464_v38 }
 0x1a1   : > { %v1466_v43 = vpop.f32.mrf.mxu0  ;;  %v1776_v53 = vpop.f32.mrf.mxu1 }
 0x1a2   : > { %v1899_v44 = vmax.f32 %v1753_v41, 0.0  ;;  %v1467_v45 = vadd.f32 %v2858_v12, %v1466_v43 }
 0x1a3   : > { %v1468_v47 = vpop.f32.mrf.mxu0  ;;  %v1778_v56 = vpop.f32.mrf.mxu1 }
 0x1a4   : > { %1963 = vst [vmem:[%s2867_s8 + $0x120] sm:$0xff] %v1899_v44  ;;  %v1756_v48 = vadd.f32 %v1755_v18, %v1467_v45 }
 0x1a5   : > { %v1471_v50 = vpop.f32.mrf.mxu0  ;;  %v1779_v60 = vpop.f32.mrf.mxu1 }
 0x1a6   : > { %v1900_v51 = vmax.f32 %v1756_v48, 0.0  ;;  %v1472_v52 = vadd.f32 %v2858_v12, %v1471_v50 }
 0x1a7   : > { %v1473_v54 = vpop.f32.mrf.mxu0  ;;  %v1781_v63 = vpop.f32.mrf.mxu1 }
 0x1a8   : > { %1964 = vst [vmem:[%s2867_s8 + $0x128] sm:$0xff] %v1900_v51  ;;  %v1761_v55 = vadd.f32 %v1760_v25, %v1472_v52 }
 0x1a9   : > { %v1474_v57 = vpop.f32.mrf.mxu0  ;;  %v1784_v3 = vpop.f32.mrf.mxu1 }
 0x1aa   : > { %v1901_v58 = vmax.f32 %v1761_v55, 0.0  ;;  %v1475_v59 = vadd.f32 %v2858_v12, %v1474_v57 }
 0x1ab   : > { %v1476_v61 = vpop.f32.mrf.mxu0  ;;  %v1786_v6 = vpop.f32.mrf.mxu1 }
 0x1ac   : > { %1965 = vst [vmem:[%s2867_s8 + $0x130] sm:$0xff] %v1901_v58  ;;  %v1764_v62 = vadd.f32 %v1763_v32, %v1475_v59 }
 0x1ad   : > { %v1479_v0 = vpop.f32.mrf.mxu0  ;;  %v1787_v10 = vpop.f32.mrf.mxu1 }
 0x1ae   : > { %v1902_v1 = vmax.f32 %v1764_v62, 0.0  ;;  %v1480_v2 = vadd.f32 %v2858_v12, %v1479_v0 }
 0x1af   : > { %v1481_v4 = vpop.f32.mrf.mxu0  ;;  %v1789_v14 = vpop.f32.mrf.mxu1 }
 0x1b0   : > { %1966 = vst [vmem:[%s2867_s8 + $0x138] sm:$0xff] %v1902_v1  ;;  %v1769_v5 = vadd.f32 %v1768_v39, %v1480_v2 }
 0x1b1   : > { %v1482_v7 = vpop.f32.mrf.mxu0  ;;  %v1792_v18 = vpop.f32.mrf.mxu1 }
 0x1b2   : > { %v1903_v8 = vmax.f32 %v1769_v5, 0.0  ;;  %v1483_v9 = vadd.f32 %v2858_v12, %v1482_v7 }
 0x1b3   : > { %v1484_v11 = vpop.f32.mrf.mxu0  ;;  %v1794_v21 = vpop.f32.mrf.mxu1 }
 0x1b4   : > { %1967 = vst [vmem:[%s2867_s8 + $0x140] sm:$0xff] %v1903_v8  ;;  %v1772_v13 = vadd.f32 %v1771_v46, %v1483_v9 }
 0x1b5   : > { %v1487_v15 = vpop.f32.mrf.mxu0  ;;  %v1795_v25 = vpop.f32.mrf.mxu1 }
 0x1b6   : > { %v1904_v16 = vmax.f32 %v1772_v13, 0.0  ;;  %v1488_v17 = vadd.f32 %v2858_v12, %v1487_v15 }
 0x1b7   : > { %v1489_v19 = vpop.f32.mrf.mxu0  ;;  %v1797_v28 = vpop.f32.mrf.mxu1 }
 0x1b8   : > { %1968 = vst [vmem:[%s2867_s8 + $0x148] sm:$0xff] %v1904_v16  ;;  %v1777_v20 = vadd.f32 %v1776_v53, %v1488_v17 }
 0x1b9   : > { %v1490_v22 = vpop.f32.mrf.mxu0  ;;  %v1800_v32 = vpop.f32.mrf.mxu1 }
 0x1ba   : > { %v1905_v23 = vmax.f32 %v1777_v20, 0.0  ;;  %v1491_v24 = vadd.f32 %v2858_v12, %v1490_v22 }
 0x1bb   : > { %v1492_v26 = vpop.f32.mrf.mxu0  ;;  %v1802_v35 = vpop.f32.mrf.mxu1 }
 0x1bc   : > { %1969 = vst [vmem:[%s2867_s8 + $0x150] sm:$0xff] %v1905_v23  ;;  %v1780_v27 = vadd.f32 %v1779_v60, %v1491_v24 }
 0x1bd   : > { %v1495_v29 = vpop.f32.mrf.mxu0  ;;  %v1803_v39 = vpop.f32.mrf.mxu1 }
 0x1be   : > { %v1906_v30 = vmax.f32 %v1780_v27, 0.0  ;;  %v1496_v31 = vadd.f32 %v2858_v12, %v1495_v29 }
 0x1bf   : > { %v1497_v33 = vpop.f32.mrf.mxu0  ;;  %v1805_v42 = vpop.f32.mrf.mxu1 }
 0x1c0   : > { %1970 = vst [vmem:[%s2867_s8 + $0x158] sm:$0xff] %v1906_v30  ;;  %v1785_v34 = vadd.f32 %v1784_v3, %v1496_v31 }
 0x1c1   : > { %v1498_v36 = vpop.f32.mrf.mxu0  ;;  %v1808_v46 = vpop.f32.mrf.mxu1 }
 0x1c2   : > { %v1907_v37 = vmax.f32 %v1785_v34, 0.0  ;;  %v1499_v38 = vadd.f32 %v2858_v12, %v1498_v36 }
 0x1c3   : > { %v1500_v40 = vpop.f32.mrf.mxu0  ;;  %v1810_v49 = vpop.f32.mrf.mxu1 }
 0x1c4   : > { %1971 = vst [vmem:[%s2867_s8 + $0x160] sm:$0xff] %v1907_v37  ;;  %v1788_v41 = vadd.f32 %v1787_v10, %v1499_v38 }
 0x1c5   : > { %v1503_v43 = vpop.f32.mrf.mxu0  ;;  %v1811_v53 = vpop.f32.mrf.mxu1 }
 0x1c6   : > { %v1908_v44 = vmax.f32 %v1788_v41, 0.0  ;;  %v1504_v45 = vadd.f32 %v2858_v12, %v1503_v43 }
 0x1c7   : > { %v1505_v47 = vpop.f32.mrf.mxu0  ;;  %v1813_v56 = vpop.f32.mrf.mxu1 }
 0x1c8   : > { %1972 = vst [vmem:[%s2867_s8 + $0x168] sm:$0xff] %v1908_v44  ;;  %v1793_v48 = vadd.f32 %v1792_v18, %v1504_v45 }
 0x1c9   : > { %v1506_v50 = vpop.f32.mrf.mxu0  ;;  %v1816_v60 = vpop.f32.mrf.mxu1 }
 0x1ca   : > { %v1909_v51 = vmax.f32 %v1793_v48, 0.0  ;;  %v1507_v52 = vadd.f32 %v2858_v12, %v1506_v50 }
 0x1cb   : > { %v1508_v54 = vpop.f32.mrf.mxu0  ;;  %v1818_v63 = vpop.f32.mrf.mxu1 }
 0x1cc   : > { %1973 = vst [vmem:[%s2867_s8 + $0x170] sm:$0xff] %v1909_v51  ;;  %v1796_v55 = vadd.f32 %v1795_v25, %v1507_v52 }
 0x1cd   : > { %v1511_v57 = vpop.f32.mrf.mxu0  ;;  %v1819_v3 = vpop.f32.mrf.mxu1 }
 0x1ce   : > { %v1910_v58 = vmax.f32 %v1796_v55, 0.0  ;;  %v1512_v59 = vadd.f32 %v2858_v12, %v1511_v57 }
 0x1cf   : > { %v1513_v61 = vpop.f32.mrf.mxu0  ;;  %v1821_v6 = vpop.f32.mrf.mxu1 }
 0x1d0   : > { %1974 = vst [vmem:[%s2867_s8 + $0x178] sm:$0xff] %v1910_v58  ;;  %v1801_v62 = vadd.f32 %v1800_v32, %v1512_v59 }
 0x1d1   : > { %v1514_v0 = vpop.f32.mrf.mxu0  ;;  %v1824_v10 = vpop.f32.mrf.mxu1 }
 0x1d2   : > { %v1911_v1 = vmax.f32 %v1801_v62, 0.0  ;;  %v1515_v2 = vadd.f32 %v2858_v12, %v1514_v0 }
 0x1d3   : > { %v1516_v4 = vpop.f32.mrf.mxu0  ;;  %v1826_v14 = vpop.f32.mrf.mxu1 }
 0x1d4   : > { %1975 = vst [vmem:[%s2867_s8 + $0x180] sm:$0xff] %v1911_v1  ;;  %v1804_v5 = vadd.f32 %v1803_v39, %v1515_v2  ;;  %v2540_v2 = vld [vmem:[%s3030_s2] ss:$0 sm:$0xff] }
 0x1d5   : > { %v1519_v7 = vpop.f32.mrf.mxu0  ;;  %v1827_v18 = vpop.f32.mrf.mxu1 }
 0x1d6   : > { %v1912_v8 = vmax.f32 %v1804_v5, 0.0  ;;  %v1520_v9 = vadd.f32 %v2858_v12, %v1519_v7 }
 0x1d7   : > { %v1521_v11 = vpop.f32.mrf.mxu0  ;;  %v1829_v21 = vpop.f32.mrf.mxu1 }
 0x1d8   : > { %1976 = vst [vmem:[%s2867_s8 + $0x188] sm:$0xff] %v1912_v8  ;;  %v1809_v13 = vadd.f32 %v1808_v46, %v1520_v9 }
 0x1d9   : > { %v1522_v15 = vpop.f32.mrf.mxu0  ;;  %v1832_v25 = vpop.f32.mrf.mxu1 }
 0x1da   : > { %v1913_v16 = vmax.f32 %v1809_v13, 0.0  ;;  %v1523_v17 = vadd.f32 %v2858_v12, %v1522_v15 }
 0x1db   : > { %v1524_v19 = vpop.f32.mrf.mxu0  ;;  %v1834_v28 = vpop.f32.mrf.mxu1 }
 0x1dc   : > { %1977 = vst [vmem:[%s2867_s8 + $0x190] sm:$0xff] %v1913_v16  ;;  %v1812_v20 = vadd.f32 %v1811_v53, %v1523_v17 }
 0x1dd   : > { %v1527_v22 = vpop.f32.mrf.mxu0  ;;  %v1835_v32 = vpop.f32.mrf.mxu1 }
 0x1de   : > { %v1914_v23 = vmax.f32 %v1812_v20, 0.0  ;;  %v1528_v24 = vadd.f32 %v2858_v12, %v1527_v22 }
 0x1df   : > { %v1529_v26 = vpop.f32.mrf.mxu0  ;;  %v1837_v35 = vpop.f32.mrf.mxu1 }
 0x1e0   : > { %1978 = vst [vmem:[%s2867_s8 + $0x198] sm:$0xff] %v1914_v23  ;;  %v1817_v27 = vadd.f32 %v1816_v60, %v1528_v24 }
 0x1e1   : > { %v1530_v29 = vpop.f32.mrf.mxu0  ;;  %v1840_v39 = vpop.f32.mrf.mxu1 }
 0x1e2   : > { %v1915_v30 = vmax.f32 %v1817_v27, 0.0  ;;  %v1531_v31 = vadd.f32 %v2858_v12, %v1530_v29 }
 0x1e3   : > { %v1532_v33 = vpop.f32.mrf.mxu0  ;;  %v1842_v42 = vpop.f32.mrf.mxu1 }
 0x1e4   : > { %1979 = vst [vmem:[%s2867_s8 + $0x1a0] sm:$0xff] %v1915_v30  ;;  %v1820_v34 = vadd.f32 %v1819_v3, %v1531_v31 }
 0x1e5   : > { %v1535_v36 = vpop.f32.mrf.mxu0  ;;  %v1843_v46 = vpop.f32.mrf.mxu1 }
 0x1e6   : > { %v1916_v37 = vmax.f32 %v1820_v34, 0.0  ;;  %v1536_v38 = vadd.f32 %v2858_v12, %v1535_v36 }
 0x1e7   : > { %v1537_v40 = vpop.f32.mrf.mxu0  ;;  %v1845_v49 = vpop.f32.mrf.mxu1 }
 0x1e8   : > { %1980 = vst [vmem:[%s2867_s8 + $0x1a8] sm:$0xff] %v1916_v37  ;;  %v1825_v41 = vadd.f32 %v1824_v10, %v1536_v38 }
 0x1e9   : > { %v1538_v43 = vpop.f32.mrf.mxu0  ;;  %v1848_v53 = vpop.f32.mrf.mxu1 }
 0x1ea   : > { %v1917_v44 = vmax.f32 %v1825_v41, 0.0  ;;  %v1539_v45 = vadd.f32 %v2858_v12, %v1538_v43 }
 0x1eb   : > { %v1540_v47 = vpop.f32.mrf.mxu0  ;;  %v1850_v56 = vpop.f32.mrf.mxu1 }
 0x1ec   : > { %1981 = vst [vmem:[%s2867_s8 + $0x1b0] sm:$0xff] %v1917_v44  ;;  %v1828_v48 = vadd.f32 %v1827_v18, %v1539_v45 }
 0x1ed   : > { %v1543_v50 = vpop.f32.mrf.mxu0  ;;  %v1851_v60 = vpop.f32.mrf.mxu1 }
 0x1ee   : > { %v1918_v51 = vmax.f32 %v1828_v48, 0.0  ;;  %v1544_v52 = vadd.f32 %v2858_v12, %v1543_v50 }
 0x1ef   : > { %v1545_v54 = vpop.f32.mrf.mxu0  ;;  %v1853_v63 = vpop.f32.mrf.mxu1 }
 0x1f0   : > { %1982 = vst [vmem:[%s2867_s8 + $0x1b8] sm:$0xff] %v1918_v51  ;;  %v1833_v55 = vadd.f32 %v1832_v25, %v1544_v52 }
 0x1f1   : > { %v1546_v57 = vpop.f32.mrf.mxu0  ;;  %v1856_v4 = vpop.f32.mrf.mxu1 }
 0x1f2   : > { %v1919_v58 = vmax.f32 %v1833_v55, 0.0  ;;  %v1547_v59 = vadd.f32 %v2858_v12, %v1546_v57 }
 0x1f3   : > { %v1548_v61 = vpop.f32.mrf.mxu0  ;;  %v1858_v7 = vpop.f32.mrf.mxu1 }
 0x1f4   : > { %1983 = vst [vmem:[%s2867_s8 + $0x1c0] sm:$0xff] %v1919_v58  ;;  %v1836_v62 = vadd.f32 %v1835_v32, %v1547_v59 }
 0x1f5   : > { %v1551_v0 = vpop.f32.mrf.mxu0  ;;  %v1859_v10 = vpop.f32.mrf.mxu1 }
 0x1f6   : > { %v1920_v1 = vmax.f32 %v1836_v62, 0.0  ;;  %v1552_v3 = vadd.f32 %v2540_v2, %v1551_v0 }
 0x1f7   : > { %v1553_v5 = vpop.f32.mrf.mxu0  ;;  %v1861_v14 = vpop.f32.mrf.mxu1 }
 0x1f8   : > { %1984 = vst [vmem:[%s2867_s8 + $0x1c8] sm:$0xff] %v1920_v1  ;;  %v1841_v6 = vadd.f32 %v1840_v39, %v1552_v3 }
 0x1f9   : > { %v1554_v12 = vpop.f32.mrf.mxu0 }
 0x1fa   : > { %v1921_v8 = vmax.f32 %v1841_v6, 0.0  ;;  %v1555_v9 = vadd.f32 %v2540_v2, %v1554_v12 }
 0x1fb   : > { %v1556_v11 = vpop.f32.mrf.mxu0 }
 0x1fc   : > { %1985 = vst [vmem:[%s2867_s8 + $0x1d0] sm:$0xff] %v1921_v8  ;;  %v1844_v13 = vadd.f32 %v1843_v46, %v1555_v9 }
 0x1fd   : > { %v1559_v15 = vpop.f32.mrf.mxu0 }
 0x1fe   : > { %v1922_v16 = vmax.f32 %v1844_v13, 0.0  ;;  %v1560_v17 = vadd.f32 %v2540_v2, %v1559_v15 }
 0x1ff   : > { %v1561_v18 = vpop.f32.mrf.mxu0 }
 0x200   : > { %1986 = vst [vmem:[%s2867_s8 + $0x1d8] sm:$0xff] %v1922_v16  ;;  %v1849_v19 = vadd.f32 %v1848_v53, %v1560_v17 }
 0x201   : > { %v1562_v20 = vpop.f32.mrf.mxu0 }
 0x202   : > { %v1923_v21 = vmax.f32 %v1849_v19, 0.0  ;;  %v1563_v22 = vadd.f32 %v2540_v2, %v1562_v20 }
 0x203   : > { %v1564_v23 = vpop.f32.mrf.mxu0 }
 0x204   : > { %1987 = vst [vmem:[%s2867_s8 + $0x1e0] sm:$0xff] %v1923_v21  ;;  %v1852_v24 = vadd.f32 %v1851_v60, %v1563_v22 }
 0x205   : > { %v1567_v25 = vpop.f32.mrf.mxu0 }
 0x206   : > { %v1924_v26 = vmax.f32 %v1852_v24, 0.0  ;;  %v1568_v27 = vadd.f32 %v2540_v2, %v1567_v25 }
 0x207   : > { %v1569_v28 = vpop.f32.mrf.mxu0 }
 0x208   : > { %1988 = vst [vmem:[%s2867_s8 + $0x1e8] sm:$0xff] %v1924_v26  ;;  %v1857_v29 = vadd.f32 %v1856_v4, %v1568_v27 }
 0x209   : > { %v1570_v30 = vpop.f32.mrf.mxu0 }
 0x20a   : > { %v1925_v31 = vmax.f32 %v1857_v29, 0.0  ;;  %v1571_v32 = vadd.f32 %v2540_v2, %v1570_v30 }
 0x20b   : > { %v1572_v33 = vpop.f32.mrf.mxu0 }
 0x20c   : > { %1989 = vst [vmem:[%s2867_s8 + $0x1f0] sm:$0xff] %v1925_v31  ;;  %v1860_v34 = vadd.f32 %v1859_v10, %v1571_v32 }
 0x20e   : > { %v1926_v35 = vmax.f32 %v1860_v34, 0.0 }
 0x210   : > { %1990 = vst [vmem:[%s2867_s8 + $0x1f8] sm:$0xff] %v1926_v35 }
 0x211 PF: > { %s13_s14 = sadd.s32 1, %s2563_s14   ;;  %s3032_s12 = smov %s2559_s13 }
 0x212   : > { %p10_p5 = scmp.ge.s32.totalorder %s13_s14, 4   ;;  %s3033_s13 = smov %s3035_s15 }
 0x214   :  { %12 = sbr.rel (!%p10_p5) target bundleno = 2 (0x2), region = 68 }

// kernel: idnet_forward.13
= control target key start
LH: loop header
LB: loop body
LE: loop exit
PB: predicated region body
PF: predicated region fallthrough
CT: control target
= control target key end

     0   :  { %vm372_vm0 = vcmask 523264   ;;  %s884_s1 = inlined_call_operand.vmem [shape: bf16[576,128], index: 1, kind: input, shape index: {}]   ;;  %s885_s0 = inlined_call_operand.vmem [shape: bf16[32,576], index: 0, kind: input, shape index: {}]   ;;  %s886_s2 = inlined_call_operand.vmem [shape: f32[1,128], index: 2, kind: input, shape index: {}]   ;;  %s887_s3 = inlined_call_operand.vmem [shape: f32[32,128], index: 3, kind: output, shape index: {}]  }
   0x1   :  { %v661_v0 = vld [vmem:[%s884_s1 + $0x78] sm:$0xff]   ;;  %v665_v4 = vld [vmem:[%s884_s1 + $0x70] sm:$0xff]   ;;  %v669_v8 = vld [vmem:[%s884_s1 + $0x68] sm:$0xff]  }
   0x2   :  { %v662_v1 = vld [vmem:[%s884_s1 + $0xf8] sm:$0xff]   ;;  %587 = vmatprep.subr.bf16.mxu0 %v661_v0  ;;  %v666_v5 = vld [vmem:[%s884_s1 + $0xf0] sm:$0xff]   ;;  %v670_v9 = vld [vmem:[%s884_s1 + $0xe8] sm:$0xff]  }
   0x3   :  { %v663_v2 = vld [vmem:[%s884_s1 + $0x38] sm:$0xff]   ;;  %615 = vmatprep.subr.bf16.mxu1 %v662_v1  ;;  %v667_v6 = vld [vmem:[%s884_s1 + $0x30] sm:$0xff]   ;;  %v671_v10 = vld [vmem:[%s884_s1 + $0x28] sm:$0xff]  }
   0x4   :  { %v664_v3 = vld [vmem:[%s884_s1 + $0xb8] sm:$0xff]   ;;  %588 = vmatpush3.bf16.msra.mxu0 %v663_v2  ;;  %v668_v7 = vld [vmem:[%s884_s1 + $0xb0] sm:$0xff]   ;;  %v672_v11 = vld [vmem:[%s884_s1 + $0xa8] sm:$0xff]  }
   0x5   :  { %616 = vmatpush3.bf16.msra.mxu1 %v664_v3  ;;  %589 = vmatprep.subr.bf16.mxu0 %v665_v4  ;;  %v673_v12 = vld [vmem:[%s884_s1 + $0x60] sm:$0xff]   ;;  %v677_v16 = vld [vmem:[%s884_s1 + $0x58] sm:$0xff]   ;;  %v681_v20 = vld [vmem:[%s884_s1 + $0x50] sm:$0xff]  }
   0x6   :  { %617 = vmatprep.subr.bf16.mxu1 %v666_v5  ;;  %v674_v13 = vld [vmem:[%s884_s1 + $0xe0] sm:$0xff]   ;;  %v678_v17 = vld [vmem:[%s884_s1 + $0xd8] sm:$0xff]   ;;  %v682_v21 = vld [vmem:[%s884_s1 + $0xd0] sm:$0xff]  }
   0x7   :  { %v675_v14 = vld [vmem:[%s884_s1 + $0x20] sm:$0xff]   ;;  %v679_v18 = vld [vmem:[%s884_s1 + $0x18] sm:$0xff]   ;;  %v683_v22 = vld [vmem:[%s884_s1 + $0x10] sm:$0xff]  }
   0x8   :  { %590 = vmatpush3.bf16.msra.mxu0 %v667_v6  ;;  %v676_v15 = vld [vmem:[%s884_s1 + $0xa0] sm:$0xff]   ;;  %v680_v19 = vld [vmem:[%s884_s1 + $0x98] sm:$0xff]   ;;  %v684_v23 = vld [vmem:[%s884_s1 + $0x90] sm:$0xff]  }
   0x9   :  { %618 = vmatpush3.bf16.msra.mxu1 %v668_v7  ;;  %591 = vmatprep.subr.bf16.mxu0 %v669_v8  ;;  %v685_v24 = vld [vmem:[%s884_s1 + $0x48] sm:$0xff]   ;;  %v689_v28 = vld [vmem:[%s884_s1 + $0x40] sm:$0xff]   ;;  %v699_v36 = vld [vmem:[%s884_s1 + $0x118] sm:$0xff]  }
   0xa   :  { %619 = vmatprep.subr.bf16.mxu1 %v670_v9  ;;  %v686_v25 = vld [vmem:[%s884_s1 + $0xc8] sm:$0xff]   ;;  %v690_v29 = vld [vmem:[%s884_s1 + $0xc0] sm:$0xff]   ;;  %v700_v37 = vld [vmem:[%s884_s1 + $0x110] sm:$0xff]  }
   0xb   :  { %v687_v26 = vld [vmem:[%s884_s1 + $0x8] sm:$0xff]   ;;  %v691_v30 = vld [vmem:[%s884_s1] sm:$0xff]  }
   0xc   :  { %592 = vmatpush3.bf16.msra.mxu0 %v671_v10  ;;  %v688_v27 = vld [vmem:[%s884_s1 + $0x88] sm:$0xff]   ;;  %v692_v31 = vld [vmem:[%s884_s1 + $0x80] sm:$0xff]  }
   0xd   :  { %620 = vmatpush3.bf16.msra.mxu1 %v672_v11  ;;  %593 = vmatprep.subr.bf16.mxu0 %v673_v12  ;;  %v693_v32 = vld [vmem:[%s885_s0] ss:$20 sps:$4 sm:$0xff]   ;;  %v695_v33 = vld [vmem:[%s885_s0 + $0x4] ss:$20 sps:$4 sm:$0xff]   ;;  %v696_v34 = vld [vmem:[%s885_s0 + $0x8] ss:$20 sps:$4 sm:$0xff]  }
   0xe   :  { %621 = vmatprep.subr.bf16.mxu1 %v674_v13  ;;  %v698_v35 = vld [vmem:[%s885_s0 + $0xc] ss:$20 sps:$4 sm:$0xff]   ;;  %411 = vmatprep.mubr.bf16.mxu0 %v695_v33  ;;  %v703_v39 = vld [vmem:[%s885_s0 + $0x34] ss:$20 sps:$4 sm:$0xff]   ;;  %v706_v42 = vld [vmem:[%s885_s0 + $0x30] ss:$20 sps:$4 sm:$0xff]  }
   0xf   :  { %460 = vmatprep.mubr.bf16.mxu1 %v698_v35  ;;  %v701_v38 = vld [vmem:[%s885_s0 + $0x2c] ss:$20 sps:$4 sm:$0xff]   ;;  %v705_v40 = vld [vmem:[%s885_s0 + $0x28] ss:$20 sps:$4 sm:$0xff]   ;;  %v709_v43 = vld [vmem:[%s885_s0 + $0x10] ss:$20 sps:$4 sm:$0xff]  }
  0x10   :  { %594 = vmatpush3.bf16.msra.mxu0 %v675_v14  ;;  %v707_v41 = vld [vmem:[%s884_s1 + $0x108] sm:$0xff]   ;;  %v708_v44 = vld [vmem:[%s884_s1 + $0x100] sm:$0xff]  }
  0x11   :  { %622 = vmatpush3.bf16.msra.mxu1 %v676_v15  ;;  %595 = vmatprep.subr.bf16.mxu0 %v677_v16  ;;  %v710_v45 = vld [vmem:[%s885_s0 + $0x38] ss:$20 sps:$4 sm:$0xff]   ;;  %v538_v58 = vld [vmem:[%s886_s2] ss:$0 sm:$0xff] }
  0x12   :  { %623 = vmatprep.subr.bf16.mxu1 %v678_v17 }
  0x14   :  { %596 = vmatpush3.bf16.msra.mxu0 %v679_v18 }
  0x15   :  { %624 = vmatpush3.bf16.msra.mxu1 %v680_v19  ;;  %597 = vmatprep.subr.bf16.mxu0 %v681_v20 }
  0x16   :  { %625 = vmatprep.subr.bf16.mxu1 %v682_v21 }
  0x18   :  { %598 = vmatpush3.bf16.msra.mxu0 %v683_v22 }
  0x19   :  { %626 = vmatpush3.bf16.msra.mxu1 %v684_v23  ;;  %599 = vmatprep.subr.bf16.mxu0 %v685_v24 }
  0x1a   :  { %627 = vmatprep.subr.bf16.mxu1 %v686_v25 }
  0x1c   :  { %600 = vmatpush3.bf16.msra.mxu0 %v687_v26 }
  0x1d   :  { %628 = vmatpush3.bf16.msra.mxu1 %v688_v27  ;;  %601 = vmatprep.subr.bf16.mxu0 %v689_v28 }
  0x1e   :  { %629 = vmatprep.subr.bf16.mxu1 %v690_v29 }
  0x20   :  { %602 = vmatpush3.bf16.msra.mxu0 %v691_v30 }
  0x21   :  { %630 = vmatpush3.bf16.msra.mxu1 %v692_v31  ;;  %649 = vmatprep.subr.bf16.mxu0 %v699_v36 }
  0x23   :  { %412 = vmatmul.mubr.bf16.vlgmr.msra.gmra.mxu0 %v693_v32 }
  0x24   :  { %461 = vmatmul.mubr.bf16.vlgmr.msra.gmra.mxu1 %v696_v34  ;;  %650 = vmatpush3.bf16.msra.mxu0 %v699_v36 }
  0x25   :  { %651 = vmatprep.subr.bf16.mxu0 %v700_v37  ;;  %419 = vmatprep.mubr.bf16.mxu0 %v701_v38 }
  0x26   :  { %468 = vmatprep.mubr.bf16.mxu1 %v703_v39 }
  0x28   :  { %652 = vmatpush3.bf16.msra.mxu0 %v700_v37 }
  0x29   :  { %653 = vmatprep.subr.bf16.mxu0 %v707_v41 }
  0x2b   :  { %420 = vmatmul.mubr.bf16.gmra.mxu0 %v705_v40 }
  0x2c   :  { %469 = vmatmul.mubr.bf16.gmra.mxu1 %v706_v42  ;;  %657 = vmatprep.mubr.msk.bf16.mxu0 %vm372_vm0, %v709_v43 }
  0x2d   :  { %654 = vmatpush3.bf16.msra.mxu0 %v707_v41 }
  0x2e   :  { %655 = vmatprep.subr.bf16.mxu0 %v708_v44 }
  0x31   :  { %656 = vmatpush3.bf16.msra.mxu0 %v708_v44 }
  0x34   :  { %658 = vmatmul.mubr.msk.bf16.vlgmr.msra.gmra.mxu0 %vm372_vm0, %v710_v45 }
  0xe3   :  { %v603_v46 = vpop.f32.mrf.mxu0 }
  0xe4   :  { %v631_v47 = vpop.f32.mrf.mxu1 }
  0xe5   :  { %v604_v48 = vpop.f32.mrf.mxu0 }
  0xe6   :  { %v632_v49 = vpop.f32.mrf.mxu1  ;;  %v605_v56 = vadd.f32 %v604_v48, %v603_v46 }
  0xe7   :  { %v606_v50 = vpop.f32.mrf.mxu0  ;;  %v633_v2 = vadd.f32 %v632_v49, %v631_v47 }
  0xe8   :  { %v634_v51 = vpop.f32.mrf.mxu1  ;;  %v414_v1 = vadd.f32 %v605_v56, %v538_v58 }
  0xe9   :  { %v607_v52 = vpop.f32.mrf.mxu0 }
  0xea   :  { %v635_v53 = vpop.f32.mrf.mxu1  ;;  %v608_v3 = vadd.f32 %v607_v52, %v606_v50  ;;  %v463_v13 = vadd.f32 %v633_v2, %v414_v1 }
  0xeb   :  { %v609_v54 = vpop.f32.mrf.mxu0  ;;  %v636_v16 = vadd.f32 %v635_v53, %v634_v51 }
  0xec   :  { %v637_v55 = vpop.f32.mrf.mxu1  ;;  %v417_v11 = vadd.f32 %v608_v3, %v538_v58 }
  0xed   :  { %v610_v57 = vpop.f32.mrf.mxu0 }
  0xee   :  { %v611_v59 = vadd.f32 %v610_v57, %v609_v54  ;;  %v638_v60 = vpop.f32.mrf.mxu1  ;;  %v466_v22 = vadd.f32 %v636_v16, %v417_v11 }
  0xef   :  { %v639_v61 = vadd.f32 %v638_v60, %v637_v55  ;;  %v612_v62 = vpop.f32.mrf.mxu0 }
  0xf0   :  { %v422_v63 = vadd.f32 %v611_v59, %v538_v58  ;;  %v640_v0 = vpop.f32.mrf.mxu1 }
  0xf1   :  { %v613_v4 = vpop.f32.mrf.mxu0 }
  0xf2   :  { %v614_v5 = vadd.f32 %v613_v4, %v612_v62  ;;  %v641_v6 = vpop.f32.mrf.mxu1  ;;  %v471_v7 = vadd.f32 %v639_v61, %v422_v63 }
  0xf3   :  { %v642_v9 = vadd.f32 %v641_v6, %v640_v0 }
  0xf4   :  { %v425_v8 = vadd.f32 %v614_v5, %v538_v58  ;;  %v659_v10 = vpop.f32.mrf.mxu0 }
  0xf5   :  { %v520_v12 = vadd.f32 %v659_v10, %v471_v7 }
  0xf6   :  { %v511_v14 = vpop.f32.mrf.mxu0  ;;  %v474_v15 = vadd.f32 %v642_v9, %v425_v8 }
  0xf7   :  { %v528_v17 = vmax.f32 %v520_v12, 0.0  ;;  %v512_v18 = vadd.f32 %v511_v14, %v463_v13 }
  0xf8   :  { %v660_v19 = vpop.f32.mrf.mxu0 }
  0xf9   :  { %532 = vst [vmem:[%s887_s3 + $0x10] sm:$0xff] %v528_v17  ;;  %v526_v20 = vmax.f32 %v512_v18, 0.0  ;;  %v523_v21 = vadd.f32 %v660_v19, %v474_v15 }
  0xfa   :  { %v514_v23 = vpop.f32.mrf.mxu0 }
  0xfb   :  { %530 = vst [vmem:[%s887_s3] sm:$0xff] %v526_v20  ;;  %v529_v24 = vmax.f32 %v523_v21, 0.0  ;;  %v515_v25 = vadd.f32 %v514_v23, %v466_v22 }
  0xfd   :  { %533 = vst [vmem:[%s887_s3 + $0x18] sm:$0xff] %v529_v24  ;;  %v527_v26 = vmax.f32 %v515_v25, 0.0 }
  0xff   :  { %531 = vst [vmem:[%s887_s3 + $0x8] sm:$0xff] %v527_v26 }

// kernel: idnet_forward.15
= control target key start
LH: loop header
LB: loop body
LE: loop exit
PB: predicated region body
PF: predicated region fallthrough
CT: control target
= control target key end

     0   :  { %vm110_vm0 = vcmask 1043456   ;;  %vm111_vm1 = vcmask 1044480   ;;  %vm85_vm2 = vcmask 72704   ;;  %v307_v1 = vmov 65535   ;;  %s414_s1 = inlined_call_operand.vmem [shape: bf16[9,128], index: 1, kind: input, shape index: {}]   ;;  %s415_s0 = inlined_call_operand.vmem [shape: bf16[128,9], index: 0, kind: input, shape index: {}]   ;;  %s416_s2 = inlined_call_operand.vmem [shape: f32[1,128], index: 2, kind: input, shape index: {}]   ;;  %s417_s3 = inlined_call_operand.vmem [shape: f32[128,128], index: 3, kind: output, shape index: {}]  }
   0x1   :  { %v298_v0 = vld [vmem:[%s414_s1] sm:$0x1f]   ;;  %v112_v2 = vsel %vm110_vm0, 4294967295, %v307_v1  ;;  %v301_v7 = vld [vmem:[%s415_s0 + $0x8] sm:$0xff]   ;;  %v303_v9 = vld [vmem:[%s415_s0 + $0x10] sm:$0xff]  }
   0x2   :  { %v299_v3 = vld [vmem:[%s415_s0] sm:$0xff]   ;;  %v113_v4 = vsel %vm111_vm1, %v112_v2, 0  ;;  %v302_v8 = vld [vmem:[%s415_s0 + $0x28] sm:$0xff]   ;;  %v304_v10 = vld [vmem:[%s415_s0 + $0x30] sm:$0xff]  }
   0x3   :  { %v300_v5 = vld [vmem:[%s415_s0 + $0x20] sm:$0xff]   ;;  %v115_v6 = vand.u32 %v298_v0, %v113_v4  ;;  %279 = vmatprep.mubr.msk.bf16.mxu0 %vm85_vm2, %v299_v3  ;;  %v305_v11 = vld [vmem:[%s415_s0 + $0x18] sm:$0xff]  }
   0x4   :  { %287 = vmatprep.mubr.msk.bf16.mxu1 %vm85_vm2, %v300_v5  ;;  %v306_v12 = vld [vmem:[%s415_s0 + $0x38] sm:$0xff]   ;;  %v250_v13 = vld [vmem:[%s416_s2] ss:$0 sm:$0xff] }
   0x5   :  { %277 = vmatprep.subr.bf16.mxu0 %v115_v6  ;;  %295 = vmatprep.subr.bf16.mxu1 %v115_v6 }
   0x6   :  { %278 = vmatpush3.bf16.msra.mxu0 %v115_v6  ;;  %296 = vmatpush3.bf16.msra.mxu1 %v115_v6 }
   0x9   :  { %280 = vmatmul.mubr.msk.bf16.vlgmr.msra.gmra.mxu0 %vm85_vm2, %v301_v7  ;;  %288 = vmatmul.mubr.msk.bf16.vlgmr.msra.gmra.mxu1 %vm85_vm2, %v302_v8 }
   0xa   :  { %283 = vmatprep.mubr.msk.bf16.mxu0 %vm85_vm2, %v303_v9  ;;  %291 = vmatprep.mubr.msk.bf16.mxu1 %vm85_vm2, %v304_v10 }
  0x11   :  { %284 = vmatmul.mubr.msk.bf16.gmra.mxu0 %vm85_vm2, %v305_v11  ;;  %292 = vmatmul.mubr.msk.bf16.gmra.mxu1 %vm85_vm2, %v306_v12 }
  0xc9   :  { %v281_v14 = vpop.f32.mrf.mxu0  ;;  %v289_v15 = vpop.f32.mrf.mxu1 }
  0xca   :  { %v160_v16 = vadd.f32 %v281_v14, %v250_v13  ;;  %v192_v17 = vadd.f32 %v289_v15, %v250_v13 }
  0xcb   :  { %v151_v18 = vpop.f32.mrf.mxu0  ;;  %v183_v19 = vpop.f32.mrf.mxu1 }
  0xcc   :  { %v216_v20 = vmax.f32 %v160_v16, 0.0  ;;  %v224_v21 = vmax.f32 %v192_v17, 0.0  ;;  %v152_v22 = vadd.f32 %v250_v13, %v151_v18  ;;  %v184_v23 = vadd.f32 %v250_v13, %v183_v19 }
  0xcd   :  { %v282_v24 = vpop.f32.mrf.mxu0  ;;  %v290_v25 = vpop.f32.mrf.mxu1 }
  0xce   :  { %232 = vst [vmem:[%s417_s3 + $0x10] sm:$0xff] %v216_v20  ;;  %240 = vst [vmem:[%s417_s3 + $0x50] sm:$0xff] %v224_v21  ;;  %v214_v26 = vmax.f32 %v152_v22, 0.0  ;;  %v222_v27 = vmax.f32 %v184_v23, 0.0  ;;  %v163_v28 = vadd.f32 %v282_v24, %v250_v13  ;;  %v195_v29 = vadd.f32 %v290_v25, %v250_v13 }
  0xcf   :  { %v154_v30 = vpop.f32.mrf.mxu0  ;;  %v186_v31 = vpop.f32.mrf.mxu1 }
  0xd0   :  { %230 = vst [vmem:[%s417_s3] sm:$0xff] %v214_v26  ;;  %238 = vst [vmem:[%s417_s3 + $0x40] sm:$0xff] %v222_v27  ;;  %v217_v32 = vmax.f32 %v163_v28, 0.0  ;;  %v225_v33 = vmax.f32 %v195_v29, 0.0  ;;  %v155_v34 = vadd.f32 %v250_v13, %v154_v30  ;;  %v187_v35 = vadd.f32 %v250_v13, %v186_v31 }
  0xd1   :  { %v285_v36 = vpop.f32.mrf.mxu0  ;;  %v293_v37 = vpop.f32.mrf.mxu1 }
  0xd2   :  { %233 = vst [vmem:[%s417_s3 + $0x18] sm:$0xff] %v217_v32  ;;  %241 = vst [vmem:[%s417_s3 + $0x58] sm:$0xff] %v225_v33  ;;  %v215_v38 = vmax.f32 %v155_v34, 0.0  ;;  %v223_v39 = vmax.f32 %v187_v35, 0.0  ;;  %v176_v40 = vadd.f32 %v285_v36, %v250_v13  ;;  %v208_v41 = vadd.f32 %v293_v37, %v250_v13 }
  0xd3   :  { %v167_v42 = vpop.f32.mrf.mxu0  ;;  %v199_v43 = vpop.f32.mrf.mxu1 }
  0xd4   :  { %231 = vst [vmem:[%s417_s3 + $0x8] sm:$0xff] %v215_v38  ;;  %239 = vst [vmem:[%s417_s3 + $0x48] sm:$0xff] %v223_v39  ;;  %v220_v44 = vmax.f32 %v176_v40, 0.0  ;;  %v228_v45 = vmax.f32 %v208_v41, 0.0  ;;  %v168_v46 = vadd.f32 %v250_v13, %v167_v42  ;;  %v200_v47 = vadd.f32 %v250_v13, %v199_v43 }
  0xd5   :  { %v286_v48 = vpop.f32.mrf.mxu0  ;;  %v294_v49 = vpop.f32.mrf.mxu1 }
  0xd6   :  { %236 = vst [vmem:[%s417_s3 + $0x30] sm:$0xff] %v220_v44  ;;  %244 = vst [vmem:[%s417_s3 + $0x70] sm:$0xff] %v228_v45  ;;  %v218_v50 = vmax.f32 %v168_v46, 0.0  ;;  %v226_v51 = vmax.f32 %v200_v47, 0.0  ;;  %v179_v52 = vadd.f32 %v286_v48, %v250_v13  ;;  %v211_v53 = vadd.f32 %v294_v49, %v250_v13 }
  0xd7   :  { %v170_v54 = vpop.f32.mrf.mxu0  ;;  %v202_v55 = vpop.f32.mrf.mxu1 }
  0xd8   :  { %234 = vst [vmem:[%s417_s3 + $0x20] sm:$0xff] %v218_v50  ;;  %242 = vst [vmem:[%s417_s3 + $0x60] sm:$0xff] %v226_v51  ;;  %v221_v56 = vmax.f32 %v179_v52, 0.0  ;;  %v229_v57 = vmax.f32 %v211_v53, 0.0  ;;  %v171_v58 = vadd.f32 %v250_v13, %v170_v54  ;;  %v203_v59 = vadd.f32 %v250_v13, %v202_v55 }
  0xda   :  { %237 = vst [vmem:[%s417_s3 + $0x38] sm:$0xff] %v221_v56  ;;  %245 = vst [vmem:[%s417_s3 + $0x78] sm:$0xff] %v229_v57  ;;  %v219_v60 = vmax.f32 %v171_v58, 0.0  ;;  %v227_v61 = vmax.f32 %v203_v59, 0.0 }
  0xdc   :  { %235 = vst [vmem:[%s417_s3 + $0x28] sm:$0xff] %v219_v60  ;;  %243 = vst [vmem:[%s417_s3 + $0x68] sm:$0xff] %v227_v61 }

// kernel: idnet_forward.16
= control target key start
LH: loop header
LB: loop body
LE: loop exit
PB: predicated region body
PF: predicated region fallthrough
CT: control target
= control target key end

     0   :  { %vm1206_vm0 = vcmask 130048   ;;  %s3416_s1 = inlined_call_operand.vmem [shape: bf16[1296,128], index: 1, kind: input, shape index: {}]   ;;  %s3417_s0 = inlined_call_operand.vmem [shape: bf16[128,1296], index: 0, kind: input, shape index: {}]   ;;  %s3418_s2 = inlined_call_operand.vmem [shape: f32[1,128], index: 2, kind: input, shape index: {}]   ;;  %s3419_s3 = inlined_call_operand.vmem [shape: f32[128,128], index: 3, kind: output, shape index: {}]  }
   0x1   :  { %v2390_v0 = vld [vmem:[%s3416_s1 + $0x78] sm:$0xff]   ;;  %v2394_v4 = vld [vmem:[%s3416_s1 + $0x70] sm:$0xff]   ;;  %v2398_v8 = vld [vmem:[%s3416_s1 + $0x68] sm:$0xff]  }
   0x2   :  { %v2391_v1 = vld [vmem:[%s3416_s1 + $0xf8] sm:$0xff]   ;;  %2027 = vmatprep.subr.bf16.mxu0 %v2390_v0  ;;  %v2395_v5 = vld [vmem:[%s3416_s1 + $0xf0] sm:$0xff]   ;;  %v2399_v9 = vld [vmem:[%s3416_s1 + $0xe8] sm:$0xff]  }
   0x3   :  { %v2392_v2 = vld [vmem:[%s3416_s1 + $0x38] sm:$0xff]   ;;  %2091 = vmatprep.subr.bf16.mxu1 %v2391_v1  ;;  %v2396_v6 = vld [vmem:[%s3416_s1 + $0x30] sm:$0xff]   ;;  %v2400_v10 = vld [vmem:[%s3416_s1 + $0x28] sm:$0xff]  }
   0x4   :  { %v2393_v3 = vld [vmem:[%s3416_s1 + $0xb8] sm:$0xff]   ;;  %2028 = vmatpush3.bf16.msra.mxu0 %v2392_v2  ;;  %v2397_v7 = vld [vmem:[%s3416_s1 + $0xb0] sm:$0xff]   ;;  %v2401_v11 = vld [vmem:[%s3416_s1 + $0xa8] sm:$0xff]  }
   0x5   :  { %2092 = vmatpush3.bf16.msra.mxu1 %v2393_v3  ;;  %2029 = vmatprep.subr.bf16.mxu0 %v2394_v4  ;;  %v2402_v12 = vld [vmem:[%s3416_s1 + $0x60] sm:$0xff]   ;;  %v2406_v16 = vld [vmem:[%s3416_s1 + $0x58] sm:$0xff]   ;;  %v2410_v20 = vld [vmem:[%s3416_s1 + $0x50] sm:$0xff]  }
   0x6   :  { %2093 = vmatprep.subr.bf16.mxu1 %v2395_v5  ;;  %v2403_v13 = vld [vmem:[%s3416_s1 + $0xe0] sm:$0xff]   ;;  %v2407_v17 = vld [vmem:[%s3416_s1 + $0xd8] sm:$0xff]   ;;  %v2411_v21 = vld [vmem:[%s3416_s1 + $0xd0] sm:$0xff]  }
   0x7   :  { %v2404_v14 = vld [vmem:[%s3416_s1 + $0x20] sm:$0xff]   ;;  %v2408_v18 = vld [vmem:[%s3416_s1 + $0x18] sm:$0xff]   ;;  %v2412_v22 = vld [vmem:[%s3416_s1 + $0x10] sm:$0xff]  }
   0x8   :  { %2030 = vmatpush3.bf16.msra.mxu0 %v2396_v6  ;;  %v2405_v15 = vld [vmem:[%s3416_s1 + $0xa0] sm:$0xff]   ;;  %v2409_v19 = vld [vmem:[%s3416_s1 + $0x98] sm:$0xff]   ;;  %v2413_v23 = vld [vmem:[%s3416_s1 + $0x90] sm:$0xff]  }
   0x9   :  { %2094 = vmatpush3.bf16.msra.mxu1 %v2397_v7  ;;  %2031 = vmatprep.subr.bf16.mxu0 %v2398_v8  ;;  %v2414_v24 = vld [vmem:[%s3416_s1 + $0x48] sm:$0xff]   ;;  %v2418_v28 = vld [vmem:[%s3416_s1 + $0x40] sm:$0xff]   ;;  %v2428_v36 = vld [vmem:[%s3416_s1 + $0x178] sm:$0xff]  }
   0xa   :  { %2095 = vmatprep.subr.bf16.mxu1 %v2399_v9  ;;  %v2415_v25 = vld [vmem:[%s3416_s1 + $0xc8] sm:$0xff]   ;;  %v2419_v29 = vld [vmem:[%s3416_s1 + $0xc0] sm:$0xff]   ;;  %v2429_v37 = vld [vmem:[%s3416_s1 + $0x138] sm:$0xff]  }
   0xb   :  { %v2416_v26 = vld [vmem:[%s3416_s1 + $0x8] sm:$0xff]   ;;  %v2420_v30 = vld [vmem:[%s3416_s1] sm:$0xff]   ;;  %v2430_v38 = vld [vmem:[%s3416_s1 + $0x1f8] sm:$0xff]  }
   0xc   :  { %2032 = vmatpush3.bf16.msra.mxu0 %v2400_v10  ;;  %v2417_v27 = vld [vmem:[%s3416_s1 + $0x88] sm:$0xff]   ;;  %v2421_v31 = vld [vmem:[%s3416_s1 + $0x80] sm:$0xff]   ;;  %v2431_v39 = vld [vmem:[%s3416_s1 + $0x1b8] sm:$0xff]  }
   0xd   :  { %2096 = vmatpush3.bf16.msra.mxu1 %v2401_v11  ;;  %2033 = vmatprep.subr.bf16.mxu0 %v2402_v12  ;;  %v2422_v32 = vld [vmem:[%s3417_s0] ss:$44 sps:$4 sm:$0xff]   ;;  %v2424_v33 = vld [vmem:[%s3417_s0 + $0x4] ss:$44 sps:$4 sm:$0xff]   ;;  %v2425_v34 = vld [vmem:[%s3417_s0 + $0x8] ss:$44 sps:$4 sm:$0xff]  }
   0xe   :  { %2097 = vmatprep.subr.bf16.mxu1 %v2403_v13  ;;  %v2427_v35 = vld [vmem:[%s3417_s0 + $0xc] ss:$44 sps:$4 sm:$0xff]   ;;  %1263 = vmatprep.mubr.bf16.mxu0 %v2424_v33  ;;  %v2432_v40 = vld [vmem:[%s3417_s0 + $0x5c] ss:$44 sps:$4 sm:$0xff]   ;;  %v2434_v41 = vld [vmem:[%s3417_s0 + $0x64] ss:$44 sps:$4 sm:$0xff]  }
   0xf   :  { %1360 = vmatprep.mubr.bf16.mxu1 %v2427_v35  ;;  %v2436_v42 = vld [vmem:[%s3417_s0 + $0x58] ss:$44 sps:$4 sm:$0xff]   ;;  %v2437_v43 = vld [vmem:[%s3417_s0 + $0x60] ss:$44 sps:$4 sm:$0xff]   ;;  %v2438_v44 = vld [vmem:[%s3416_s1 + $0x170] sm:$0xff]  }
  0x10   :  { %2034 = vmatpush3.bf16.msra.mxu0 %v2404_v14  ;;  %v2439_v45 = vld [vmem:[%s3416_s1 + $0x130] sm:$0xff]   ;;  %v2444_v49 = vld [vmem:[%s3417_s0 + $0xbc] ss:$44 sps:$4 sm:$0xff]   ;;  %v2447_v51 = vld [vmem:[%s3417_s0 + $0xb8] ss:$44 sps:$4 sm:$0xff]  }
  0x11   :  { %2098 = vmatpush3.bf16.msra.mxu1 %v2405_v15  ;;  %2035 = vmatprep.subr.bf16.mxu0 %v2406_v16  ;;  %v2440_v46 = vld [vmem:[%s3416_s1 + $0x1f0] sm:$0xff]   ;;  %v2448_v52 = vld [vmem:[%s3416_s1 + $0x168] sm:$0xff]   ;;  %v2458_v60 = vld [vmem:[%s3416_s1 + $0x160] sm:$0xff]  }
  0x12   :  { %2099 = vmatprep.subr.bf16.mxu1 %v2407_v17  ;;  %v2441_v47 = vld [vmem:[%s3416_s1 + $0x1b0] sm:$0xff]   ;;  %v2449_v53 = vld [vmem:[%s3416_s1 + $0x128] sm:$0xff]   ;;  %v2459_v61 = vld [vmem:[%s3416_s1 + $0x120] sm:$0xff]  }
  0x13   :  { %v2442_v48 = vld [vmem:[%s3417_s0 + $0xb4] ss:$44 sps:$4 sm:$0xff]   ;;  %v2446_v50 = vld [vmem:[%s3417_s0 + $0xb0] ss:$44 sps:$4 sm:$0xff]   ;;  %v2450_v54 = vld [vmem:[%s3416_s1 + $0x1e8] sm:$0xff]  }
  0x14   :  { %2036 = vmatpush3.bf16.msra.mxu0 %v2408_v18  ;;  %v2451_v55 = vld [vmem:[%s3416_s1 + $0x1a8] sm:$0xff]   ;;  %v2454_v57 = vld [vmem:[%s3417_s0 + $0x114] ss:$44 sps:$4 sm:$0xff]   ;;  %v2457_v59 = vld [vmem:[%s3417_s0 + $0x110] ss:$44 sps:$4 sm:$0xff]  }
  0x15   :  { %2100 = vmatpush3.bf16.msra.mxu1 %v2409_v19  ;;  %2037 = vmatprep.subr.bf16.mxu0 %v2410_v20  ;;  %v2452_v56 = vld [vmem:[%s3417_s0 + $0x10c] ss:$44 sps:$4 sm:$0xff]   ;;  %v2456_v58 = vld [vmem:[%s3417_s0 + $0x108] ss:$44 sps:$4 sm:$0xff]   ;;  %v2460_v62 = vld [vmem:[%s3416_s1 + $0x1e0] sm:$0xff]  }
  0x16   :  { %2101 = vmatprep.subr.bf16.mxu1 %v2411_v21  ;;  %v2461_v63 = vld [vmem:[%s3416_s1 + $0x1a0] sm:$0xff]   ;;  %v2464_v1 = vld [vmem:[%s3417_s0 + $0x16c] ss:$44 sps:$4 sm:$0xff]   ;;  %v2467_v4 = vld [vmem:[%s3417_s0 + $0x168] ss:$44 sps:$4 sm:$0xff]  }
  0x17   :  { %v2462_v0 = vld [vmem:[%s3417_s0 + $0x164] ss:$44 sps:$4 sm:$0xff]   ;;  %v2466_v2 = vld [vmem:[%s3417_s0 + $0x160] ss:$44 sps:$4 sm:$0xff]   ;;  %v2468_v3 = vld [vmem:[%s3416_s1 + $0x158] sm:$0xff]  }
  0x18   :  { %2038 = vmatpush3.bf16.msra.mxu0 %v2412_v22  ;;  %v2469_v5 = vld [vmem:[%s3416_s1 + $0x118] sm:$0xff]   ;;  %v2474_v9 = vld [vmem:[%s3417_s0 + $0x1c4] ss:$44 sps:$4 sm:$0xff]   ;;  %v2477_v15 = vld [vmem:[%s3417_s0 + $0x1c0] ss:$44 sps:$4 sm:$0xff]  }
  0x19   :  { %2102 = vmatpush3.bf16.msra.mxu1 %v2413_v23  ;;  %2039 = vmatprep.subr.bf16.mxu0 %v2414_v24  ;;  %v2470_v6 = vld [vmem:[%s3416_s1 + $0x1d8] sm:$0xff]   ;;  %v2478_v10 = vld [vmem:[%s3416_s1 + $0x150] sm:$0xff]   ;;  %v2488_v18 = vld [vmem:[%s3416_s1 + $0x148] sm:$0xff]  }
  0x1a   :  { %2103 = vmatprep.subr.bf16.mxu1 %v2415_v25  ;;  %v2471_v7 = vld [vmem:[%s3416_s1 + $0x198] sm:$0xff]   ;;  %v2479_v11 = vld [vmem:[%s3416_s1 + $0x110] sm:$0xff]   ;;  %v2489_v19 = vld [vmem:[%s3416_s1 + $0x108] sm:$0xff]  }
  0x1b   :  { %v2472_v8 = vld [vmem:[%s3417_s0 + $0x1bc] ss:$44 sps:$4 sm:$0xff]   ;;  %v2476_v12 = vld [vmem:[%s3417_s0 + $0x1b8] ss:$44 sps:$4 sm:$0xff]   ;;  %v2480_v13 = vld [vmem:[%s3416_s1 + $0x1d0] sm:$0xff]  }
  0x1c   :  { %2040 = vmatpush3.bf16.msra.mxu0 %v2416_v26  ;;  %v2481_v14 = vld [vmem:[%s3416_s1 + $0x190] sm:$0xff]   ;;  %v2484_v17 = vld [vmem:[%s3417_s0 + $0x21c] ss:$44 sps:$4 sm:$0xff]   ;;  %v2487_v23 = vld [vmem:[%s3417_s0 + $0x218] ss:$44 sps:$4 sm:$0xff]  }
  0x1d   :  { %2104 = vmatpush3.bf16.msra.mxu1 %v2417_v27  ;;  %2041 = vmatprep.subr.bf16.mxu0 %v2418_v28  ;;  %v2482_v16 = vld [vmem:[%s3417_s0 + $0x214] ss:$44 sps:$4 sm:$0xff]   ;;  %v2490_v20 = vld [vmem:[%s3416_s1 + $0x1c8] sm:$0xff]   ;;  %v2486_v22 = vld [vmem:[%s3417_s0 + $0x210] ss:$44 sps:$4 sm:$0xff]  }
  0x1e   :  { %2105 = vmatprep.subr.bf16.mxu1 %v2419_v29  ;;  %v2491_v21 = vld [vmem:[%s3416_s1 + $0x188] sm:$0xff]   ;;  %v2494_v25 = vld [vmem:[%s3417_s0 + $0x274] ss:$44 sps:$4 sm:$0xff]   ;;  %v2502_v35 = vld [vmem:[%s3417_s0 + $0x10] ss:$44 sps:$4 sm:$0xff]  }
  0x1f   :  { %v2492_v24 = vld [vmem:[%s3417_s0 + $0x26c] ss:$44 sps:$4 sm:$0xff]   ;;  %v2498_v26 = vld [vmem:[%s3416_s1 + $0x140] sm:$0xff]  }
  0x20   :  { %2042 = vmatpush3.bf16.msra.mxu0 %v2420_v30  ;;  %v2499_v27 = vld [vmem:[%s3416_s1 + $0x100] sm:$0xff]   ;;  %v2496_v30 = vld [vmem:[%s3417_s0 + $0x268] ss:$44 sps:$4 sm:$0xff]  }
  0x21   :  { %2106 = vmatpush3.bf16.msra.mxu1 %v2421_v31  ;;  %2155 = vmatprep.subr.bf16.mxu0 %v2428_v36  ;;  %v2500_v28 = vld [vmem:[%s3416_s1 + $0x1c0] sm:$0xff]   ;;  %v2497_v31 = vld [vmem:[%s3417_s0 + $0x270] ss:$44 sps:$4 sm:$0xff]  }
  0x22   :  { %2219 = vmatprep.subr.bf16.mxu1 %v2430_v38  ;;  %v2501_v29 = vld [vmem:[%s3416_s1 + $0x180] sm:$0xff]   ;;  %v2510_v38 = vld [vmem:[%s3417_s0 + $0x6c] ss:$44 sps:$4 sm:$0xff]  }
  0x23   :  { %1264 = vmatmul.mubr.bf16.vlgmr.msra.gmra.mxu0 %v2422_v32  ;;  %v2508_v32 = vld [vmem:[%s3416_s1 + $0x278] sm:$0xff]   ;;  %v2504_v33 = vld [vmem:[%s3417_s0 + $0x14] ss:$44 sps:$4 sm:$0xff]  }
  0x24   :  { %1361 = vmatmul.mubr.bf16.vlgmr.msra.gmra.mxu1 %v2425_v34  ;;  %2156 = vmatpush3.bf16.msra.mxu0 %v2429_v37  ;;  %v2507_v34 = vld [vmem:[%s3417_s0 + $0x1c] ss:$44 sps:$4 sm:$0xff]   ;;  %v2505_v36 = vld [vmem:[%s3417_s0 + $0x18] ss:$44 sps:$4 sm:$0xff]  }
  0x25   :  { %2220 = vmatpush3.bf16.msra.mxu1 %v2431_v39  ;;  %1271 = vmatprep.mubr.bf16.mxu0 %v2432_v40  ;;  %v2509_v37 = vld [vmem:[%s3416_s1 + $0x238] sm:$0xff]   ;;  %v2512_v39 = vld [vmem:[%s3417_s0 + $0x74] ss:$44 sps:$4 sm:$0xff]  }
  0x26   :  { %1368 = vmatprep.mubr.bf16.mxu1 %v2434_v41  ;;  %2157 = vmatprep.subr.bf16.mxu0 %v2438_v44  ;;  %v2516_v40 = vld [vmem:[%s3416_s1 + $0x270] sm:$0xff]  }
  0x27   :  { %2221 = vmatprep.subr.bf16.mxu1 %v2440_v46  ;;  %v2517_v41 = vld [vmem:[%s3416_s1 + $0x230] sm:$0xff]   ;;  %v2520_v46 = vld [vmem:[%s3417_s0 + $0xcc] ss:$44 sps:$4 sm:$0xff]  }
  0x28   :  { %2158 = vmatpush3.bf16.msra.mxu0 %v2439_v45  ;;  %v2515_v44 = vld [vmem:[%s3417_s0 + $0x70] ss:$44 sps:$4 sm:$0xff]  }
  0x29   :  { %2222 = vmatpush3.bf16.msra.mxu1 %v2441_v47  ;;  %2159 = vmatprep.subr.bf16.mxu0 %v2448_v52  ;;  %v2518_v45 = vld [vmem:[%s3417_s0 + $0xc4] ss:$44 sps:$4 sm:$0xff]   ;;  %v2525_v47 = vld [vmem:[%s3416_s1 + $0x228] sm:$0xff]   ;;  %v2540_v52 = vld [vmem:[%s3416_s1 + $0x258] sm:$0xff]  }
  0x2a   :  { %2223 = vmatprep.subr.bf16.mxu1 %v2450_v54  ;;  %v2528_v54 = vld [vmem:[%s3417_s0 + $0x124] ss:$44 sps:$4 sm:$0xff]  }
  0x2b   :  { %1272 = vmatmul.mubr.bf16.gmra.mxu0 %v2436_v42  ;;  %v2524_v42 = vld [vmem:[%s3416_s1 + $0x268] sm:$0xff]  }
  0x2c   :  { %1369 = vmatmul.mubr.bf16.gmra.mxu1 %v2437_v43  ;;  %1279 = vmatprep.mubr.bf16.mxu0 %v2442_v48  ;;  %v2514_v43 = vld [vmem:[%s3417_s0 + $0x68] ss:$44 sps:$4 sm:$0xff]   ;;  %v2532_v48 = vld [vmem:[%s3416_s1 + $0x260] sm:$0xff]  }
  0x2d   :  { %1376 = vmatprep.mubr.bf16.mxu1 %v2444_v49  ;;  %2160 = vmatpush3.bf16.msra.mxu0 %v2449_v53  ;;  %v2522_v49 = vld [vmem:[%s3417_s0 + $0xc0] ss:$44 sps:$4 sm:$0xff]   ;;  %v2526_v53 = vld [vmem:[%s3417_s0 + $0x11c] ss:$44 sps:$4 sm:$0xff]  }
  0x2e   :  { %2224 = vmatpush3.bf16.msra.mxu1 %v2451_v55  ;;  %2161 = vmatprep.subr.bf16.mxu0 %v2458_v60  ;;  %v2541_v55 = vld [vmem:[%s3416_s1 + $0x218] sm:$0xff]   ;;  %v2531_v60 = vld [vmem:[%s3417_s0 + $0x120] ss:$44 sps:$4 sm:$0xff]  }
  0x2f   :  { %2225 = vmatprep.subr.bf16.mxu1 %v2460_v62  ;;  %v2536_v62 = vld [vmem:[%s3417_s0 + $0x17c] ss:$44 sps:$4 sm:$0xff]  }
  0x31   :  { %2162 = vmatpush3.bf16.msra.mxu0 %v2459_v61  ;;  %v2534_v61 = vld [vmem:[%s3417_s0 + $0x174] ss:$44 sps:$4 sm:$0xff]  }
  0x32   :  { %2226 = vmatpush3.bf16.msra.mxu1 %v2461_v63  ;;  %2163 = vmatprep.subr.bf16.mxu0 %v2468_v3  ;;  %v2557_v63 = vld [vmem:[%s3416_s1 + $0x208] sm:$0xff]   ;;  %v2539_v3 = vld [vmem:[%s3417_s0 + $0x178] ss:$44 sps:$4 sm:$0xff]  }
  0x33   :  { %1280 = vmatmul.mubr.bf16.gmra.mxu0 %v2446_v50  ;;  %2227 = vmatprep.subr.bf16.mxu1 %v2470_v6  ;;  %v2533_v50 = vld [vmem:[%s3416_s1 + $0x220] sm:$0xff]  }
  0x34   :  { %1377 = vmatmul.mubr.bf16.gmra.mxu1 %v2447_v51  ;;  %1287 = vmatprep.mubr.bf16.mxu0 %v2452_v56  ;;  %v2523_v51 = vld [vmem:[%s3417_s0 + $0xc8] ss:$44 sps:$4 sm:$0xff]  }
  0x35   :  { %1384 = vmatprep.mubr.bf16.mxu1 %v2454_v57  ;;  %2164 = vmatpush3.bf16.msra.mxu0 %v2469_v5  ;;  %v2548_v56 = vld [vmem:[%s3416_s1 + $0x250] sm:$0xff]   ;;  %v2530_v57 = vld [vmem:[%s3417_s0 + $0x118] ss:$44 sps:$4 sm:$0xff]  }
  0x36   :  { %2228 = vmatpush3.bf16.msra.mxu1 %v2471_v7  ;;  %2165 = vmatprep.subr.bf16.mxu0 %v2478_v10  ;;  %v2542_v5 = vld [vmem:[%s3417_s0 + $0x1cc] ss:$44 sps:$4 sm:$0xff]   ;;  %v2544_v6 = vld [vmem:[%s3417_s0 + $0x1d4] ss:$44 sps:$4 sm:$0xff]  }
  0x37   :  { %2229 = vmatprep.subr.bf16.mxu1 %v2480_v13  ;;  %v2546_v7 = vld [vmem:[%s3417_s0 + $0x1c8] ss:$44 sps:$4 sm:$0xff]   ;;  %v2552_v10 = vld [vmem:[%s3417_s0 + $0x22c] ss:$44 sps:$4 sm:$0xff]  }
  0x38   :  { %v2558_v13 = vld [vmem:[%s3417_s0 + $0x27c] ss:$44 sps:$4 sm:$0xff]  }
  0x39   :  { %2166 = vmatpush3.bf16.msra.mxu0 %v2479_v11  ;;  %v2554_v11 = vld [vmem:[%s3417_s0 + $0x220] ss:$44 sps:$4 sm:$0xff]  }
  0x3a   :  { %2230 = vmatpush3.bf16.msra.mxu1 %v2481_v14  ;;  %2167 = vmatprep.subr.bf16.mxu0 %v2488_v18  ;;  %v2560_v14 = vld [vmem:[%s3417_s0 + $0x284] ss:$44 sps:$4 sm:$0xff]   ;;  %v2571_v18 = vld [vmem:[%s3417_s0 + $0x234] ss:$44 sps:$4 sm:$0xff]  }
  0x3b   :  { %1288 = vmatmul.mubr.bf16.gmra.mxu0 %v2456_v58  ;;  %2231 = vmatprep.subr.bf16.mxu1 %v2490_v20  ;;  %v2549_v58 = vld [vmem:[%s3416_s1 + $0x210] sm:$0xff]  }
  0x3c   :  { %1385 = vmatmul.mubr.bf16.gmra.mxu1 %v2457_v59  ;;  %1295 = vmatprep.mubr.bf16.mxu0 %v2462_v0  ;;  %v2556_v59 = vld [vmem:[%s3416_s1 + $0x248] sm:$0xff]   ;;  %v2564_v0 = vld [vmem:[%s3416_s1 + $0x240] sm:$0xff]   ;;  %v2569_v20 = vld [vmem:[%s3417_s0 + $0x230] ss:$44 sps:$4 sm:$0xff]  }
  0x3d   :  { %1392 = vmatprep.mubr.bf16.mxu1 %v2464_v1  ;;  %2168 = vmatpush3.bf16.msra.mxu0 %v2489_v19  ;;  %v2565_v1 = vld [vmem:[%s3416_s1 + $0x200] sm:$0xff]  }
  0x3e   :  { %2232 = vmatpush3.bf16.msra.mxu1 %v2491_v21  ;;  %2169 = vmatprep.subr.bf16.mxu0 %v2498_v26  ;;  %v2566_v19 = vld [vmem:[%s3417_s0 + $0x20] ss:$44 sps:$4 sm:$0xff]   ;;  %v2573_v21 = vld [vmem:[%s3417_s0 + $0x7c] ss:$44 sps:$4 sm:$0xff]  }
  0x3f   :  { %2233 = vmatprep.subr.bf16.mxu1 %v2500_v28  ;;  %v2581_v26 = vld [vmem:[%s3417_s0 + $0x28] ss:$44 sps:$4 sm:$0xff]   ;;  %v2583_v28 = vld [vmem:[%s3417_s0 + $0x80] ss:$44 sps:$4 sm:$0xff]  }
  0x41   :  { %2170 = vmatpush3.bf16.msra.mxu0 %v2499_v27  ;;  %v2582_v27 = vld [vmem:[%s3417_s0 + $0xd0] ss:$44 sps:$4 sm:$0xff]  }
  0x42   :  { %2234 = vmatpush3.bf16.msra.mxu1 %v2501_v29  ;;  %2283 = vmatprep.subr.bf16.mxu0 %v2508_v32  ;;  %v2584_v29 = vld [vmem:[%s3417_s0 + $0x12c] ss:$44 sps:$4 sm:$0xff]  }
  0x43   :  { %1296 = vmatmul.mubr.bf16.gmra.mxu0 %v2466_v2  ;;  %2374 = vmatprep.subr.bf16.mxu1 %v2508_v32  ;;  %v2538_v2 = vld [vmem:[%s3417_s0 + $0x170] ss:$44 sps:$4 sm:$0xff]  }
  0x44   :  { %1393 = vmatmul.mubr.bf16.gmra.mxu1 %v2467_v4  ;;  %1303 = vmatprep.mubr.bf16.mxu0 %v2472_v8  ;;  %v2572_v4 = vld [vmem:[%s3416_s1 + $0x280] sm:$0xff]   ;;  %v2547_v8 = vld [vmem:[%s3417_s0 + $0x1d0] ss:$44 sps:$4 sm:$0xff]  }
  0x45   :  { %1400 = vmatprep.mubr.bf16.mxu1 %v2474_v9  ;;  %v2550_v9 = vld [vmem:[%s3417_s0 + $0x224] ss:$44 sps:$4 sm:$0xff]  }
  0x46   :  { %v2588_v32 = vld [vmem:[%s3417_s0 + $0x130] ss:$44 sps:$4 sm:$0xff]  }
  0x4b   :  { %1304 = vmatmul.mubr.bf16.gmra.mxu0 %v2476_v12  ;;  %v2555_v12 = vld [vmem:[%s3417_s0 + $0x228] ss:$44 sps:$4 sm:$0xff]  }
  0x4c   :  { %1401 = vmatmul.mubr.bf16.gmra.mxu1 %v2477_v15  ;;  %1311 = vmatprep.mubr.bf16.mxu0 %v2482_v16  ;;  %v2562_v15 = vld [vmem:[%s3417_s0 + $0x278] ss:$44 sps:$4 sm:$0xff]   ;;  %v2563_v16 = vld [vmem:[%s3417_s0 + $0x280] ss:$44 sps:$4 sm:$0xff]  }
  0x4d   :  { %1408 = vmatprep.mubr.bf16.mxu1 %v2484_v17  ;;  %v2568_v17 = vld [vmem:[%s3417_s0 + $0x24] ss:$44 sps:$4 sm:$0xff]  }
  0x53   :  { %1312 = vmatmul.mubr.bf16.gmra.mxu0 %v2486_v22  ;;  %v2575_v22 = vld [vmem:[%s3417_s0 + $0x28c] ss:$44 sps:$4 sm:$0xff]  }
  0x54   :  { %1409 = vmatmul.mubr.bf16.gmra.mxu1 %v2487_v23  ;;  %1319 = vmatprep.mubr.bf16.mxu0 %v2492_v24  ;;  %v2577_v23 = vld [vmem:[%s3417_s0 + $0x78] ss:$44 sps:$4 sm:$0xff]   ;;  %v2578_v24 = vld [vmem:[%s3417_s0 + $0x288] ss:$44 sps:$4 sm:$0xff]  }
  0x55   :  { %1416 = vmatprep.mubr.bf16.mxu1 %v2494_v25  ;;  %v2579_v25 = vld [vmem:[%s3417_s0 + $0xd4] ss:$44 sps:$4 sm:$0xff]  }
  0x5b   :  { %1320 = vmatmul.mubr.bf16.gmra.mxu0 %v2496_v30  ;;  %v2586_v30 = vld [vmem:[%s3417_s0 + $0xd8] ss:$44 sps:$4 sm:$0xff]  }
  0x5c   :  { %1417 = vmatmul.mubr.bf16.gmra.mxu1 %v2497_v31  ;;  %1457 = vmatprep.mubr.bf16.mxu0 %v2504_v33  ;;  %v2587_v31 = vld [vmem:[%s3417_s0 + $0x128] ss:$44 sps:$4 sm:$0xff]   ;;  %v2589_v33 = vld [vmem:[%s3417_s0 + $0x184] ss:$44 sps:$4 sm:$0xff]  }
  0x5d   :  { %1554 = vmatprep.mubr.bf16.mxu1 %v2507_v34  ;;  %v2591_v34 = vld [vmem:[%s3417_s0 + $0x188] ss:$44 sps:$4 sm:$0xff]  }
  0x63   :  { %1458 = vmatmul.mubr.bf16.vlgmr.msra.gmra.mxu0 %v2502_v35  ;;  %v2592_v35 = vld [vmem:[%s3417_s0 + $0x180] ss:$44 sps:$4 sm:$0xff]  }
  0x64   :  { %1555 = vmatmul.mubr.bf16.vlgmr.msra.gmra.mxu1 %v2505_v36  ;;  %2284 = vmatpush3.bf16.msra.mxu0 %v2509_v37  ;;  %v2593_v36 = vld [vmem:[%s3417_s0 + $0x1e0] ss:$44 sps:$4 sm:$0xff]  }
  0x65   :  { %2382 = vmatpush3.bf16.msra.mxu1 %v2509_v37  ;;  %1465 = vmatprep.mubr.bf16.mxu0 %v2510_v38  ;;  %v2594_v37 = vld [vmem:[%s3417_s0 + $0x1dc] ss:$44 sps:$4 sm:$0xff]   ;;  %v2596_v38 = vld [vmem:[%s3417_s0 + $0x238] ss:$44 sps:$4 sm:$0xff]  }
  0x66   :  { %1562 = vmatprep.mubr.bf16.mxu1 %v2512_v39  ;;  %2285 = vmatprep.subr.bf16.mxu0 %v2516_v40  ;;  %v2597_v39 = vld [vmem:[%s3417_s0 + $0x1d8] ss:$44 sps:$4 sm:$0xff]  }
  0x67   :  { %2375 = vmatprep.subr.bf16.mxu1 %v2516_v40  ;;  %v2598_v40 = vld [vmem:[%s3417_s0 + $0x290] ss:$44 sps:$4 sm:$0xff]  }
  0x68   :  { %2286 = vmatpush3.bf16.msra.mxu0 %v2517_v41 }
  0x69   :  { %2383 = vmatpush3.bf16.msra.mxu1 %v2517_v41  ;;  %2287 = vmatprep.subr.bf16.mxu0 %v2524_v42 }
  0x6a   :  { %2376 = vmatprep.subr.bf16.mxu1 %v2524_v42 }
  0x6b   :  { %1466 = vmatmul.mubr.bf16.gmra.mxu0 %v2514_v43  ;;  %v3137_v43 = vld [vmem:[%s3418_s2] ss:$0 sm:$0xff] }
  0x6c   :  { %1563 = vmatmul.mubr.bf16.gmra.mxu1 %v2515_v44  ;;  %1473 = vmatprep.mubr.bf16.mxu0 %v2518_v45 }
  0x6d   :  { %1570 = vmatprep.mubr.bf16.mxu1 %v2520_v46  ;;  %2288 = vmatpush3.bf16.msra.mxu0 %v2525_v47 }
  0x6e   :  { %2384 = vmatpush3.bf16.msra.mxu1 %v2525_v47  ;;  %2289 = vmatprep.subr.bf16.mxu0 %v2532_v48 }
  0x6f   :  { %2377 = vmatprep.subr.bf16.mxu1 %v2532_v48 }
  0x71   :  { %2290 = vmatpush3.bf16.msra.mxu0 %v2533_v50 }
  0x72   :  { %2385 = vmatpush3.bf16.msra.mxu1 %v2533_v50  ;;  %2291 = vmatprep.subr.bf16.mxu0 %v2540_v52 }
  0x73   :  { %1474 = vmatmul.mubr.bf16.gmra.mxu0 %v2522_v49  ;;  %2378 = vmatprep.subr.bf16.mxu1 %v2540_v52 }
  0x74   :  { %1571 = vmatmul.mubr.bf16.gmra.mxu1 %v2523_v51  ;;  %1481 = vmatprep.mubr.bf16.mxu0 %v2526_v53 }
  0x75   :  { %1578 = vmatprep.mubr.bf16.mxu1 %v2528_v54  ;;  %2292 = vmatpush3.bf16.msra.mxu0 %v2541_v55 }
  0x76   :  { %2386 = vmatpush3.bf16.msra.mxu1 %v2541_v55  ;;  %2293 = vmatprep.subr.bf16.mxu0 %v2548_v56 }
  0x77   :  { %2379 = vmatprep.subr.bf16.mxu1 %v2548_v56 }
  0x79   :  { %2294 = vmatpush3.bf16.msra.mxu0 %v2549_v58 }
  0x7a   :  { %2387 = vmatpush3.bf16.msra.mxu1 %v2549_v58  ;;  %2295 = vmatprep.subr.bf16.mxu0 %v2556_v59 }
  0x7b   :  { %1482 = vmatmul.mubr.bf16.gmra.mxu0 %v2530_v57  ;;  %2380 = vmatprep.subr.bf16.mxu1 %v2556_v59 }
  0x7c   :  { %1579 = vmatmul.mubr.bf16.gmra.mxu1 %v2531_v60  ;;  %1489 = vmatprep.mubr.bf16.mxu0 %v2534_v61 }
  0x7d   :  { %1586 = vmatprep.mubr.bf16.mxu1 %v2536_v62  ;;  %2296 = vmatpush3.bf16.msra.mxu0 %v2557_v63 }
  0x7e   :  { %2388 = vmatpush3.bf16.msra.mxu1 %v2557_v63  ;;  %2297 = vmatprep.subr.bf16.mxu0 %v2564_v0 }
  0x7f   :  { %2381 = vmatprep.subr.bf16.mxu1 %v2564_v0 }
  0x81   :  { %2298 = vmatpush3.bf16.msra.mxu0 %v2565_v1 }
  0x82   :  { %2389 = vmatpush3.bf16.msra.mxu1 %v2565_v1 }
  0x83   :  { %1490 = vmatmul.mubr.bf16.gmra.mxu0 %v2538_v2  ;;  %2356 = vmatprep.subr.bf16.mxu1 %v2572_v4 }
  0x84   :  { %1587 = vmatmul.mubr.bf16.gmra.mxu1 %v2539_v3  ;;  %1497 = vmatprep.mubr.bf16.mxu0 %v2542_v5 }
  0x85   :  { %1594 = vmatprep.mubr.bf16.mxu1 %v2544_v6 }
  0x8b   :  { %1498 = vmatmul.mubr.bf16.gmra.mxu0 %v2546_v7 }
  0x8c   :  { %1595 = vmatmul.mubr.bf16.gmra.mxu1 %v2547_v8  ;;  %1505 = vmatprep.mubr.bf16.mxu0 %v2550_v9 }
  0x8d   :  { %1602 = vmatprep.mubr.bf16.mxu1 %v2552_v10 }
  0x93   :  { %1506 = vmatmul.mubr.bf16.gmra.mxu0 %v2554_v11 }
  0x94   :  { %1603 = vmatmul.mubr.bf16.gmra.mxu1 %v2555_v12  ;;  %1513 = vmatprep.mubr.bf16.mxu0 %v2558_v13 }
  0x95   :  { %1610 = vmatprep.mubr.bf16.mxu1 %v2560_v14 }
  0x9b   :  { %1514 = vmatmul.mubr.bf16.gmra.mxu0 %v2562_v15 }
  0x9c   :  { %1611 = vmatmul.mubr.bf16.gmra.mxu1 %v2563_v16  ;;  %1651 = vmatprep.mubr.bf16.mxu0 %v2568_v17 }
  0x9d   :  { %1699 = vmatprep.mubr.bf16.mxu1 %v2571_v18 }
  0xa3   :  { %1652 = vmatmul.mubr.bf16.vlgmr.msra.gmra.mxu0 %v2566_v19 }
  0xa4   :  { %1700 = vmatmul.mubr.bf16.vlgmr.msra.gmra.mxu1 %v2569_v20  ;;  %1659 = vmatprep.mubr.bf16.mxu0 %v2573_v21 }
  0xa5   :  { %2357 = vmatpush3.bf16.msra.mxu1 %v2572_v4  ;;  %1707 = vmatprep.mubr.bf16.mxu1 %v2575_v22 }
  0xab   :  { %1660 = vmatmul.mubr.bf16.gmra.mxu0 %v2577_v23 }
  0xac   :  { %1708 = vmatmul.mubr.bf16.gmra.mxu1 %v2578_v24  ;;  %1667 = vmatprep.mubr.bf16.mxu0 %v2579_v25 }
  0xad   :  { %2358 = vmatprep.mubr.msk.bf16.mxu1 %vm1206_vm0, %v2581_v26 }
  0xb3   :  { %1668 = vmatmul.mubr.bf16.gmra.mxu0 %v2582_v27 }
  0xb4   :  { %2359 = vmatmul.mubr.msk.bf16.vlgmr.msra.gmra.mxu1 %vm1206_vm0, %v2583_v28  ;;  %1675 = vmatprep.mubr.bf16.mxu0 %v2584_v29 }
  0xb5   :  { %2362 = vmatprep.mubr.msk.bf16.mxu1 %vm1206_vm0, %v2586_v30 }
  0xbb   :  { %1676 = vmatmul.mubr.bf16.gmra.mxu0 %v2587_v31 }
  0xbc   :  { %2363 = vmatmul.mubr.msk.bf16.gmra.mxu1 %vm1206_vm0, %v2588_v32  ;;  %1683 = vmatprep.mubr.bf16.mxu0 %v2589_v33 }
  0xbd   :  { %2366 = vmatprep.mubr.msk.bf16.mxu1 %vm1206_vm0, %v2591_v34 }
  0xc3   :  { %1684 = vmatmul.mubr.bf16.gmra.mxu0 %v2592_v35 }
  0xc4   :  { %2367 = vmatmul.mubr.msk.bf16.gmra.mxu1 %vm1206_vm0, %v2593_v36  ;;  %1691 = vmatprep.mubr.bf16.mxu0 %v2594_v37 }
  0xc5   :  { %2370 = vmatprep.mubr.msk.bf16.mxu1 %vm1206_vm0, %v2596_v38 }
  0xcb   :  { %1692 = vmatmul.mubr.bf16.gmra.mxu0 %v2597_v39 }
  0xcc   :  { %2371 = vmatmul.mubr.msk.bf16.gmra.mxu1 %vm1206_vm0, %v2598_v40 }
  0xe3   :  { %v2043_v41 = vpop.f32.mrf.mxu0 }
  0xe4   :  { %v2107_v42 = vpop.f32.mrf.mxu1 }
  0xe5   :  { %v2044_v44 = vpop.f32.mrf.mxu0 }
  0xe6   :  { %v2045_v45 = vadd.f32 %v2044_v44, %v2043_v41  ;;  %v2108_v46 = vpop.f32.mrf.mxu1 }
  0xe7   :  { %v2109_v47 = vadd.f32 %v2108_v46, %v2107_v42  ;;  %v2046_v48 = vpop.f32.mrf.mxu0 }
  0xe8   :  { %v1266_v49 = vadd.f32 %v2045_v45, %v3137_v43  ;;  %v2110_v50 = vpop.f32.mrf.mxu1 }
  0xe9   :  { %v2047_v51 = vpop.f32.mrf.mxu0 }
  0xea   :  { %v3140_v52 = vadd.f32 %v2109_v47, %v1266_v49  ;;  %v2048_v53 = vadd.f32 %v2047_v51, %v2046_v48  ;;  %v2111_v54 = vpop.f32.mrf.mxu1 }
  0xeb   :  { %v2112_v55 = vadd.f32 %v2111_v54, %v2110_v50  ;;  %v2049_v56 = vpop.f32.mrf.mxu0 }
  0xec   :  { %v1269_v57 = vadd.f32 %v2048_v53, %v3137_v43  ;;  %v2113_v58 = vpop.f32.mrf.mxu1 }
  0xed   :  { %v2050_v59 = vpop.f32.mrf.mxu0 }
  0xee   :  { %v3143_v60 = vadd.f32 %v2112_v55, %v1269_v57  ;;  %v2051_v61 = vadd.f32 %v2050_v59, %v2049_v56  ;;  %v2114_v62 = vpop.f32.mrf.mxu1 }
  0xef   :  { %v2115_v63 = vadd.f32 %v2114_v62, %v2113_v58  ;;  %v2052_v0 = vpop.f32.mrf.mxu0 }
  0xf0   :  { %v1274_v1 = vadd.f32 %v2051_v61, %v3137_v43  ;;  %v2116_v2 = vpop.f32.mrf.mxu1 }
  0xf1   :  { %v2053_v3 = vpop.f32.mrf.mxu0 }
  0xf2   :  { %v3146_v4 = vadd.f32 %v2115_v63, %v1274_v1  ;;  %v2054_v5 = vadd.f32 %v2053_v3, %v2052_v0  ;;  %v2117_v6 = vpop.f32.mrf.mxu1 }
  0xf3   :  { %v2118_v7 = vadd.f32 %v2117_v6, %v2116_v2  ;;  %v2055_v8 = vpop.f32.mrf.mxu0 }
  0xf4   :  { %v1277_v9 = vadd.f32 %v2054_v5, %v3137_v43  ;;  %v2119_v10 = vpop.f32.mrf.mxu1 }
  0xf5   :  { %v2056_v11 = vpop.f32.mrf.mxu0 }
  0xf6   :  { %v3149_v12 = vadd.f32 %v2118_v7, %v1277_v9  ;;  %v2057_v13 = vadd.f32 %v2056_v11, %v2055_v8  ;;  %v2120_v14 = vpop.f32.mrf.mxu1 }
  0xf7   :  { %v2121_v15 = vadd.f32 %v2120_v14, %v2119_v10  ;;  %v2058_v16 = vpop.f32.mrf.mxu0 }
  0xf8   :  { %v1282_v17 = vadd.f32 %v2057_v13, %v3137_v43  ;;  %v2122_v18 = vpop.f32.mrf.mxu1 }
  0xf9   :  { %v2059_v19 = vpop.f32.mrf.mxu0 }
  0xfa   :  { %v3152_v20 = vadd.f32 %v2121_v15, %v1282_v17  ;;  %v2060_v21 = vadd.f32 %v2059_v19, %v2058_v16  ;;  %v2123_v22 = vpop.f32.mrf.mxu1 }
  0xfb   :  { %v2124_v23 = vadd.f32 %v2123_v22, %v2122_v18  ;;  %v2061_v24 = vpop.f32.mrf.mxu0 }
  0xfc   :  { %v1285_v25 = vadd.f32 %v2060_v21, %v3137_v43  ;;  %v2125_v26 = vpop.f32.mrf.mxu1 }
  0xfd   :  { %v2062_v27 = vpop.f32.mrf.mxu0 }
  0xfe   :  { %v3155_v28 = vadd.f32 %v2124_v23, %v1285_v25  ;;  %v2063_v29 = vadd.f32 %v2062_v27, %v2061_v24  ;;  %v2126_v30 = vpop.f32.mrf.mxu1 }
  0xff   :  { %v2127_v31 = vadd.f32 %v2126_v30, %v2125_v26  ;;  %v2064_v32 = vpop.f32.mrf.mxu0 }
 0x100   :  { %v1290_v33 = vadd.f32 %v2063_v29, %v3137_v43  ;;  %v2128_v34 = vpop.f32.mrf.mxu1 }
 0x101   :  { %v2065_v35 = vpop.f32.mrf.mxu0 }
 0x102   :  { %v3158_v36 = vadd.f32 %v2127_v31, %v1290_v33  ;;  %v2066_v37 = vadd.f32 %v2065_v35, %v2064_v32  ;;  %v2129_v38 = vpop.f32.mrf.mxu1 }
 0x103   :  { %v2130_v39 = vadd.f32 %v2129_v38, %v2128_v34  ;;  %v2067_v40 = vpop.f32.mrf.mxu0 }
 0x104   :  { %v1293_v41 = vadd.f32 %v2066_v37, %v3137_v43  ;;  %v2131_v42 = vpop.f32.mrf.mxu1 }
 0x105   :  { %v2068_v44 = vpop.f32.mrf.mxu0 }
 0x106   :  { %v3161_v45 = vadd.f32 %v2130_v39, %v1293_v41  ;;  %v2069_v46 = vadd.f32 %v2068_v44, %v2067_v40  ;;  %v2132_v47 = vpop.f32.mrf.mxu1 }
 0x107   :  { %v2133_v48 = vadd.f32 %v2132_v47, %v2131_v42  ;;  %v2070_v49 = vpop.f32.mrf.mxu0 }
 0x108   :  { %v1298_v50 = vadd.f32 %v2069_v46, %v3137_v43  ;;  %v2134_v51 = vpop.f32.mrf.mxu1 }
 0x109   :  { %v2071_v53 = vpop.f32.mrf.mxu0 }
 0x10a   :  { %v3164_v54 = vadd.f32 %v2133_v48, %v1298_v50  ;;  %v2072_v55 = vadd.f32 %v2071_v53, %v2070_v49  ;;  %v2135_v56 = vpop.f32.mrf.mxu1 }
 0x10b   :  { %v2136_v57 = vadd.f32 %v2135_v56, %v2134_v51  ;;  %v2073_v58 = vpop.f32.mrf.mxu0 }
 0x10c   :  { %v1301_v59 = vadd.f32 %v2072_v55, %v3137_v43  ;;  %v2137_v61 = vpop.f32.mrf.mxu1 }
 0x10d   :  { %v2074_v62 = vpop.f32.mrf.mxu0 }
 0x10e   :  { %v3167_v63 = vadd.f32 %v2136_v57, %v1301_v59  ;;  %v2075_v0 = vadd.f32 %v2074_v62, %v2073_v58  ;;  %v2138_v1 = vpop.f32.mrf.mxu1 }
 0x10f   :  { %v2139_v2 = vadd.f32 %v2138_v1, %v2137_v61  ;;  %v2076_v3 = vpop.f32.mrf.mxu0 }
 0x110   :  { %v1306_v5 = vadd.f32 %v2075_v0, %v3137_v43  ;;  %v2140_v6 = vpop.f32.mrf.mxu1 }
 0x111   :  { %v2077_v7 = vpop.f32.mrf.mxu0 }
 0x112   :  { %v3170_v8 = vadd.f32 %v2139_v2, %v1306_v5  ;;  %v2078_v9 = vadd.f32 %v2077_v7, %v2076_v3  ;;  %v2141_v10 = vpop.f32.mrf.mxu1 }
 0x113   :  { %v2142_v11 = vadd.f32 %v2141_v10, %v2140_v6  ;;  %v2079_v13 = vpop.f32.mrf.mxu0 }
 0x114   :  { %3420 = vst [vmem:[#allocation2_spill] sm:$0xff] %v3170_v8  ;;  %v1309_v14 = vadd.f32 %v2078_v9, %v3137_v43  ;;  %v2143_v15 = vpop.f32.mrf.mxu1 }
 0x115   :  { %v2080_v16 = vpop.f32.mrf.mxu0 }
 0x116   :  { %v3173_v17 = vadd.f32 %v2142_v11, %v1309_v14  ;;  %v2081_v18 = vadd.f32 %v2080_v16, %v2079_v13  ;;  %v2144_v19 = vpop.f32.mrf.mxu1 }
 0x117   :  { %v2145_v21 = vadd.f32 %v2144_v19, %v2143_v15  ;;  %v2082_v22 = vpop.f32.mrf.mxu0 }
 0x118   :  { %3421 = vst [vmem:[#allocation3_spill] sm:$0xff] %v3173_v17  ;;  %v1314_v23 = vadd.f32 %v2081_v18, %v3137_v43  ;;  %v2146_v24 = vpop.f32.mrf.mxu1 }
 0x119   :  { %v2083_v25 = vpop.f32.mrf.mxu0 }
 0x11a   :  { %v3176_v26 = vadd.f32 %v2145_v21, %v1314_v23  ;;  %v2084_v27 = vadd.f32 %v2083_v25, %v2082_v22  ;;  %v2147_v29 = vpop.f32.mrf.mxu1 }
 0x11b   :  { %v2148_v30 = vadd.f32 %v2147_v29, %v2146_v24  ;;  %v2085_v31 = vpop.f32.mrf.mxu0 }
 0x11c   :  { %v1317_v32 = vadd.f32 %v2084_v27, %v3137_v43  ;;  %v2149_v33 = vpop.f32.mrf.mxu1 }
 0x11d   :  { %v2086_v34 = vpop.f32.mrf.mxu0 }
 0x11e   :  { %v3179_v35 = vadd.f32 %v2148_v30, %v1317_v32  ;;  %v2087_v37 = vadd.f32 %v2086_v34, %v2085_v31  ;;  %v2150_v38 = vpop.f32.mrf.mxu1 }
 0x11f   :  { %v2151_v39 = vadd.f32 %v2150_v38, %v2149_v33  ;;  %v2088_v40 = vpop.f32.mrf.mxu0 }
 0x120   :  { %3422 = vst [vmem:[#allocation4_spill] sm:$0xff] %v3179_v35  ;;  %v1322_v41 = vadd.f32 %v2087_v37, %v3137_v43  ;;  %v2152_v42 = vpop.f32.mrf.mxu1 }
 0x121   :  { %v2089_v44 = vpop.f32.mrf.mxu0 }
 0x122   :  { %v3182_v46 = vadd.f32 %v2151_v39, %v1322_v41  ;;  %v2090_v47 = vadd.f32 %v2089_v44, %v2088_v40  ;;  %v2153_v48 = vpop.f32.mrf.mxu1 }
 0x123   :  { %v2154_v49 = vadd.f32 %v2153_v48, %v2152_v42  ;;  %v2171_v50 = vpop.f32.mrf.mxu0 }
 0x124   :  { %v1325_v51 = vadd.f32 %v2090_v47, %v3137_v43  ;;  %v2235_v53 = vpop.f32.mrf.mxu1 }
 0x125   :  { %v2172_v55 = vpop.f32.mrf.mxu0 }
 0x126   :  { %v3185_v56 = vadd.f32 %v2154_v49, %v1325_v51  ;;  %v2173_v57 = vadd.f32 %v2172_v55, %v2171_v50  ;;  %v2236_v58 = vpop.f32.mrf.mxu1 }
 0x127   :  { %v2237_v59 = vadd.f32 %v2236_v58, %v2235_v53  ;;  %v2174_v61 = vpop.f32.mrf.mxu0 }
 0x128   :  { %3423 = vst [vmem:[#allocation5_spill] sm:$0xff] %v3185_v56  ;;  %v1460_v62 = vadd.f32 %v2173_v57, %v3140_v52  ;;  %v2238_v0 = vpop.f32.mrf.mxu1 }
 0x129   :  { %v2175_v1 = vpop.f32.mrf.mxu0 }
 0x12a   :  { %v3188_v2 = vadd.f32 %v2237_v59, %v1460_v62  ;;  %v2176_v3 = vadd.f32 %v2175_v1, %v2174_v61  ;;  %v2239_v5 = vpop.f32.mrf.mxu1 }
 0x12b   :  { %v2240_v6 = vadd.f32 %v2239_v5, %v2238_v0  ;;  %v2177_v7 = vpop.f32.mrf.mxu0 }
 0x12c   :  { %v1463_v43 = vadd.f32 %v2176_v3, %v3143_v60  ;;  %v2241_v9 = vpop.f32.mrf.mxu1 }
 0x12d   :  { %v2178_v10 = vpop.f32.mrf.mxu0 }
 0x12e   :  { %v3191_v11 = vadd.f32 %v2240_v6, %v1463_v43  ;;  %v2179_v13 = vadd.f32 %v2178_v10, %v2177_v7  ;;  %v2242_v14 = vpop.f32.mrf.mxu1 }
 0x12f   :  { %v2243_v15 = vadd.f32 %v2242_v14, %v2241_v9  ;;  %v2180_v16 = vpop.f32.mrf.mxu0 }
 0x130   :  { %v1468_v52 = vadd.f32 %v2179_v13, %v3146_v4  ;;  %v2244_v18 = vpop.f32.mrf.mxu1 }
 0x131   :  { %v2181_v19 = vpop.f32.mrf.mxu0 }
 0x132   :  { %v3194_v21 = vadd.f32 %v2243_v15, %v1468_v52  ;;  %v2182_v22 = vadd.f32 %v2181_v19, %v2180_v16  ;;  %v2245_v23 = vpop.f32.mrf.mxu1 }
 0x133   :  { %v2246_v24 = vadd.f32 %v2245_v23, %v2244_v18  ;;  %v2183_v25 = vpop.f32.mrf.mxu0 }
 0x134   :  { %v1471_v60 = vadd.f32 %v2182_v22, %v3149_v12  ;;  %v2247_v27 = vpop.f32.mrf.mxu1 }
 0x135   :  { %v2184_v29 = vpop.f32.mrf.mxu0 }
 0x136   :  { %v3197_v30 = vadd.f32 %v2246_v24, %v1471_v60  ;;  %v2185_v31 = vadd.f32 %v2184_v29, %v2183_v25  ;;  %v2248_v32 = vpop.f32.mrf.mxu1 }
 0x137   :  { %v2249_v33 = vadd.f32 %v2248_v32, %v2247_v27  ;;  %v2186_v34 = vpop.f32.mrf.mxu0 }
 0x138   :  { %v1476_v4 = vadd.f32 %v2185_v31, %v3152_v20  ;;  %v2250_v37 = vpop.f32.mrf.mxu1 }
 0x139   :  { %v2187_v38 = vpop.f32.mrf.mxu0 }
 0x13a   :  { %v3200_v39 = vadd.f32 %v2249_v33, %v1476_v4  ;;  %v2188_v40 = vadd.f32 %v2187_v38, %v2186_v34  ;;  %v2251_v41 = vpop.f32.mrf.mxu1 }
 0x13b   :  { %v2252_v42 = vadd.f32 %v2251_v41, %v2250_v37  ;;  %v3202_v44 = vpop.f32.mrf.mxu0 }
 0x13c   :  { %v1479_v12 = vadd.f32 %v2188_v40, %v3155_v28  ;;  %v3205_v47 = vpop.f32.mrf.mxu1 }
 0x13d   :  { %v3207_v48 = vpop.f32.mrf.mxu0 }
 0x13e   :  { %v3209_v49 = vadd.f32 %v2252_v42, %v1479_v12  ;;  %v3211_v50 = vpop.f32.mrf.mxu1 }
 0x13f   :  { %v3213_v20 = vpop.f32.mrf.mxu0 }
 0x140   :  { %v3215_v51 = vpop.f32.mrf.mxu1 }
 0x141   :  { %v3217_v53 = vpop.f32.mrf.mxu0 }
 0x142   :  { %v3219_v55 = vpop.f32.mrf.mxu1 }
 0x143   :  { %v3221_v57 = vpop.f32.mrf.mxu0 }
 0x144   :  { %v3223_v58 = vpop.f32.mrf.mxu1 }
 0x145   :  { %v3225_v28 = vpop.f32.mrf.mxu0 }
 0x146   :  { %v3227_v59 = vpop.f32.mrf.mxu1 }
 0x147   :  { %v3229_v61 = vpop.f32.mrf.mxu0 }
 0x148   :  { %v3231_v62 = vpop.f32.mrf.mxu1 }
 0x149   :  { %v3233_v0 = vpop.f32.mrf.mxu0 }
 0x14a   :  { %v3235_v1 = vpop.f32.mrf.mxu1 }
 0x14b   :  { %v3237_v3 = vpop.f32.mrf.mxu0 }
 0x14c   :  { %v3239_v5 = vpop.f32.mrf.mxu1 }
 0x14d   :  { %3424 = vst [vmem:[#allocation6_spill] sm:$0xff] %v3239_v5  ;;  %v3241_v6 = vpop.f32.mrf.mxu0 }
 0x14e   :  { %v3243_v7 = vpop.f32.mrf.mxu1 }
 0x14f   :  { %3425 = vst [vmem:[#allocation7_spill] sm:$0xff] %v3243_v7  ;;  %v3245_v43 = vpop.f32.mrf.mxu0 }
 0x150   :  { %3426 = vst [vmem:[#allocation8_spill] sm:$0xff] %v3245_v43  ;;  %v3247_v9 = vpop.f32.mrf.mxu1 }
 0x151   :  { %3427 = vst [vmem:[#allocation9_spill] sm:$0xff] %v3247_v9  ;;  %v3249_v10 = vpop.f32.mrf.mxu0 }
 0x152   :  { %3428 = vst [vmem:[#allocation10_spill] sm:$0xff] %v3249_v10  ;;  %v3251_v13 = vpop.f32.mrf.mxu1 }
 0x153   :  { %3429 = vst [vmem:[#allocation11_spill] sm:$0xff] %v3251_v13  ;;  %v3253_v14 = vpop.f32.mrf.mxu0 }
 0x154   :  { %v3255_v15 = vpop.f32.mrf.mxu1 }
 0x155   :  { %v3257_v16 = vpop.f32.mrf.mxu0 }
 0x156   :  { %v3259_v52 = vpop.f32.mrf.mxu1 }
 0x157   :  { %v3261_v18 = vpop.f32.mrf.mxu0 }
 0x158   :  { %v3263_v19 = vpop.f32.mrf.mxu1 }
 0x159   :  { %3430 = vst [vmem:[#allocation12_spill] sm:$0xff] %v3263_v19  ;;  %v3265_v22 = vpop.f32.mrf.mxu0 }
 0x15a   :  { %v3267_v23 = vpop.f32.mrf.mxu1 }
 0x15b   :  { %3431 = vst [vmem:[#allocation13_spill] sm:$0xff] %v3267_v23  ;;  %v3269_v24 = vpop.f32.mrf.mxu0 }
 0x15c   :  { %v3271_v25 = vpop.f32.mrf.mxu1 }
 0x15d   :  { %v3273_v60 = vpop.f32.mrf.mxu0 }
 0x15e   :  { %v3275_v27 = vpop.f32.mrf.mxu1 }
 0x15f   :  { %v3277_v29 = vpop.f32.mrf.mxu0 }
 0x160   :  { %v3279_v31 = vpop.f32.mrf.mxu1 }
 0x161   :  { %3432 = vst [vmem:[#allocation14_spill] sm:$0xff] %v3279_v31  ;;  %v3281_v32 = vpop.f32.mrf.mxu0 }
 0x162   :  { %v3283_v33 = vpop.f32.mrf.mxu1 }
 0x163   :  { %3433 = vst [vmem:[#allocation15_spill] sm:$0xff] %v3283_v33  ;;  %v2299_v34 = vpop.f32.mrf.mxu0 }
 0x164   :  { %v3285_v4 = vpop.f32.mrf.mxu1 }
 0x165   :  { %3434 = vst [vmem:[#allocation16_spill] sm:$0xff] %v3285_v4  ;;  %v2300_v37 = vpop.f32.mrf.mxu0 }
 0x166   :  { %v3287_v38 = vpop.f32.mrf.mxu1  ;;  %v2301_v35 = vadd.f32 %v2300_v37, %v2299_v34 }
 0x167   :  { %3435 = vst [vmem:[#allocation17_spill] sm:$0xff] %v3287_v38  ;;  %v2302_v40 = vpop.f32.mrf.mxu0 }
 0x168   :  { %v3289_v41 = vpop.f32.mrf.mxu1  ;;  %v1654_v5 = vadd.f32 %v2301_v35, %v3188_v2 }
 0x169   :  { %3436 = vst [vmem:[#allocation18_spill] sm:$0xff] %v3289_v41  ;;  %v2303_v42 = vpop.f32.mrf.mxu0 }
 0x16a   :  { %v3291_v12 = vpop.f32.mrf.mxu1 }
 0x16b   :  { %3437 = vst [vmem:[#allocation19_spill] sm:$0xff] %v3291_v12  ;;  %v2305_v13 = vpop.f32.mrf.mxu0  ;;  %v2304_v12 = vadd.f32 %v2303_v42, %v2302_v40  ;;  %v2258_v40 = vadd.f32 %v3219_v55, %v3215_v51  ;;  %v2264_v55 = vadd.f32 %v3235_v1, %v3231_v62  ;;  %v2279_v62 = vadd.f32 %v3275_v27, %v3271_v25 }
 0x16c   :  { %v3293_v9 = vpop.f32.mrf.mxu1  ;;  %v2218_v1 = vadd.f32 %v3281_v32, %v3277_v29  ;;  %v2212_v25 = vadd.f32 %v3265_v22, %v3261_v18  ;;  %v3446_v22 = vld [vmem:[#allocation16_spill] sm:$0xff] }
 0x16d   :  { %v2306_v17 = vpop.f32.mrf.mxu0  ;;  %v1657_v35 = vadd.f32 %v2304_v12, %v3191_v11 }
 0x16e   :  { %v3295_v23 = vpop.f32.mrf.mxu1  ;;  %v2307_v19 = vadd.f32 %v2306_v17, %v2305_v13  ;;  %v2191_v17 = vadd.f32 %v3207_v48, %v3202_v44  ;;  %v2194_v44 = vadd.f32 %v3217_v53, %v3213_v20  ;;  %v2197_v48 = vadd.f32 %v3225_v28, %v3221_v57 }
 0x16f   :  { %3438 = vst [vmem:[#allocation20_spill] sm:$0xff] %v3295_v23  ;;  %v2308_v33 = vpop.f32.mrf.mxu0 }
 0x170   :  { %v3297_v31 = vpop.f32.mrf.mxu1  ;;  %v1662_v41 = vadd.f32 %v2307_v19, %v3194_v21  ;;  %v1484_v2 = vadd.f32 %v2191_v17, %v3158_v36  ;;  %v1487_v57 = vadd.f32 %v2194_v44, %v3161_v45  ;;  %v2209_v17 = vadd.f32 %v3257_v16, %v3253_v14 }
 0x171   :  { %3439 = vst [vmem:[#allocation21_spill] sm:$0xff] %v3297_v31  ;;  %v2309_v10 = vpop.f32.mrf.mxu0 }
 0x172   :  { %v3299_v43 = vpop.f32.mrf.mxu1  ;;  %v2310_v38 = vadd.f32 %v2309_v10, %v2308_v33  ;;  %v2261_v33 = vadd.f32 %v3227_v59, %v3223_v58  ;;  %v1584_v59 = vadd.f32 %v2258_v40, %v1487_v57 }
 0x173   :  { %3440 = vst [vmem:[#allocation22_spill] sm:$0xff] %v3299_v43  ;;  %v2311_v4 = vpop.f32.mrf.mxu0 }
 0x174   :  { %v2360_v56 = vpop.f32.mrf.mxu1  ;;  %v1665_v37 = vadd.f32 %v2310_v38, %v3197_v30 }
 0x175   :  { %v1759_v8 = vadd.f32 %v2360_v56, %v1662_v41  ;;  %v2312_v7 = vpop.f32.mrf.mxu0 }
 0x176   :  { %v1750_v13 = vpop.f32.mrf.mxu1  ;;  %v2313_v21 = vadd.f32 %v2312_v7, %v2311_v4  ;;  %v3441_v27 = vld [vmem:[#allocation20_spill] sm:$0xff] }
 0x177   :  { %v1815_v23 = vmax.f32 %v1759_v8, 0.0  ;;  %v1751_v31 = vadd.f32 %v1750_v13, %v1654_v5  ;;  %v2314_v34 = vpop.f32.mrf.mxu0  ;;  %v2255_v8 = vadd.f32 %v3211_v50, %v3205_v47  ;;  %v2343_v29 = vadd.f32 %v3441_v27, %v3293_v9 }
 0x178   :  { %v2361_v43 = vpop.f32.mrf.mxu1  ;;  %v1670_v20 = vadd.f32 %v2313_v21, %v3200_v39  ;;  %v2200_v39 = vadd.f32 %v3233_v0, %v3229_v61  ;;  %v3453_v40 = vld [vmem:[#allocation21_spill] sm:$0xff] }
 0x179   :  { %1831 = vst [vmem:[%s3419_s3 + $0x10] sm:$0xff] %v1815_v23  ;;  %v1813_v10 = vmax.f32 %v1751_v31, 0.0  ;;  %v1762_v56 = vadd.f32 %v2361_v43, %v1665_v37  ;;  %v2315_v19 = vpop.f32.mrf.mxu0  ;;  %v1581_v53 = vadd.f32 %v2255_v8, %v1484_v2  ;;  %v1492_v31 = vadd.f32 %v2197_v48, %v3164_v54 }
 0x17a   :  { %v1753_v30 = vpop.f32.mrf.mxu1  ;;  %v2316_v36 = vadd.f32 %v2315_v19, %v2314_v34  ;;  %v2215_v54 = vadd.f32 %v3273_v60, %v3269_v24  ;;  %v1495_v24 = vadd.f32 %v2200_v39, %v3167_v63  ;;  %v1508_v19 = vadd.f32 %v2209_v17, %v3176_v26  ;;  %v3454_v39 = vld [vmem:[#allocation22_spill] sm:$0xff] }
 0x17b   :  { %1829 = vst [vmem:[%s3419_s3] sm:$0xff] %v1813_v10  ;;  %v1816_v5 = vmax.f32 %v1762_v56, 0.0  ;;  %v1754_v7 = vadd.f32 %v1753_v30, %v1657_v35  ;;  %v2317_v43 = vpop.f32.mrf.mxu0  ;;  %v1589_v51 = vadd.f32 %v2261_v33, %v1492_v31  ;;  %v2273_v63 = vadd.f32 %v3259_v52, %v3255_v15  ;;  %v3442_v15 = vld [vmem:[#allocation6_spill] sm:$0xff]  ;;  %v3443_v52 = vld [vmem:[#allocation7_spill] sm:$0xff] }
 0x17c   :  { %v2364_v11 = vpop.f32.mrf.mxu1  ;;  %v1673_v58 = vadd.f32 %v2316_v36, %v3209_v49  ;;  %v2203_v49 = vadd.f32 %v3241_v6, %v3237_v3  ;;  %v1516_v21 = vadd.f32 %v2215_v54, %v3182_v46  ;;  %v1592_v32 = vadd.f32 %v2264_v55, %v1495_v24  ;;  %v3444_v30 = vld [vmem:[#allocation2_spill] sm:$0xff]  ;;  %v3448_v36 = vld [vmem:[#allocation8_spill] sm:$0xff] }
 0x17d   :  { %1832 = vst [vmem:[%s3419_s3 + $0x18] sm:$0xff] %v1816_v5  ;;  %v1814_v47 = vmax.f32 %v1754_v7, 0.0  ;;  %v2318_v50 = vpop.f32.mrf.mxu0  ;;  %v2267_v35 = vadd.f32 %v3443_v52, %v3442_v15  ;;  %v3445_v7 = vld [vmem:[#allocation5_spill] sm:$0xff]  ;;  %v3451_v33 = vld [vmem:[#allocation14_spill] sm:$0xff] }
 0x17e   :  { %v2319_v28 = vadd.f32 %v2318_v50, %v2317_v43  ;;  %v1766_v23 = vpop.f32.mrf.mxu1  ;;  %v1500_v48 = vadd.f32 %v2203_v49, %v3444_v30  ;;  %v1613_v5 = vadd.f32 %v2279_v62, %v1516_v21  ;;  %v1519_v18 = vadd.f32 %v2218_v1, %v3445_v7  ;;  %v3447_v43 = vld [vmem:[#allocation17_spill] sm:$0xff] }
 0x17f   :  { %1830 = vst [vmem:[%s3419_s3 + $0x8] sm:$0xff] %v1814_v47  ;;  %v1767_v4 = vadd.f32 %v1766_v23, %v1670_v20  ;;  %v2320_v38 = vpop.f32.mrf.mxu0  ;;  %v2337_v9 = vadd.f32 %v3447_v43, %v3446_v22  ;;  %v3449_v47 = vld [vmem:[#allocation10_spill] sm:$0xff]  ;;  %v1605_v20 = vadd.f32 %v2273_v63, %v1508_v19  ;;  %v3450_v23 = vld [vmem:[#allocation4_spill] sm:$0xff] }
 0x180   :  { %v1678_v45 = vadd.f32 %v2319_v28, %v1581_v53  ;;  %v2365_v41 = vpop.f32.mrf.mxu1  ;;  %v2206_v50 = vadd.f32 %v3449_v47, %v3448_v36  ;;  %v1511_v31 = vadd.f32 %v2212_v25, %v3450_v23  ;;  %v1710_v54 = vadd.f32 %v2343_v29, %v1613_v5 }
 0x181   :  { %v1817_v42 = vmax.f32 %v1767_v4, 0.0  ;;  %v2321_v12 = vpop.f32.mrf.mxu0  ;;  %v3452_v4 = vld [vmem:[#allocation15_spill] sm:$0xff]  ;;  %v1702_v24 = vadd.f32 %v2337_v9, %v1605_v20  ;;  %v1597_v49 = vadd.f32 %v2267_v35, %v1500_v48 }
 0x182   :  { %v1775_v13 = vadd.f32 %v2364_v11, %v1678_v45  ;;  %v2322_v34 = vadd.f32 %v2321_v12, %v2320_v38  ;;  %v1769_v37 = vpop.f32.mrf.mxu1  ;;  %v2282_v38 = vadd.f32 %v3452_v4, %v3451_v33  ;;  %v2346_v45 = vadd.f32 %v3454_v39, %v3453_v40  ;;  %v3456_v12 = vld [vmem:[#allocation13_spill] sm:$0xff] }
 0x183   :  { %1833 = vst [vmem:[%s3419_s3 + $0x20] sm:$0xff] %v1817_v42  ;;  %v1770_v61 = vadd.f32 %v1769_v37, %v1673_v58  ;;  %v2323_v0 = vpop.f32.mrf.mxu0  ;;  %v3455_v42 = vld [vmem:[#allocation12_spill] sm:$0xff]  ;;  %v3457_v37 = vld [vmem:[#allocation18_spill] sm:$0xff] }
 0x184   :  { %v1819_v60 = vmax.f32 %v1775_v13, 0.0  ;;  %v1681_v14 = vadd.f32 %v2322_v34, %v1584_v59  ;;  %v3348_v16 = vpop.f32.mrf.mxu1  ;;  %v2276_v58 = vadd.f32 %v3456_v12, %v3455_v42  ;;  %v1616_v34 = vadd.f32 %v2282_v38, %v1519_v18 }
 0x185   :  { %v1818_v10 = vmax.f32 %v1770_v61, 0.0  ;;  %v2324_v56 = vpop.f32.mrf.mxu0 }
 0x186   :  { %1835 = vst [vmem:[%s3419_s3 + $0x30] sm:$0xff] %v1819_v60  ;;  %v1778_v3 = vadd.f32 %v2365_v41, %v1681_v14  ;;  %v2325_v6 = vadd.f32 %v2324_v56, %v2323_v0  ;;  %v1782_v46 = vpop.f32.mrf.mxu1  ;;  %v3459_v60 = vld [vmem:[#allocation3_spill] sm:$0xff] }
 0x187   :  { %1834 = vst [vmem:[%s3419_s3 + $0x28] sm:$0xff] %v1818_v10  ;;  %v2326_v26 = vpop.f32.mrf.mxu0  ;;  %v1503_v14 = vadd.f32 %v2206_v50, %v3459_v60  ;;  %v1608_v10 = vadd.f32 %v2276_v58, %v1511_v31 }
 0x188   :  { %v1820_v2 = vmax.f32 %v1778_v3, 0.0  ;;  %v1686_v8 = vadd.f32 %v2325_v6, %v1589_v51  ;;  %v2369_v44 = vpop.f32.mrf.mxu1  ;;  %v3458_v51 = vld [vmem:[#allocation19_spill] sm:$0xff]  ;;  %v1713_v3 = vadd.f32 %v2346_v45, %v1616_v34  ;;  %v3460_v6 = vld [vmem:[#allocation9_spill] sm:$0xff] }
 0x189   :  { %v2327_v11 = vpop.f32.mrf.mxu0  ;;  %v2340_v55 = vadd.f32 %v3458_v51, %v3457_v37 }
 0x18a   :  { %1836 = vst [vmem:[%s3419_s3 + $0x38] sm:$0xff] %v1820_v2  ;;  %v1783_v53 = vadd.f32 %v1782_v46, %v1686_v8  ;;  %v2328_v57 = vadd.f32 %v2327_v11, %v2326_v26  ;;  %v1785_v28 = vpop.f32.mrf.mxu1  ;;  %v3461_v46 = vld [vmem:[#allocation11_spill] sm:$0xff] }
 0x18b   :  { %v2329_v41 = vpop.f32.mrf.mxu0  ;;  %v2270_v25 = vadd.f32 %v3461_v46, %v3460_v6  ;;  %v1705_v35 = vadd.f32 %v2340_v55, %v1608_v10 }
 0x18c   :  { %v1821_v59 = vmax.f32 %v1783_v53, 0.0  ;;  %v1689_v17 = vadd.f32 %v2328_v57, %v1592_v32  ;;  %v2372_v13 = vpop.f32.mrf.mxu1 }
 0x18d   :  { %v1807_v61 = vadd.f32 %v2372_v13, %v1710_v54  ;;  %v2330_v0 = vpop.f32.mrf.mxu0  ;;  %v1600_v2 = vadd.f32 %v2270_v25, %v1503_v14 }
 0x18e   :  { %1837 = vst [vmem:[%s3419_s3 + $0x40] sm:$0xff] %v1821_v59  ;;  %v1786_v21 = vadd.f32 %v1785_v28, %v1689_v17  ;;  %v2331_v62 = vadd.f32 %v2330_v0, %v2329_v41  ;;  %v1798_v1 = vpop.f32.mrf.mxu1 }
 0x18f   :  { %v1827_v56 = vmax.f32 %v1807_v61, 0.0  ;;  %v1799_v19 = vadd.f32 %v1798_v1, %v1702_v24  ;;  %v2332_v63 = vpop.f32.mrf.mxu0 }
 0x190   :  { %v1822_v27 = vmax.f32 %v1786_v21, 0.0  ;;  %v1694_v29 = vadd.f32 %v2331_v62, %v1597_v49  ;;  %v2373_v26 = vpop.f32.mrf.mxu1 }
 0x191   :  { %1843 = vst [vmem:[%s3419_s3 + $0x70] sm:$0xff] %v1827_v56  ;;  %v1825_v32 = vmax.f32 %v1799_v19, 0.0  ;;  %v1810_v15 = vadd.f32 %v2373_v26, %v1713_v3  ;;  %v2333_v52 = vpop.f32.mrf.mxu0 }
 0x192   :  { %1838 = vst [vmem:[%s3419_s3 + $0x48] sm:$0xff] %v1822_v27  ;;  %v1791_v8 = vadd.f32 %v3348_v16, %v1694_v29  ;;  %v2334_v30 = vadd.f32 %v2333_v52, %v2332_v63  ;;  %v1801_v48 = vpop.f32.mrf.mxu1 }
 0x193   :  { %1841 = vst [vmem:[%s3419_s3 + $0x60] sm:$0xff] %v1825_v32  ;;  %v1828_v5 = vmax.f32 %v1810_v15, 0.0  ;;  %v1802_v7 = vadd.f32 %v1801_v48, %v1705_v35 }
 0x194   :  { %v1823_v18 = vmax.f32 %v1791_v8, 0.0  ;;  %v1697_v22 = vadd.f32 %v2334_v30, %v1600_v2 }
 0x195   :  { %1844 = vst [vmem:[%s3419_s3 + $0x78] sm:$0xff] %v1828_v5  ;;  %v1826_v43 = vmax.f32 %v1802_v7, 0.0 }
 0x196   :  { %1839 = vst [vmem:[%s3419_s3 + $0x50] sm:$0xff] %v1823_v18  ;;  %v1794_v16 = vadd.f32 %v2369_v44, %v1697_v22 }
 0x197   :  { %1842 = vst [vmem:[%s3419_s3 + $0x68] sm:$0xff] %v1826_v43 }
 0x198   :  { %v1824_v9 = vmax.f32 %v1794_v16, 0.0 }
 0x19a   :  { %1840 = vst [vmem:[%s3419_s3 + $0x58] sm:$0xff] %v1824_v9 }

// kernel: idnet_forward.17
= control target key start
LH: loop header
LB: loop body
LE: loop exit
PB: predicated region body
PF: predicated region fallthrough
CT: control target
= control target key end

     0   :  { %v426_v0 = vmov 0   ;;  %vm182_vm0 = vcmask 130048   ;;  %s599_s1 = inlined_call_operand.vmem [shape: bf16[144,128], index: 1, kind: input, shape index: {}]   ;;  %s600_s0 = inlined_call_operand.vmem [shape: bf16[128,144], index: 0, kind: input, shape index: {}]   ;;  %s601_s2 = inlined_call_operand.vmem [shape: f32[1,128], index: 2, kind: input, shape index: {}]   ;;  %s602_s3 = inlined_call_operand.vmem [shape: f32[128,128], index: 3, kind: output, shape index: {}]  }
   0x1   :  { %207 = vmatprep.subr.bf16.mxu0 %v426_v0  ;;  %374 = vmatprep.subr.bf16.mxu1 %v426_v0  ;;  %v393_v1 = vld [vmem:[%s599_s1 + $0x38] sm:$0xff]   ;;  %v394_v2 = vld [vmem:[%s599_s1 + $0x30] sm:$0xff]   ;;  %v395_v3 = vld [vmem:[%s599_s1 + $0x28] sm:$0xff]  }
   0x2   :  { %208 = vmatpush1.bf16.msra.mxu0 %v393_v1  ;;  %383 = vmatpush1.bf16.msra.mxu1 %v393_v1  ;;  %v396_v4 = vld [vmem:[%s599_s1 + $0x20] sm:$0xff]   ;;  %v397_v7 = vld [vmem:[%s599_s1 + $0x18] sm:$0xff]   ;;  %v398_v8 = vld [vmem:[%s599_s1 + $0x10] sm:$0xff]  }
   0x3   :  { %209 = vmatprep.subr.bf16.mxu0 %v426_v0  ;;  %375 = vmatprep.subr.bf16.mxu1 %v426_v0  ;;  %v404_v5 = vld [vmem:[%s600_s0 + $0x4] ss:$8 sps:$4 sm:$0xff]   ;;  %v402_v12 = vld [vmem:[%s600_s0] ss:$8 sps:$4 sm:$0xff]   ;;  %v408_v14 = vld [vmem:[%s600_s0 + $0x14] ss:$8 sps:$4 sm:$0xff]  }
   0x4   :  { %v407_v6 = vld [vmem:[%s600_s0 + $0x44] ss:$8 sps:$4 sm:$0xff]   ;;  %366 = vmatprep.mubr.msk.bf16.mxu0 %vm182_vm0, %v404_v5  ;;  %v405_v13 = vld [vmem:[%s600_s0 + $0x40] ss:$8 sps:$4 sm:$0xff]   ;;  %v410_v15 = vld [vmem:[%s600_s0 + $0x54] ss:$8 sps:$4 sm:$0xff]  }
   0x5   :  { %370 = vmatprep.mubr.msk.bf16.mxu1 %vm182_vm0, %v407_v6  ;;  %v399_v9 = vld [vmem:[%s599_s1 + $0x8] sm:$0xff]   ;;  %v400_v10 = vld [vmem:[%s599_s1] sm:$0xff]   ;;  %v412_v16 = vld [vmem:[%s600_s0 + $0x10] ss:$8 sps:$4 sm:$0xff]  }
   0x6   :  { %210 = vmatpush1.bf16.msra.mxu0 %v394_v2  ;;  %384 = vmatpush1.bf16.msra.mxu1 %v394_v2  ;;  %v401_v11 = vld [vmem:[%s599_s1 + $0x40] sm:$0xff]   ;;  %v413_v17 = vld [vmem:[%s600_s0 + $0x50] ss:$8 sps:$4 sm:$0xff]   ;;  %v420_v22 = vld [vmem:[%s600_s0 + $0x34] ss:$8 sps:$4 sm:$0xff]  }
   0x7   :  { %211 = vmatprep.subr.bf16.mxu0 %v426_v0  ;;  %376 = vmatprep.subr.bf16.mxu1 %v426_v0  ;;  %v414_v18 = vld [vmem:[%s600_s0 + $0x24] ss:$8 sps:$4 sm:$0xff]   ;;  %v418_v20 = vld [vmem:[%s600_s0 + $0x20] ss:$8 sps:$4 sm:$0xff]   ;;  %v422_v23 = vld [vmem:[%s600_s0 + $0x74] ss:$8 sps:$4 sm:$0xff]  }
   0x8   :  { %v416_v19 = vld [vmem:[%s600_s0 + $0x64] ss:$8 sps:$4 sm:$0xff]   ;;  %v419_v21 = vld [vmem:[%s600_s0 + $0x60] ss:$8 sps:$4 sm:$0xff]   ;;  %v424_v24 = vld [vmem:[%s600_s0 + $0x30] ss:$8 sps:$4 sm:$0xff]  }
   0x9   :  { %v425_v25 = vld [vmem:[%s600_s0 + $0x70] ss:$8 sps:$4 sm:$0xff]   ;;  %v533_v26 = vld [vmem:[%s601_s2] ss:$0 sm:$0xff] }
   0xa   :  { %212 = vmatpush1.bf16.msra.mxu0 %v395_v3  ;;  %385 = vmatpush1.bf16.msra.mxu1 %v395_v3 }
   0xb   :  { %213 = vmatprep.subr.bf16.mxu0 %v426_v0  ;;  %377 = vmatprep.subr.bf16.mxu1 %v426_v0 }
   0xe   :  { %214 = vmatpush1.bf16.msra.mxu0 %v396_v4  ;;  %386 = vmatpush1.bf16.msra.mxu1 %v396_v4 }
   0xf   :  { %215 = vmatprep.subr.bf16.mxu0 %v426_v0  ;;  %378 = vmatprep.subr.bf16.mxu1 %v426_v0 }
  0x12   :  { %216 = vmatpush1.bf16.msra.mxu0 %v397_v7  ;;  %387 = vmatpush1.bf16.msra.mxu1 %v397_v7 }
  0x13   :  { %217 = vmatprep.subr.bf16.mxu0 %v426_v0  ;;  %379 = vmatprep.subr.bf16.mxu1 %v426_v0 }
  0x16   :  { %218 = vmatpush1.bf16.msra.mxu0 %v398_v8  ;;  %388 = vmatpush1.bf16.msra.mxu1 %v398_v8 }
  0x17   :  { %219 = vmatprep.subr.bf16.mxu0 %v426_v0  ;;  %380 = vmatprep.subr.bf16.mxu1 %v426_v0 }
  0x1a   :  { %220 = vmatpush1.bf16.msra.mxu0 %v399_v9  ;;  %389 = vmatpush1.bf16.msra.mxu1 %v399_v9 }
  0x1b   :  { %221 = vmatprep.subr.bf16.mxu0 %v426_v0  ;;  %381 = vmatprep.subr.bf16.mxu1 %v426_v0 }
  0x1e   :  { %222 = vmatpush1.bf16.msra.mxu0 %v400_v10  ;;  %390 = vmatpush1.bf16.msra.mxu1 %v400_v10 }
  0x1f   :  { %237 = vmatprep.subr.bf16.mxu0 %v426_v0  ;;  %382 = vmatprep.subr.bf16.mxu1 %v426_v0 }
  0x22   :  { %238 = vmatpush2.bf16.msra.mxu0 %v401_v11  ;;  %391 = vmatpush2.bf16.msra.mxu1 %v401_v11 }
  0x25   :  { %240 = vmatmul.mubr.bf16.vlgmr.msra.gmra.mxu0 %v402_v12  ;;  %272 = vmatmul.mubr.bf16.vlgmr.msra.gmra.mxu1 %v405_v13 }
  0x26   :  { %367 = vmatprep.mubr.msk.bf16.mxu0 %vm182_vm0, %v408_v14  ;;  %371 = vmatprep.mubr.msk.bf16.mxu1 %vm182_vm0, %v410_v15 }
  0x2d   :  { %248 = vmatmul.mubr.bf16.gmra.mxu0 %v412_v16  ;;  %280 = vmatmul.mubr.bf16.gmra.mxu1 %v413_v17 }
  0x2e   :  { %368 = vmatprep.mubr.msk.bf16.mxu0 %vm182_vm0, %v414_v18  ;;  %372 = vmatprep.mubr.msk.bf16.mxu1 %vm182_vm0, %v416_v19 }
  0x35   :  { %256 = vmatmul.mubr.bf16.gmra.mxu0 %v418_v20  ;;  %288 = vmatmul.mubr.bf16.gmra.mxu1 %v419_v21 }
  0x36   :  { %369 = vmatprep.mubr.msk.bf16.mxu0 %vm182_vm0, %v420_v22  ;;  %373 = vmatprep.mubr.msk.bf16.mxu1 %vm182_vm0, %v422_v23 }
  0x3d   :  { %264 = vmatmul.mubr.bf16.gmra.mxu0 %v424_v24  ;;  %296 = vmatmul.mubr.bf16.gmra.mxu1 %v425_v25 }
  0xe5   :  { %v241_v27 = vpop.f32.mrf.mxu0  ;;  %v273_v28 = vpop.f32.mrf.mxu1 }
  0xe6   :  { %v242_v29 = vadd.f32 %v533_v26, %v241_v27  ;;  %v274_v30 = vadd.f32 %v533_v26, %v273_v28 }
  0xe7   :  { %v243_v31 = vpop.f32.mrf.mxu0  ;;  %v275_v32 = vpop.f32.mrf.mxu1 }
  0xe8   :  { %v304_v33 = vmax.f32 %v242_v29, 0.0  ;;  %v312_v34 = vmax.f32 %v274_v30, 0.0 }
  0xe9   :  { %v244_v35 = vpop.f32.mrf.mxu0  ;;  %v276_v36 = vpop.f32.mrf.mxu1 }
  0xea   :  { %320 = vst [vmem:[%s602_s3] sm:$0xff] %v304_v33  ;;  %328 = vst [vmem:[%s602_s3 + $0x40] sm:$0xff] %v312_v34  ;;  %v245_v37 = vadd.f32 %v533_v26, %v244_v35  ;;  %v277_v38 = vadd.f32 %v533_v26, %v276_v36 }
  0xeb   :  { %v246_v39 = vpop.f32.mrf.mxu0  ;;  %v278_v40 = vpop.f32.mrf.mxu1 }
  0xec   :  { %v305_v41 = vmax.f32 %v245_v37, 0.0  ;;  %v313_v42 = vmax.f32 %v277_v38, 0.0 }
  0xed   :  { %v249_v43 = vpop.f32.mrf.mxu0  ;;  %v281_v44 = vpop.f32.mrf.mxu1 }
  0xee   :  { %321 = vst [vmem:[%s602_s3 + $0x8] sm:$0xff] %v305_v41  ;;  %329 = vst [vmem:[%s602_s3 + $0x48] sm:$0xff] %v313_v42  ;;  %v250_v45 = vadd.f32 %v533_v26, %v249_v43  ;;  %v282_v46 = vadd.f32 %v533_v26, %v281_v44 }
  0xef   :  { %v251_v47 = vpop.f32.mrf.mxu0  ;;  %v283_v48 = vpop.f32.mrf.mxu1 }
  0xf0   :  { %v306_v49 = vmax.f32 %v250_v45, 0.0  ;;  %v314_v50 = vmax.f32 %v282_v46, 0.0 }
  0xf1   :  { %v252_v51 = vpop.f32.mrf.mxu0  ;;  %v284_v52 = vpop.f32.mrf.mxu1 }
  0xf2   :  { %322 = vst [vmem:[%s602_s3 + $0x10] sm:$0xff] %v306_v49  ;;  %330 = vst [vmem:[%s602_s3 + $0x50] sm:$0xff] %v314_v50  ;;  %v253_v53 = vadd.f32 %v533_v26, %v252_v51  ;;  %v285_v54 = vadd.f32 %v533_v26, %v284_v52 }
  0xf3   :  { %v254_v55 = vpop.f32.mrf.mxu0  ;;  %v286_v56 = vpop.f32.mrf.mxu1 }
  0xf4   :  { %v307_v57 = vmax.f32 %v253_v53, 0.0  ;;  %v315_v58 = vmax.f32 %v285_v54, 0.0 }
  0xf5   :  { %v257_v59 = vpop.f32.mrf.mxu0  ;;  %v289_v60 = vpop.f32.mrf.mxu1 }
  0xf6   :  { %323 = vst [vmem:[%s602_s3 + $0x18] sm:$0xff] %v307_v57  ;;  %331 = vst [vmem:[%s602_s3 + $0x58] sm:$0xff] %v315_v58  ;;  %v258_v61 = vadd.f32 %v533_v26, %v257_v59  ;;  %v290_v62 = vadd.f32 %v533_v26, %v289_v60 }
  0xf7   :  { %v259_v63 = vpop.f32.mrf.mxu0  ;;  %v291_v0 = vpop.f32.mrf.mxu1 }
  0xf8   :  { %v308_v1 = vmax.f32 %v258_v61, 0.0  ;;  %v316_v2 = vmax.f32 %v290_v62, 0.0 }
  0xf9   :  { %v260_v3 = vpop.f32.mrf.mxu0  ;;  %v292_v4 = vpop.f32.mrf.mxu1 }
  0xfa   :  { %324 = vst [vmem:[%s602_s3 + $0x20] sm:$0xff] %v308_v1  ;;  %332 = vst [vmem:[%s602_s3 + $0x60] sm:$0xff] %v316_v2  ;;  %v261_v5 = vadd.f32 %v533_v26, %v260_v3  ;;  %v293_v6 = vadd.f32 %v533_v26, %v292_v4 }
  0xfb   :  { %v262_v7 = vpop.f32.mrf.mxu0  ;;  %v294_v8 = vpop.f32.mrf.mxu1 }
  0xfc   :  { %v309_v9 = vmax.f32 %v261_v5, 0.0  ;;  %v317_v10 = vmax.f32 %v293_v6, 0.0 }
  0xfd   :  { %v265_v11 = vpop.f32.mrf.mxu0  ;;  %v297_v12 = vpop.f32.mrf.mxu1 }
  0xfe   :  { %325 = vst [vmem:[%s602_s3 + $0x28] sm:$0xff] %v309_v9  ;;  %333 = vst [vmem:[%s602_s3 + $0x68] sm:$0xff] %v317_v10  ;;  %v266_v13 = vadd.f32 %v533_v26, %v265_v11  ;;  %v298_v14 = vadd.f32 %v533_v26, %v297_v12 }
  0xff   :  { %v267_v15 = vpop.f32.mrf.mxu0  ;;  %v299_v16 = vpop.f32.mrf.mxu1 }
 0x100   :  { %v310_v17 = vmax.f32 %v266_v13, 0.0  ;;  %v318_v18 = vmax.f32 %v298_v14, 0.0 }
 0x101   :  { %v268_v19 = vpop.f32.mrf.mxu0  ;;  %v300_v20 = vpop.f32.mrf.mxu1 }
 0x102   :  { %326 = vst [vmem:[%s602_s3 + $0x30] sm:$0xff] %v310_v17  ;;  %334 = vst [vmem:[%s602_s3 + $0x70] sm:$0xff] %v318_v18  ;;  %v269_v21 = vadd.f32 %v533_v26, %v268_v19  ;;  %v301_v22 = vadd.f32 %v533_v26, %v300_v20 }
 0x103   :  { %v270_v23 = vpop.f32.mrf.mxu0  ;;  %v302_v24 = vpop.f32.mrf.mxu1 }
 0x104   :  { %v311_v25 = vmax.f32 %v269_v21, 0.0  ;;  %v319_v27 = vmax.f32 %v301_v22, 0.0 }
 0x106   :  { %327 = vst [vmem:[%s602_s3 + $0x38] sm:$0xff] %v311_v25  ;;  %335 = vst [vmem:[%s602_s3 + $0x78] sm:$0xff] %v319_v27 }

// kernel: idnet_forward.18
= control target key start
LH: loop header
LB: loop body
LE: loop exit
PB: predicated region body
PF: predicated region fallthrough
CT: control target
= control target key end

     0   :  { %v230_v0 = vmov 0   ;;  %vm116_vm0 = vcmask 130048   ;;  %s305_s1 = inlined_call_operand.vmem [shape: bf16[144,128], index: 1, kind: input, shape index: {}]   ;;  %s306_s0 = inlined_call_operand.vmem [shape: bf16[32,144], index: 0, kind: input, shape index: {}]   ;;  %s307_s2 = inlined_call_operand.vmem [shape: f32[1,128], index: 2, kind: input, shape index: {}]   ;;  %s308_s3 = inlined_call_operand.vmem [shape: f32[32,128], index: 3, kind: output, shape index: {}]  }
   0x1   :  { %123 = vmatprep.subr.bf16.mxu0 %v230_v0  ;;  %196 = vmatprep.subr.bf16.mxu1 %v230_v0  ;;  %v215_v1 = vld [vmem:[%s305_s1 + $0x38] sm:$0xff]   ;;  %v216_v2 = vld [vmem:[%s305_s1 + $0x30] sm:$0xff]   ;;  %v217_v3 = vld [vmem:[%s305_s1 + $0x28] sm:$0xff]  }
   0x2   :  { %124 = vmatpush1.bf16.msra.mxu0 %v215_v1  ;;  %205 = vmatpush1.bf16.msra.mxu1 %v215_v1  ;;  %v218_v4 = vld [vmem:[%s305_s1 + $0x20] sm:$0xff]   ;;  %v229_v6 = vld [vmem:[%s306_s0 + $0x14] ss:$8 sps:$4 sm:$0xff]   ;;  %v221_v9 = vld [vmem:[%s305_s1 + $0x8] sm:$0xff]  }
   0x3   :  { %125 = vmatprep.subr.bf16.mxu0 %v230_v0  ;;  %197 = vmatprep.subr.bf16.mxu1 %v230_v0  ;;  %v226_v5 = vld [vmem:[%s306_s0 + $0x4] ss:$8 sps:$4 sm:$0xff]   ;;  %v219_v7 = vld [vmem:[%s305_s1 + $0x18] sm:$0xff]   ;;  %v220_v8 = vld [vmem:[%s305_s1 + $0x10] sm:$0xff]  }
   0x4   :  { %194 = vmatprep.mubr.msk.bf16.mxu0 %vm116_vm0, %v226_v5  ;;  %195 = vmatprep.mubr.msk.bf16.mxu1 %vm116_vm0, %v229_v6  ;;  %v222_v10 = vld [vmem:[%s305_s1] sm:$0xff]   ;;  %v227_v13 = vld [vmem:[%s306_s0 + $0x10] ss:$8 sps:$4 sm:$0xff]  }
   0x5   :  { %v223_v11 = vld [vmem:[%s305_s1 + $0x40] sm:$0xff]  }
   0x6   :  { %126 = vmatpush1.bf16.msra.mxu0 %v216_v2  ;;  %206 = vmatpush1.bf16.msra.mxu1 %v216_v2  ;;  %v224_v12 = vld [vmem:[%s306_s0] ss:$8 sps:$4 sm:$0xff]  }
   0x7   :  { %127 = vmatprep.subr.bf16.mxu0 %v230_v0  ;;  %198 = vmatprep.subr.bf16.mxu1 %v230_v0  ;;  %v180_v14 = vld [vmem:[%s307_s2] ss:$0 sm:$0xff] }
   0xa   :  { %128 = vmatpush1.bf16.msra.mxu0 %v217_v3  ;;  %207 = vmatpush1.bf16.msra.mxu1 %v217_v3 }
   0xb   :  { %129 = vmatprep.subr.bf16.mxu0 %v230_v0  ;;  %199 = vmatprep.subr.bf16.mxu1 %v230_v0 }
   0xe   :  { %130 = vmatpush1.bf16.msra.mxu0 %v218_v4  ;;  %208 = vmatpush1.bf16.msra.mxu1 %v218_v4 }
   0xf   :  { %131 = vmatprep.subr.bf16.mxu0 %v230_v0  ;;  %200 = vmatprep.subr.bf16.mxu1 %v230_v0 }
  0x12   :  { %132 = vmatpush1.bf16.msra.mxu0 %v219_v7  ;;  %209 = vmatpush1.bf16.msra.mxu1 %v219_v7 }
  0x13   :  { %133 = vmatprep.subr.bf16.mxu0 %v230_v0  ;;  %201 = vmatprep.subr.bf16.mxu1 %v230_v0 }
  0x16   :  { %134 = vmatpush1.bf16.msra.mxu0 %v220_v8  ;;  %210 = vmatpush1.bf16.msra.mxu1 %v220_v8 }
  0x17   :  { %135 = vmatprep.subr.bf16.mxu0 %v230_v0  ;;  %202 = vmatprep.subr.bf16.mxu1 %v230_v0 }
  0x1a   :  { %136 = vmatpush1.bf16.msra.mxu0 %v221_v9  ;;  %211 = vmatpush1.bf16.msra.mxu1 %v221_v9 }
  0x1b   :  { %137 = vmatprep.subr.bf16.mxu0 %v230_v0  ;;  %203 = vmatprep.subr.bf16.mxu1 %v230_v0 }
  0x1e   :  { %138 = vmatpush1.bf16.msra.mxu0 %v222_v10  ;;  %212 = vmatpush1.bf16.msra.mxu1 %v222_v10 }
  0x1f   :  { %153 = vmatprep.subr.bf16.mxu0 %v230_v0  ;;  %204 = vmatprep.subr.bf16.mxu1 %v230_v0 }
  0x22   :  { %154 = vmatpush2.bf16.msra.mxu0 %v223_v11  ;;  %213 = vmatpush2.bf16.msra.mxu1 %v223_v11 }
  0x25   :  { %156 = vmatmul.mubr.bf16.vlgmr.msra.gmra.mxu0 %v224_v12  ;;  %164 = vmatmul.mubr.bf16.vlgmr.msra.gmra.mxu1 %v227_v13 }
  0xe5   :  { %v157_v15 = vpop.f32.mrf.mxu0  ;;  %v165_v16 = vpop.f32.mrf.mxu1 }
  0xe6   :  { %v158_v17 = vadd.f32 %v180_v14, %v157_v15  ;;  %v166_v18 = vadd.f32 %v180_v14, %v165_v16 }
  0xe7   :  { %v159_v19 = vpop.f32.mrf.mxu0  ;;  %v167_v20 = vpop.f32.mrf.mxu1 }
  0xe8   :  { %172 = vst [vmem:[%s308_s3] sm:$0xff] %v158_v17  ;;  %174 = vst [vmem:[%s308_s3 + $0x10] sm:$0xff] %v166_v18 }
  0xe9   :  { %v160_v21 = vpop.f32.mrf.mxu0  ;;  %v168_v22 = vpop.f32.mrf.mxu1 }
  0xea   :  { %v161_v23 = vadd.f32 %v180_v14, %v160_v21  ;;  %v169_v24 = vadd.f32 %v180_v14, %v168_v22 }
  0xeb   :  { %v162_v25 = vpop.f32.mrf.mxu0  ;;  %v170_v26 = vpop.f32.mrf.mxu1 }
  0xec   :  { %173 = vst [vmem:[%s308_s3 + $0x8] sm:$0xff] %v161_v23  ;;  %175 = vst [vmem:[%s308_s3 + $0x18] sm:$0xff] %v169_v24 }

// kernel: idnet_forward.19
= control target key start
LH: loop header
LB: loop body
LE: loop exit
PB: predicated region body
PF: predicated region fallthrough
CT: control target
= control target key end

     0   :  { %v347_v1 = vmov 0.0   ;;  %vm348_vm0 = vmmov 0   ;;  %vm178_vm1 = vcmask 261120   ;;  %s435_s1 = inlined_call_operand.vmem [shape: bf16[288,128], index: 1, kind: input, shape index: {}]   ;;  %s436_s0 = inlined_call_operand.vmem [shape: bf16[8,288], index: 0, kind: input, shape index: {}]   ;;  %s437_s2 = inlined_call_operand.vmem [shape: f32[1,128], index: 2, kind: input, shape index: {}]   ;;  %s438_s3 = inlined_call_operand.vmem [shape: f32[8,128], index: 3, kind: output, shape index: {}]  }
   0x1   :  { %v326_v0 = vld [vmem:[%s435_s1 + $0x78] sm:$0xff]   ;;  %316 = vmatprep.subr.bf16.mxu1 %v347_v1  ;;  %320 = vmatprep.mubr.msk.bf16.mxu1 %vm348_vm0, %v347_v1  ;;  %v328_v3 = vld [vmem:[%s435_s1 + $0x70] sm:$0xff]   ;;  %v330_v5 = vld [vmem:[%s435_s1 + $0x68] sm:$0xff]  }
   0x2   :  { %v327_v2 = vld [vmem:[%s435_s1 + $0x38] sm:$0xff]   ;;  %291 = vmatprep.subr.bf16.mxu0 %v326_v0  ;;  %v329_v4 = vld [vmem:[%s435_s1 + $0x30] sm:$0xff]   ;;  %v331_v6 = vld [vmem:[%s435_s1 + $0x28] sm:$0xff]  }
   0x3   :  { %292 = vmatpush3.bf16.msra.mxu0 %v327_v2  ;;  %v332_v7 = vld [vmem:[%s435_s1 + $0x60] sm:$0xff]   ;;  %v334_v9 = vld [vmem:[%s435_s1 + $0x58] sm:$0xff]   ;;  %v339_v10 = vld [vmem:[%s435_s1 + $0x88] sm:$0xff]  }
   0x4   :  { %293 = vmatprep.subr.bf16.mxu0 %v328_v3  ;;  %v333_v8 = vld [vmem:[%s435_s1 + $0x20] sm:$0xff]   ;;  %v335_v11 = vld [vmem:[%s435_s1 + $0x18] sm:$0xff]   ;;  %v336_v12 = vld [vmem:[%s435_s1 + $0x50] sm:$0xff]   ;;  %317 = vmatpush3.bf16.msra.mxu1 %v339_v10 }
   0x5   :  { %318 = vmatprep.subr.bf16.mxu1 %v347_v1  ;;  %v342_v13 = vld [vmem:[%s435_s1 + $0x80] sm:$0xff]   ;;  %v346_v15 = vld [vmem:[%s436_s0 + $0x8] ss:$0 sps:$4 sm:$0xff]   ;;  %v337_v16 = vld [vmem:[%s435_s1 + $0x10] sm:$0xff]  }
   0x6   :  { %v15_v14 = vld [vmem:[%s436_s0] sm:$0xff]  ;;  %v338_v18 = vld [vmem:[%s435_s1 + $0x48] sm:$0xff]  }
   0x7   :  { %294 = vmatpush3.bf16.msra.mxu0 %v329_v4  ;;  %v270_v17 = vcombine.high %v15_v14, %v15_v14  ;;  %v340_v19 = vld [vmem:[%s435_s1 + $0x8] sm:$0xff]   ;;  %v341_v20 = vld [vmem:[%s435_s1 + $0x40] sm:$0xff]   ;;  %v269_v22 = vcombine.low %v15_v14, %v15_v14 }
   0x8   :  { %295 = vmatprep.subr.bf16.mxu0 %v330_v5  ;;  %319 = vmatpush3.bf16.msra.mxu1 %v342_v13  ;;  %v343_v21 = vld [vmem:[%s435_s1] sm:$0xff]  }
   0x9   :  { %214 = vmatprep.mubr.bf16.mxu0 %v270_v17  ;;  %v268_v28 = vld [vmem:[%s437_s2] ss:$0 sm:$0xff] }
   0xb   :  { %296 = vmatpush3.bf16.msra.mxu0 %v331_v6  ;;  %321 = vmatmul.mubr.msk.bf16.vlgmr.msra.gmra.mxu1 %vm178_vm1, %v346_v15 }
   0xc   :  { %297 = vmatprep.subr.bf16.mxu0 %v332_v7 }
   0xf   :  { %298 = vmatpush3.bf16.msra.mxu0 %v333_v8 }
  0x10   :  { %299 = vmatprep.subr.bf16.mxu0 %v334_v9 }
  0x13   :  { %300 = vmatpush3.bf16.msra.mxu0 %v335_v11 }
  0x14   :  { %301 = vmatprep.subr.bf16.mxu0 %v336_v12 }
  0x17   :  { %302 = vmatpush3.bf16.msra.mxu0 %v337_v16 }
  0x18   :  { %303 = vmatprep.subr.bf16.mxu0 %v338_v18 }
  0x1b   :  { %304 = vmatpush3.bf16.msra.mxu0 %v340_v19 }
  0x1c   :  { %305 = vmatprep.subr.bf16.mxu0 %v341_v20 }
  0x1f   :  { %306 = vmatpush3.bf16.msra.mxu0 %v343_v21 }
  0x22   :  { %215 = vmatmul.mubr.bf16.vlgmr.msra.gmra.mxu0 %v269_v22 }
  0xcb   :  { %v256_v23 = vpop.f32.mrf.mxu1 }
  0xcd   :  { %v322_v24 = vpop.f32.mrf.mxu1 }
  0xcf   :  { %v259_v25 = vpop.f32.mrf.mxu1 }
  0xd1   :  { %v323_v26 = vpop.f32.mrf.mxu1 }
  0xe2   :  { %v307_v27 = vpop.f32.mrf.mxu0 }
  0xe4   :  { %v308_v29 = vpop.f32.mrf.mxu0 }
  0xe5   :  { %v309_v30 = vadd.f32 %v308_v29, %v307_v27 }
  0xe6   :  { %v310_v31 = vpop.f32.mrf.mxu0 }
  0xe7   :  { %v217_v32 = vadd.f32 %v309_v30, %v268_v28 }
  0xe8   :  { %v311_v33 = vpop.f32.mrf.mxu0 }
  0xe9   :  { %v257_v34 = vadd.f32 %v256_v23, %v217_v32 }
  0xeb   :  { %v262_v35 = vmax.f32 %v257_v34, 0.0 }
  0xed   :  { %263 = vst [vmem:[%s438_s3] sm:$0xff] %v262_v35 }

</bundles_post_ra>
